<compile_context>
chip_gen: v7x
topology: tpu7x:2x2x1
jax: 0.10.0
libtpu: 0.0.40
codegen_flags: <defaults>
</compile_context>

<pallas_src>
import math

import jax
import jax.numpy as jnp
import numpy as np
from jax.experimental import pallas as pl
from jax.experimental.pallas import tpu as pltpu

# Small config consistent with the CLIP structure (stand-ins for 49408/768/77/12/12).
N_VOCAB = 512
N_EMBD = 128
N_TOKEN = 16
N_HEAD = 4
N_LAYER = 2
D_HEAD = N_EMBD // N_HEAD
LN_EPS = 1e-5        # nn.LayerNorm default
NEG_INF = -1e30


def _layernorm(x, g, b):
    mu = jnp.mean(x, axis=-1, keepdims=True)
    var = jnp.mean(jnp.square(x - mu), axis=-1, keepdims=True)
    return (x - mu) * jax.lax.rsqrt(var + LN_EPS) * g + b


# ---------------------------------------------------------------------------
# Fused kernel: embedding (step 0) -> layer l -> ... -> final LN (last step)
# ---------------------------------------------------------------------------
def _make_clip_kernel(batch):
    n_rows = batch * N_TOKEN
    scale = 1.0 / math.sqrt(D_HEAD)
    bf16 = jnp.bfloat16
    f32 = jnp.float32

    def kernel(tok_ref,                    # SMEM (B*T,) int32  (scalar prefetch)
               tok_tab_ref, pos_tab_ref,   # embedding tables (f32, VMEM-resident)
               ln1_g, ln1_b, wqkv, bqkv, wo, bo,
               ln2_g, ln2_b, w1, b1, w2, b2,   # current layer's params (leading dim 1)
               lnf_g, lnf_b,               # final LayerNorm params
               out_ref,                    # (B*T, D) f32
               x_sc, mask_sc):             # VMEM scratch: resident state + causal mask
        l = pl.program_id(0)

        # ---- step 0: build causal mask, gather token rows, add position rows ----
        @pl.when(l == 0)
        def _():
            row = jax.lax.broadcasted_iota(jnp.int32, (N_TOKEN, N_TOKEN), 0)
            col = jax.lax.broadcasted_iota(jnp.int32, (N_TOKEN, N_TOKEN), 1)
            mask_sc[...] = jnp.where(col <= row, 0.0, NEG_INF).astype(f32)

            def gather_row(i, carry):
                tok = tok_ref[i]
                pos = i % N_TOKEN
                x_sc[pl.ds(i, 1), :] = (tok_tab_ref[pl.ds(tok, 1), :] +
                                        pos_tab_ref[pl.ds(pos, 1), :])
                return carry

            jax.lax.fori_loop(0, n_rows, gather_row, 0, unroll=True)

        x = x_sc[...]                                            # (B*T, D) f32

        # ------------------------- attention block -------------------------
        h = _layernorm(x, ln1_g[0], ln1_b[0])
        qkv = jnp.dot(h.astype(bf16), wqkv[0],
                      preferred_element_type=f32) + bqkv[0]       # (B*T, 3D) f32
        q = qkv[:, :N_EMBD].reshape(batch, N_TOKEN, N_EMBD)
        k = qkv[:, N_EMBD:2 * N_EMBD].reshape(batch, N_TOKEN, N_EMBD)
        v = qkv[:, 2 * N_EMBD:].reshape(batch, N_TOKEN, N_EMBD)

        mask = mask_sc[...]                                      # (T, T) additive
        head_outs = []
        for hd in range(N_HEAD):                                 # batched over B per head
            sl = slice(hd * D_HEAD, (hd + 1) * D_HEAD)
            qh = q[:, :, sl].astype(bf16)
            kh = k[:, :, sl].astype(bf16)
            vh = v[:, :, sl].astype(bf16)
            s = jnp.einsum("bqd,bkd->bqk", qh, kh,
                           preferred_element_type=f32) * scale
            s = s + mask                                          # causal mask (f32)
            s = s - jnp.max(s, axis=-1, keepdims=True)
            p = jnp.exp(s)
            denom = jnp.sum(p, axis=-1, keepdims=True)
            inv = pl.reciprocal(denom, approx=True)               # EUP slot
            inv = inv * (2.0 - denom * inv)                       # one Newton step
            p = p * inv
            head_outs.append(jnp.einsum("bqk,bkd->bqd", p.astype(bf16), vh,
                                        preferred_element_type=f32))
        attn = jnp.concatenate(head_outs, axis=-1).reshape(n_rows, N_EMBD)
        attn = jnp.dot(attn.astype(bf16), wo[0],
                       preferred_element_type=f32) + bo[0]
        x = x + attn

        # ---------------------------- MLP block ----------------------------
        h = _layernorm(x, ln2_g[0], ln2_b[0])
        h = jnp.dot(h.astype(bf16), w1[0], preferred_element_type=f32) + b1[0]
        h = h * jax.nn.sigmoid(1.702 * h)                         # quick-GELU (f32)
        h = jnp.dot(h.astype(bf16), w2[0], preferred_element_type=f32) + b2[0]
        x = x + h

        x_sc[...] = x                                             # carry to next layer

        # ---- last step: final LayerNorm -> output ----
        @pl.when(l == pl.num_programs(0) - 1)
        def _():
            out_ref[...] = _layernorm(x, lnf_g[...], lnf_b[...])

    return kernel


# ---------------------------------------------------------------------------
# Wrapper
# ---------------------------------------------------------------------------
def clip_forward(tokens, params):
    token_table, pos_table, stacked, lnf_g, lnf_b = params
    B, T = tokens.shape
    assert T == N_TOKEN
    n_rows = B * T
    tokens_flat = tokens.reshape(-1).astype(jnp.int32)   # .type(torch.long) equivalent

    def const2(shape):
        return pl.BlockSpec(shape, lambda l, tok: (0, 0))

    in_specs = [const2((N_VOCAB, N_EMBD)),                 # token table (resident)
                const2((N_TOKEN, N_EMBD))]                 # position table (resident)
    for p in stacked:                                      # layer-stacked params
        in_specs.append(pl.BlockSpec((1,) + p.shape[1:], lambda l, tok: (l, 0, 0)))
    in_specs += [const2((1, N_EMBD)), const2((1, N_EMBD))]  # final LN gamma/beta

    grid_spec = pltpu.PrefetchScalarGridSpec(
        num_scalar_prefetch=1,                             # token ids -> SMEM
        grid=(N_LAYER,),
        in_specs=in_specs,
        out_specs=pl.BlockSpec((n_rows, N_EMBD), lambda l, tok: (0, 0)),
        scratch_shapes=[
            pltpu.VMEM((n_rows, N_EMBD), jnp.float32),     # resident hidden state
            pltpu.VMEM((N_TOKEN, N_TOKEN), jnp.float32),   # additive causal mask
        ],
    )
    out = pl.pallas_call(
        _make_clip_kernel(B),
        out_shape=jax.ShapeDtypeStruct((n_rows, N_EMBD), jnp.float32),
        grid_spec=grid_spec,
        compiler_params=pltpu.CompilerParams(dimension_semantics=("arbitrary",)),
    )(tokens_flat, token_table, pos_table, *stacked, lnf_g, lnf_b)
    return out.reshape(B, T, N_EMBD)


# ---------------------------------------------------------------------------
# Parameters (weights stored as (in, out); MXU weights in bf16, rest f32)
# ---------------------------------------------------------------------------
def init_params(key):
    keys = jax.random.split(key, 16)
    ki = iter(keys)

    def nrm(shape):
        return 0.02 * jax.random.normal(next(ki), shape, jnp.float32)

    token_table = nrm((N_VOCAB, N_EMBD))
    pos_table = nrm((N_TOKEN, N_EMBD))   # nn.Parameter(zeros); noise so the add is exercised

    ln1_g = jnp.ones((N_LAYER, 1, N_EMBD), jnp.float32)
    ln1_b = jnp.zeros((N_LAYER, 1, N_EMBD), jnp.float32)
    ln2_g = jnp.ones((N_LAYER, 1, N_EMBD), jnp.float32)
    ln2_b = jnp.zeros((N_LAYER, 1, N_EMBD), jnp.float32)
    wqkv = nrm((N_LAYER, N_EMBD, 3 * N_EMBD)).astype(jnp.bfloat16)
    bqkv = nrm((N_LAYER, 1, 3 * N_EMBD))
    wo = nrm((N_LAYER, N_EMBD, N_EMBD)).astype(jnp.bfloat16)
    bo = nrm((N_LAYER, 1, N_EMBD))
    w1 = nrm((N_LAYER, N_EMBD, 4 * N_EMBD)).astype(jnp.bfloat16)
    b1 = nrm((N_LAYER, 1, 4 * N_EMBD))
    w2 = nrm((N_LAYER, 4 * N_EMBD, N_EMBD)).astype(jnp.bfloat16)
    b2 = nrm((N_LAYER, 1, N_EMBD))
    stacked = (ln1_g, ln1_b, wqkv, bqkv, wo, bo, ln2_g, ln2_b, w1, b1, w2, b2)

    lnf_g = jnp.ones((1, N_EMBD), jnp.float32)
    lnf_b = jnp.zeros((1, N_EMBD), jnp.float32)
    return token_table, pos_table, stacked, lnf_g, lnf_b


# ---------------------------------------------------------------------------
# Pure-JAX reference (mirrors the PyTorch forward with the same bf16-matmul recipe)
# ---------------------------------------------------------------------------
def _ref_ln(x, g, b):
    mu = x.mean(-1, keepdims=True)
    var = ((x - mu) ** 2).mean(-1, keepdims=True)
    return (x - mu) * jax.lax.rsqrt(var + LN_EPS) * g + b


def clip_reference(tokens, params):
    token_table, pos_table, stacked, lnf_g, lnf_b = params
    ln1_g, ln1_b, wqkv, bqkv, wo, bo, ln2_g, ln2_b, w1, b1, w2, b2 = stacked
    bf, f32 = jnp.bfloat16, jnp.float32
    x = token_table[tokens] + pos_table[None]
    B, T, D = x.shape
    causal = jnp.tril(jnp.ones((T, T), bool))
    for l in range(N_LAYER):
        h = _ref_ln(x, ln1_g[l], ln1_b[l])
        qkv = jnp.dot(h.astype(bf), wqkv[l], preferred_element_type=f32) + bqkv[l]
        q, k, v = jnp.split(qkv, 3, axis=-1)
        q = q.reshape(B, T, N_HEAD, D_HEAD).transpose(0, 2, 1, 3)
        k = k.reshape(B, T, N_HEAD, D_HEAD).transpose(0, 2, 1, 3)
        v = v.reshape(B, T, N_HEAD, D_HEAD).transpose(0, 2, 1, 3)
        s = jnp.einsum("bhqd,bhkd->bhqk", q.astype(bf), k.astype(bf),
                       preferred_element_type=f32) / math.sqrt(D_HEAD)
        s = jnp.where(causal, s, NEG_INF)
        p = jax.nn.softmax(s, axis=-1)
        o = jnp.einsum("bhqk,bhkd->bhqd", p.astype(bf), v.astype(bf),
                       preferred_element_type=f32)
        o = o.transpose(0, 2, 1, 3).reshape(B, T, D)
        x = x + jnp.dot(o.astype(bf), wo[l], preferred_element_type=f32) + bo[l]
        h = _ref_ln(x, ln2_g[l], ln2_b[l])
        h = jnp.dot(h.astype(bf), w1[l], preferred_element_type=f32) + b1[l]
        h = h * jax.nn.sigmoid(1.702 * h)
        h = jnp.dot(h.astype(bf), w2[l], preferred_element_type=f32) + b2[l]
        x = x + h
    return _ref_ln(x, lnf_g, lnf_b)


if __name__ == "__main__":
    key = jax.random.PRNGKey(0)
    pkey, tkey = jax.random.split(key)
    params = init_params(pkey)

    B = 2
    tokens = jax.random.randint(tkey, (B, N_TOKEN), 0, N_VOCAB, dtype=jnp.int32)

    out = jax.block_until_ready(clip_forward(tokens, params))
    ref = jax.block_until_ready(clip_reference(tokens, params))

    np.testing.assert_allclose(np.asarray(out), np.asarray(ref), rtol=1e-3, atol=1e-3)
    assert out.shape == (B, N_TOKEN, N_EMBD) and out.dtype == jnp.float32

    print("KERNEL_OK")
</pallas_src>

<mosaic_0001>
module attributes {stable_mosaic.version = 11 : i64} {
  func.func @kernel(%arg0: i32, %arg1: memref<32xi32, #tpu.memory_space<smem>>, %arg2: memref<512x128xf32, #tpu.memory_space<vmem>>, %arg3: memref<16x128xf32, #tpu.memory_space<vmem>>, %arg4: memref<1x1x128xf32, #tpu.memory_space<vmem>>, %arg5: memref<1x1x128xf32, #tpu.memory_space<vmem>>, %arg6: memref<1x128x384xbf16, #tpu.memory_space<vmem>>, %arg7: memref<1x1x384xf32, #tpu.memory_space<vmem>>, %arg8: memref<1x128x128xbf16, #tpu.memory_space<vmem>>, %arg9: memref<1x1x128xf32, #tpu.memory_space<vmem>>, %arg10: memref<1x1x128xf32, #tpu.memory_space<vmem>>, %arg11: memref<1x1x128xf32, #tpu.memory_space<vmem>>, %arg12: memref<1x128x512xbf16, #tpu.memory_space<vmem>>, %arg13: memref<1x1x512xf32, #tpu.memory_space<vmem>>, %arg14: memref<1x512x128xbf16, #tpu.memory_space<vmem>>, %arg15: memref<1x1x128xf32, #tpu.memory_space<vmem>>, %arg16: memref<1x128xf32, #tpu.memory_space<vmem>>, %arg17: memref<1x128xf32, #tpu.memory_space<vmem>>, %arg18: memref<32x128xf32, #tpu.memory_space<vmem>>, %arg19: memref<32x128xf32, #tpu.memory_space<vmem>>, %arg20: memref<16x16xf32, #tpu.memory_space<vmem>>) attributes {dimension_semantics = [#tpu.dimension_semantics<arbitrary>], iteration_bounds = array<i64: 2>, scalar_prefetch = 1 : i64, scratch_operands = 2 : i64, tpu.core_type = #tpu.core_type<tc>, window_params = [{pipeline_mode = #tpu.pipeline_mode<synchronous>, transform_indices = @transform_0, window_bounds = array<i64: 512, 128>}, {pipeline_mode = #tpu.pipeline_mode<synchronous>, transform_indices = @transform_1, window_bounds = array<i64: 16, 128>}, {transform_indices = @transform_2, window_bounds = array<i64: 1, 1, 128>}, {transform_indices = @transform_3, window_bounds = array<i64: 1, 1, 128>}, {transform_indices = @transform_4, window_bounds = array<i64: 1, 128, 384>}, {transform_indices = @transform_5, window_bounds = array<i64: 1, 1, 384>}, {transform_indices = @transform_6, window_bounds = array<i64: 1, 128, 128>}, {transform_indices = @transform_7, window_bounds = array<i64: 1, 1, 128>}, {transform_indices = @transform_8, window_bounds = array<i64: 1, 1, 128>}, {transform_indices = @transform_9, window_bounds = array<i64: 1, 1, 128>}, {transform_indices = @transform_10, window_bounds = array<i64: 1, 128, 512>}, {transform_indices = @transform_11, window_bounds = array<i64: 1, 1, 512>}, {transform_indices = @transform_12, window_bounds = array<i64: 1, 512, 128>}, {transform_indices = @transform_13, window_bounds = array<i64: 1, 1, 128>}, {pipeline_mode = #tpu.pipeline_mode<synchronous>, transform_indices = @transform_14, window_bounds = array<i64: 1, 128>}, {pipeline_mode = #tpu.pipeline_mode<synchronous>, transform_indices = @transform_15, window_bounds = array<i64: 1, 128>}, {pipeline_mode = #tpu.pipeline_mode<synchronous>, transform_indices = @transform_16, window_bounds = array<i64: 32, 128>}]} {
    %c0_i32 = arith.constant 0 : i32
    %0 = arith.cmpi eq, %arg0, %c0_i32 : i32
    %1 = arith.extui %0 : i1 to i32
    %c0_i32_0 = arith.constant 0 : i32
    %2 = arith.cmpi ne, %1, %c0_i32_0 : i32
    scf.if %2 {
      %223 = tpu.iota {dimensions = array<i32: 0>} : vector<16x16xi32>
      %224 = tpu.iota {dimensions = array<i32: 1>} : vector<16x16xi32>
      %225 = arith.cmpi sle, %224, %223 : vector<16x16xi32>
      %cst_82 = arith.constant 0.000000e+00 : f32
      %cst_83 = arith.constant -1.000000e+30 : f32
      %226 = vector.broadcast %cst_82 : f32 to vector<16x16xf32>
      %227 = vector.broadcast %cst_83 : f32 to vector<16x16xf32>
      %228 = arith.select %225, %226, %227 : vector<16x16xi1>, vector<16x16xf32>
      %c0_84 = arith.constant 0 : index
      %c0_85 = arith.constant 0 : index
      %229 = vector.load %arg20[%c0_84, %c0_85] : memref<16x16xf32, #tpu.memory_space<vmem>>, vector<16x16xf32>
      tpu.vector_store %arg20[%c0_84, %c0_85], %228 {strides = array<i32>} : memref<16x16xf32, #tpu.memory_space<vmem>>, vector<16x16xf32>,
      %c0_i32_86 = arith.constant 0 : i32
      %230 = arith.index_cast %c0_i32_86 : i32 to index
      %231 = memref.load %arg1[%230] : memref<32xi32, #tpu.memory_space<smem>>
      %c16_i32 = arith.constant 16 : i32
      %c0_i32_87 = arith.constant 0 : i32
      %232 = arith.cmpi eq, %c16_i32, %c0_i32_87 : i32
      %c1_i32_88 = arith.constant 1 : i32
      %233 = arith.select %232, %c1_i32_88, %c16_i32 : i32
      %234 = arith.remsi %c0_i32_86, %233 : i32
      %c0_i32_89 = arith.constant 0 : i32
      %235 = arith.cmpi ne, %234, %c0_i32_89 : i32
      %c0_i32_90 = arith.constant 0 : i32
      %236 = arith.cmpi slt, %234, %c0_i32_90 : i32
      %c0_i32_91 = arith.constant 0 : i32
      %237 = arith.cmpi slt, %233, %c0_i32_91 : i32
      %238 = arith.xori %236, %237 : i1
      %239 = arith.andi %238, %235 : i1
      %240 = arith.addi %234, %233 : i32
      %241 = arith.select %239, %240, %234 : i32
      %242 = arith.index_cast %231 : i32 to index
      %c0_92 = arith.constant 0 : index
      %243 = vector.load %arg2[%242, %c0_92] : memref<512x128xf32, #tpu.memory_space<vmem>>, vector<1x128xf32>
      %244 = arith.index_cast %241 : i32 to index
      %c0_93 = arith.constant 0 : index
      %245 = vector.load %arg3[%244, %c0_93] : memref<16x128xf32, #tpu.memory_space<vmem>>, vector<1x128xf32>
      %246 = arith.addf %243, %245 : vector<1x128xf32>
      %247 = arith.index_cast %c0_i32_86 : i32 to index
      %c0_94 = arith.constant 0 : index
      %248 = vector.load %arg19[%247, %c0_94] : memref<32x128xf32, #tpu.memory_space<vmem>>, vector<1x128xf32>
      tpu.vector_store %arg19[%247, %c0_94], %246 {strides = array<i32>} : memref<32x128xf32, #tpu.memory_space<vmem>>, vector<1x128xf32>,
      %c1_i32_95 = arith.constant 1 : i32
      %249 = arith.index_cast %c1_i32_95 : i32 to index
      %250 = memref.load %arg1[%249] : memref<32xi32, #tpu.memory_space<smem>>
      %c16_i32_96 = arith.constant 16 : i32
      %c0_i32_97 = arith.constant 0 : i32
      %251 = arith.cmpi eq, %c16_i32_96, %c0_i32_97 : i32
      %c1_i32_98 = arith.constant 1 : i32
      %252 = arith.select %251, %c1_i32_98, %c16_i32_96 : i32
      %253 = arith.remsi %c1_i32_95, %252 : i32
      %c0_i32_99 = arith.constant 0 : i32
      %254 = arith.cmpi ne, %253, %c0_i32_99 : i32
      %c0_i32_100 = arith.constant 0 : i32
      %255 = arith.cmpi slt, %253, %c0_i32_100 : i32
      %c0_i32_101 = arith.constant 0 : i32
      %256 = arith.cmpi slt, %252, %c0_i32_101 : i32
      %257 = arith.xori %255, %256 : i1
      %258 = arith.andi %257, %254 : i1
      %259 = arith.addi %253, %252 : i32
      %260 = arith.select %258, %259, %253 : i32
      %261 = arith.index_cast %250 : i32 to index
      %c0_102 = arith.constant 0 : index
      %262 = vector.load %arg2[%261, %c0_102] : memref<512x128xf32, #tpu.memory_space<vmem>>, vector<1x128xf32>
      %263 = arith.index_cast %260 : i32 to index
      %c0_103 = arith.constant 0 : index
      %264 = vector.load %arg3[%263, %c0_103] : memref<16x128xf32, #tpu.memory_space<vmem>>, vector<1x128xf32>
      %265 = arith.addf %262, %264 : vector<1x128xf32>
      %266 = arith.index_cast %c1_i32_95 : i32 to index
      %c0_104 = arith.constant 0 : index
      %267 = vector.load %arg19[%266, %c0_104] : memref<32x128xf32, #tpu.memory_space<vmem>>, vector<1x128xf32>
      tpu.vector_store %arg19[%266, %c0_104], %265 {strides = array<i32>} : memref<32x128xf32, #tpu.memory_space<vmem>>, vector<1x128xf32>,
      %c2_i32 = arith.constant 2 : i32
      %268 = arith.index_cast %c2_i32 : i32 to index
      %269 = memref.load %arg1[%268] : memref<32xi32, #tpu.memory_space<smem>>
      %c16_i32_105 = arith.constant 16 : i32
      %c0_i32_106 = arith.constant 0 : i32
      %270 = arith.cmpi eq, %c16_i32_105, %c0_i32_106 : i32
      %c1_i32_107 = arith.constant 1 : i32
      %271 = arith.select %270, %c1_i32_107, %c16_i32_105 : i32
      %272 = arith.remsi %c2_i32, %271 : i32
      %c0_i32_108 = arith.constant 0 : i32
      %273 = arith.cmpi ne, %272, %c0_i32_108 : i32
      %c0_i32_109 = arith.constant 0 : i32
      %274 = arith.cmpi slt, %272, %c0_i32_109 : i32
      %c0_i32_110 = arith.constant 0 : i32
      %275 = arith.cmpi slt, %271, %c0_i32_110 : i32
      %276 = arith.xori %274, %275 : i1
      %277 = arith.andi %276, %273 : i1
      %278 = arith.addi %272, %271 : i32
      %279 = arith.select %277, %278, %272 : i32
      %280 = arith.index_cast %269 : i32 to index
      %c0_111 = arith.constant 0 : index
      %281 = vector.load %arg2[%280, %c0_111] : memref<512x128xf32, #tpu.memory_space<vmem>>, vector<1x128xf32>
      %282 = arith.index_cast %279 : i32 to index
      %c0_112 = arith.constant 0 : index
      %283 = vector.load %arg3[%282, %c0_112] : memref<16x128xf32, #tpu.memory_space<vmem>>, vector<1x128xf32>
      %284 = arith.addf %281, %283 : vector<1x128xf32>
      %285 = arith.index_cast %c2_i32 : i32 to index
      %c0_113 = arith.constant 0 : index
      %286 = vector.load %arg19[%285, %c0_113] : memref<32x128xf32, #tpu.memory_space<vmem>>, vector<1x128xf32>
      tpu.vector_store %arg19[%285, %c0_113], %284 {strides = array<i32>} : memref<32x128xf32, #tpu.memory_space<vmem>>, vector<1x128xf32>,
      %c3_i32 = arith.constant 3 : i32
      %287 = arith.index_cast %c3_i32 : i32 to index
      %288 = memref.load %arg1[%287] : memref<32xi32, #tpu.memory_space<smem>>
      %c16_i32_114 = arith.constant 16 : i32
      %c0_i32_115 = arith.constant 0 : i32
      %289 = arith.cmpi eq, %c16_i32_114, %c0_i32_115 : i32
      %c1_i32_116 = arith.constant 1 : i32
      %290 = arith.select %289, %c1_i32_116, %c16_i32_114 : i32
      %291 = arith.remsi %c3_i32, %290 : i32
      %c0_i32_117 = arith.constant 0 : i32
      %292 = arith.cmpi ne, %291, %c0_i32_117 : i32
      %c0_i32_118 = arith.constant 0 : i32
      %293 = arith.cmpi slt, %291, %c0_i32_118 : i32
      %c0_i32_119 = arith.constant 0 : i32
      %294 = arith.cmpi slt, %290, %c0_i32_119 : i32
      %295 = arith.xori %293, %294 : i1
      %296 = arith.andi %295, %292 : i1
      %297 = arith.addi %291, %290 : i32
      %298 = arith.select %296, %297, %291 : i32
      %299 = arith.index_cast %288 : i32 to index
      %c0_120 = arith.constant 0 : index
      %300 = vector.load %arg2[%299, %c0_120] : memref<512x128xf32, #tpu.memory_space<vmem>>, vector<1x128xf32>
      %301 = arith.index_cast %298 : i32 to index
      %c0_121 = arith.constant 0 : index
      %302 = vector.load %arg3[%301, %c0_121] : memref<16x128xf32, #tpu.memory_space<vmem>>, vector<1x128xf32>
      %303 = arith.addf %300, %302 : vector<1x128xf32>
      %304 = arith.index_cast %c3_i32 : i32 to index
      %c0_122 = arith.constant 0 : index
      %305 = vector.load %arg19[%304, %c0_122] : memref<32x128xf32, #tpu.memory_space<vmem>>, vector<1x128xf32>
      tpu.vector_store %arg19[%304, %c0_122], %303 {strides = array<i32>} : memref<32x128xf32, #tpu.memory_space<vmem>>, vector<1x128xf32>,
      %c4_i32 = arith.constant 4 : i32
      %306 = arith.index_cast %c4_i32 : i32 to index
      %307 = memref.load %arg1[%306] : memref<32xi32, #tpu.memory_space<smem>>
      %c16_i32_123 = arith.constant 16 : i32
      %c0_i32_124 = arith.constant 0 : i32
      %308 = arith.cmpi eq, %c16_i32_123, %c0_i32_124 : i32
      %c1_i32_125 = arith.constant 1 : i32
      %309 = arith.select %308, %c1_i32_125, %c16_i32_123 : i32
      %310 = arith.remsi %c4_i32, %309 : i32
      %c0_i32_126 = arith.constant 0 : i32
      %311 = arith.cmpi ne, %310, %c0_i32_126 : i32
      %c0_i32_127 = arith.constant 0 : i32
      %312 = arith.cmpi slt, %310, %c0_i32_127 : i32
      %c0_i32_128 = arith.constant 0 : i32
      %313 = arith.cmpi slt, %309, %c0_i32_128 : i32
      %314 = arith.xori %312, %313 : i1
      %315 = arith.andi %314, %311 : i1
      %316 = arith.addi %310, %309 : i32
      %317 = arith.select %315, %316, %310 : i32
      %318 = arith.index_cast %307 : i32 to index
      %c0_129 = arith.constant 0 : index
      %319 = vector.load %arg2[%318, %c0_129] : memref<512x128xf32, #tpu.memory_space<vmem>>, vector<1x128xf32>
      %320 = arith.index_cast %317 : i32 to index
      %c0_130 = arith.constant 0 : index
      %321 = vector.load %arg3[%320, %c0_130] : memref<16x128xf32, #tpu.memory_space<vmem>>, vector<1x128xf32>
      %322 = arith.addf %319, %321 : vector<1x128xf32>
      %323 = arith.index_cast %c4_i32 : i32 to index
      %c0_131 = arith.constant 0 : index
      %324 = vector.load %arg19[%323, %c0_131] : memref<32x128xf32, #tpu.memory_space<vmem>>, vector<1x128xf32>
      tpu.vector_store %arg19[%323, %c0_131], %322 {strides = array<i32>} : memref<32x128xf32, #tpu.memory_space<vmem>>, vector<1x128xf32>,
      %c5_i32 = arith.constant 5 : i32
      %325 = arith.index_cast %c5_i32 : i32 to index
      %326 = memref.load %arg1[%325] : memref<32xi32, #tpu.memory_space<smem>>
      %c16_i32_132 = arith.constant 16 : i32
      %c0_i32_133 = arith.constant 0 : i32
      %327 = arith.cmpi eq, %c16_i32_132, %c0_i32_133 : i32
      %c1_i32_134 = arith.constant 1 : i32
      %328 = arith.select %327, %c1_i32_134, %c16_i32_132 : i32
      %329 = arith.remsi %c5_i32, %328 : i32
      %c0_i32_135 = arith.constant 0 : i32
      %330 = arith.cmpi ne, %329, %c0_i32_135 : i32
      %c0_i32_136 = arith.constant 0 : i32
      %331 = arith.cmpi slt, %329, %c0_i32_136 : i32
      %c0_i32_137 = arith.constant 0 : i32
      %332 = arith.cmpi slt, %328, %c0_i32_137 : i32
      %333 = arith.xori %331, %332 : i1
      %334 = arith.andi %333, %330 : i1
      %335 = arith.addi %329, %328 : i32
      %336 = arith.select %334, %335, %329 : i32
      %337 = arith.index_cast %326 : i32 to index
      %c0_138 = arith.constant 0 : index
      %338 = vector.load %arg2[%337, %c0_138] : memref<512x128xf32, #tpu.memory_space<vmem>>, vector<1x128xf32>
      %339 = arith.index_cast %336 : i32 to index
      %c0_139 = arith.constant 0 : index
      %340 = vector.load %arg3[%339, %c0_139] : memref<16x128xf32, #tpu.memory_space<vmem>>, vector<1x128xf32>
      %341 = arith.addf %338, %340 : vector<1x128xf32>
      %342 = arith.index_cast %c5_i32 : i32 to index
      %c0_140 = arith.constant 0 : index
      %343 = vector.load %arg19[%342, %c0_140] : memref<32x128xf32, #tpu.memory_space<vmem>>, vector<1x128xf32>
      tpu.vector_store %arg19[%342, %c0_140], %341 {strides = array<i32>} : memref<32x128xf32, #tpu.memory_space<vmem>>, vector<1x128xf32>,
      %c6_i32 = arith.constant 6 : i32
      %344 = arith.index_cast %c6_i32 : i32 to index
      %345 = memref.load %arg1[%344] : memref<32xi32, #tpu.memory_space<smem>>
      %c16_i32_141 = arith.constant 16 : i32
      %c0_i32_142 = arith.constant 0 : i32
      %346 = arith.cmpi eq, %c16_i32_141, %c0_i32_142 : i32
      %c1_i32_143 = arith.constant 1 : i32
      %347 = arith.select %346, %c1_i32_143, %c16_i32_141 : i32
      %348 = arith.remsi %c6_i32, %347 : i32
      %c0_i32_144 = arith.constant 0 : i32
      %349 = arith.cmpi ne, %348, %c0_i32_144 : i32
      %c0_i32_145 = arith.constant 0 : i32
      %350 = arith.cmpi slt, %348, %c0_i32_145 : i32
      %c0_i32_146 = arith.constant 0 : i32
      %351 = arith.cmpi slt, %347, %c0_i32_146 : i32
      %352 = arith.xori %350, %351 : i1
      %353 = arith.andi %352, %349 : i1
      %354 = arith.addi %348, %347 : i32
      %355 = arith.select %353, %354, %348 : i32
      %356 = arith.index_cast %345 : i32 to index
      %c0_147 = arith.constant 0 : index
      %357 = vector.load %arg2[%356, %c0_147] : memref<512x128xf32, #tpu.memory_space<vmem>>, vector<1x128xf32>
      %358 = arith.index_cast %355 : i32 to index
      %c0_148 = arith.constant 0 : index
      %359 = vector.load %arg3[%358, %c0_148] : memref<16x128xf32, #tpu.memory_space<vmem>>, vector<1x128xf32>
      %360 = arith.addf %357, %359 : vector<1x128xf32>
      %361 = arith.index_cast %c6_i32 : i32 to index
      %c0_149 = arith.constant 0 : index
      %362 = vector.load %arg19[%361, %c0_149] : memref<32x128xf32, #tpu.memory_space<vmem>>, vector<1x128xf32>
      tpu.vector_store %arg19[%361, %c0_149], %360 {strides = array<i32>} : memref<32x128xf32, #tpu.memory_space<vmem>>, vector<1x128xf32>,
      %c7_i32 = arith.constant 7 : i32
      %363 = arith.index_cast %c7_i32 : i32 to index
      %364 = memref.load %arg1[%363] : memref<32xi32, #tpu.memory_space<smem>>
      %c16_i32_150 = arith.constant 16 : i32
      %c0_i32_151 = arith.constant 0 : i32
      %365 = arith.cmpi eq, %c16_i32_150, %c0_i32_151 : i32
      %c1_i32_152 = arith.constant 1 : i32
      %366 = arith.select %365, %c1_i32_152, %c16_i32_150 : i32
      %367 = arith.remsi %c7_i32, %366 : i32
      %c0_i32_153 = arith.constant 0 : i32
      %368 = arith.cmpi ne, %367, %c0_i32_153 : i32
      %c0_i32_154 = arith.constant 0 : i32
      %369 = arith.cmpi slt, %367, %c0_i32_154 : i32
      %c0_i32_155 = arith.constant 0 : i32
      %370 = arith.cmpi slt, %366, %c0_i32_155 : i32
      %371 = arith.xori %369, %370 : i1
      %372 = arith.andi %371, %368 : i1
      %373 = arith.addi %367, %366 : i32
      %374 = arith.select %372, %373, %367 : i32
      %375 = arith.index_cast %364 : i32 to index
      %c0_156 = arith.constant 0 : index
      %376 = vector.load %arg2[%375, %c0_156] : memref<512x128xf32, #tpu.memory_space<vmem>>, vector<1x128xf32>
      %377 = arith.index_cast %374 : i32 to index
      %c0_157 = arith.constant 0 : index
      %378 = vector.load %arg3[%377, %c0_157] : memref<16x128xf32, #tpu.memory_space<vmem>>, vector<1x128xf32>
      %379 = arith.addf %376, %378 : vector<1x128xf32>
      %380 = arith.index_cast %c7_i32 : i32 to index
      %c0_158 = arith.constant 0 : index
      %381 = vector.load %arg19[%380, %c0_158] : memref<32x128xf32, #tpu.memory_space<vmem>>, vector<1x128xf32>
      tpu.vector_store %arg19[%380, %c0_158], %379 {strides = array<i32>} : memref<32x128xf32, #tpu.memory_space<vmem>>, vector<1x128xf32>,
      %c8_i32 = arith.constant 8 : i32
      %382 = arith.index_cast %c8_i32 : i32 to index
      %383 = memref.load %arg1[%382] : memref<32xi32, #tpu.memory_space<smem>>
      %c16_i32_159 = arith.constant 16 : i32
      %c0_i32_160 = arith.constant 0 : i32
      %384 = arith.cmpi eq, %c16_i32_159, %c0_i32_160 : i32
      %c1_i32_161 = arith.constant 1 : i32
      %385 = arith.select %384, %c1_i32_161, %c16_i32_159 : i32
      %386 = arith.remsi %c8_i32, %385 : i32
      %c0_i32_162 = arith.constant 0 : i32
      %387 = arith.cmpi ne, %386, %c0_i32_162 : i32
      %c0_i32_163 = arith.constant 0 : i32
      %388 = arith.cmpi slt, %386, %c0_i32_163 : i32
      %c0_i32_164 = arith.constant 0 : i32
      %389 = arith.cmpi slt, %385, %c0_i32_164 : i32
      %390 = arith.xori %388, %389 : i1
      %391 = arith.andi %390, %387 : i1
      %392 = arith.addi %386, %385 : i32
      %393 = arith.select %391, %392, %386 : i32
      %394 = arith.index_cast %383 : i32 to index
      %c0_165 = arith.constant 0 : index
      %395 = vector.load %arg2[%394, %c0_165] : memref<512x128xf32, #tpu.memory_space<vmem>>, vector<1x128xf32>
      %396 = arith.index_cast %393 : i32 to index
      %c0_166 = arith.constant 0 : index
      %397 = vector.load %arg3[%396, %c0_166] : memref<16x128xf32, #tpu.memory_space<vmem>>, vector<1x128xf32>
      %398 = arith.addf %395, %397 : vector<1x128xf32>
      %399 = arith.index_cast %c8_i32 : i32 to index
      %c0_167 = arith.constant 0 : index
      %400 = vector.load %arg19[%399, %c0_167] : memref<32x128xf32, #tpu.memory_space<vmem>>, vector<1x128xf32>
      tpu.vector_store %arg19[%399, %c0_167], %398 {strides = array<i32>} : memref<32x128xf32, #tpu.memory_space<vmem>>, vector<1x128xf32>,
      %c9_i32 = arith.constant 9 : i32
      %401 = arith.index_cast %c9_i32 : i32 to index
      %402 = memref.load %arg1[%401] : memref<32xi32, #tpu.memory_space<smem>>
      %c16_i32_168 = arith.constant 16 : i32
      %c0_i32_169 = arith.constant 0 : i32
      %403 = arith.cmpi eq, %c16_i32_168, %c0_i32_169 : i32
      %c1_i32_170 = arith.constant 1 : i32
      %404 = arith.select %403, %c1_i32_170, %c16_i32_168 : i32
      %405 = arith.remsi %c9_i32, %404 : i32
      %c0_i32_171 = arith.constant 0 : i32
      %406 = arith.cmpi ne, %405, %c0_i32_171 : i32
      %c0_i32_172 = arith.constant 0 : i32
      %407 = arith.cmpi slt, %405, %c0_i32_172 : i32
      %c0_i32_173 = arith.constant 0 : i32
      %408 = arith.cmpi slt, %404, %c0_i32_173 : i32
      %409 = arith.xori %407, %408 : i1
      %410 = arith.andi %409, %406 : i1
      %411 = arith.addi %405, %404 : i32
      %412 = arith.select %410, %411, %405 : i32
      %413 = arith.index_cast %402 : i32 to index
      %c0_174 = arith.constant 0 : index
      %414 = vector.load %arg2[%413, %c0_174] : memref<512x128xf32, #tpu.memory_space<vmem>>, vector<1x128xf32>
      %415 = arith.index_cast %412 : i32 to index
      %c0_175 = arith.constant 0 : index
      %416 = vector.load %arg3[%415, %c0_175] : memref<16x128xf32, #tpu.memory_space<vmem>>, vector<1x128xf32>
      %417 = arith.addf %414, %416 : vector<1x128xf32>
      %418 = arith.index_cast %c9_i32 : i32 to index
      %c0_176 = arith.constant 0 : index
      %419 = vector.load %arg19[%418, %c0_176] : memref<32x128xf32, #tpu.memory_space<vmem>>, vector<1x128xf32>
      tpu.vector_store %arg19[%418, %c0_176], %417 {strides = array<i32>} : memref<32x128xf32, #tpu.memory_space<vmem>>, vector<1x128xf32>,
      %c10_i32 = arith.constant 10 : i32
      %420 = arith.index_cast %c10_i32 : i32 to index
      %421 = memref.load %arg1[%420] : memref<32xi32, #tpu.memory_space<smem>>
      %c16_i32_177 = arith.constant 16 : i32
      %c0_i32_178 = arith.constant 0 : i32
      %422 = arith.cmpi eq, %c16_i32_177, %c0_i32_178 : i32
      %c1_i32_179 = arith.constant 1 : i32
      %423 = arith.select %422, %c1_i32_179, %c16_i32_177 : i32
      %424 = arith.remsi %c10_i32, %423 : i32
      %c0_i32_180 = arith.constant 0 : i32
      %425 = arith.cmpi ne, %424, %c0_i32_180 : i32
      %c0_i32_181 = arith.constant 0 : i32
      %426 = arith.cmpi slt, %424, %c0_i32_181 : i32
      %c0_i32_182 = arith.constant 0 : i32
      %427 = arith.cmpi slt, %423, %c0_i32_182 : i32
      %428 = arith.xori %426, %427 : i1
      %429 = arith.andi %428, %425 : i1
      %430 = arith.addi %424, %423 : i32
      %431 = arith.select %429, %430, %424 : i32
      %432 = arith.index_cast %421 : i32 to index
      %c0_183 = arith.constant 0 : index
      %433 = vector.load %arg2[%432, %c0_183] : memref<512x128xf32, #tpu.memory_space<vmem>>, vector<1x128xf32>
      %434 = arith.index_cast %431 : i32 to index
      %c0_184 = arith.constant 0 : index
      %435 = vector.load %arg3[%434, %c0_184] : memref<16x128xf32, #tpu.memory_space<vmem>>, vector<1x128xf32>
      %436 = arith.addf %433, %435 : vector<1x128xf32>
      %437 = arith.index_cast %c10_i32 : i32 to index
      %c0_185 = arith.constant 0 : index
      %438 = vector.load %arg19[%437, %c0_185] : memref<32x128xf32, #tpu.memory_space<vmem>>, vector<1x128xf32>
      tpu.vector_store %arg19[%437, %c0_185], %436 {strides = array<i32>} : memref<32x128xf32, #tpu.memory_space<vmem>>, vector<1x128xf32>,
      %c11_i32 = arith.constant 11 : i32
      %439 = arith.index_cast %c11_i32 : i32 to index
      %440 = memref.load %arg1[%439] : memref<32xi32, #tpu.memory_space<smem>>
      %c16_i32_186 = arith.constant 16 : i32
      %c0_i32_187 = arith.constant 0 : i32
      %441 = arith.cmpi eq, %c16_i32_186, %c0_i32_187 : i32
      %c1_i32_188 = arith.constant 1 : i32
      %442 = arith.select %441, %c1_i32_188, %c16_i32_186 : i32
      %443 = arith.remsi %c11_i32, %442 : i32
      %c0_i32_189 = arith.constant 0 : i32
      %444 = arith.cmpi ne, %443, %c0_i32_189 : i32
      %c0_i32_190 = arith.constant 0 : i32
      %445 = arith.cmpi slt, %443, %c0_i32_190 : i32
      %c0_i32_191 = arith.constant 0 : i32
      %446 = arith.cmpi slt, %442, %c0_i32_191 : i32
      %447 = arith.xori %445, %446 : i1
      %448 = arith.andi %447, %444 : i1
      %449 = arith.addi %443, %442 : i32
      %450 = arith.select %448, %449, %443 : i32
      %451 = arith.index_cast %440 : i32 to index
      %c0_192 = arith.constant 0 : index
      %452 = vector.load %arg2[%451, %c0_192] : memref<512x128xf32, #tpu.memory_space<vmem>>, vector<1x128xf32>
      %453 = arith.index_cast %450 : i32 to index
      %c0_193 = arith.constant 0 : index
      %454 = vector.load %arg3[%453, %c0_193] : memref<16x128xf32, #tpu.memory_space<vmem>>, vector<1x128xf32>
      %455 = arith.addf %452, %454 : vector<1x128xf32>
      %456 = arith.index_cast %c11_i32 : i32 to index
      %c0_194 = arith.constant 0 : index
      %457 = vector.load %arg19[%456, %c0_194] : memref<32x128xf32, #tpu.memory_space<vmem>>, vector<1x128xf32>
      tpu.vector_store %arg19[%456, %c0_194], %455 {strides = array<i32>} : memref<32x128xf32, #tpu.memory_space<vmem>>, vector<1x128xf32>,
      %c12_i32 = arith.constant 12 : i32
      %458 = arith.index_cast %c12_i32 : i32 to index
      %459 = memref.load %arg1[%458] : memref<32xi32, #tpu.memory_space<smem>>
      %c16_i32_195 = arith.constant 16 : i32
      %c0_i32_196 = arith.constant 0 : i32
      %460 = arith.cmpi eq, %c16_i32_195, %c0_i32_196 : i32
      %c1_i32_197 = arith.constant 1 : i32
      %461 = arith.select %460, %c1_i32_197, %c16_i32_195 : i32
      %462 = arith.remsi %c12_i32, %461 : i32
      %c0_i32_198 = arith.constant 0 : i32
      %463 = arith.cmpi ne, %462, %c0_i32_198 : i32
      %c0_i32_199 = arith.constant 0 : i32
      %464 = arith.cmpi slt, %462, %c0_i32_199 : i32
      %c0_i32_200 = arith.constant 0 : i32
      %465 = arith.cmpi slt, %461, %c0_i32_200 : i32
      %466 = arith.xori %464, %465 : i1
      %467 = arith.andi %466, %463 : i1
      %468 = arith.addi %462, %461 : i32
      %469 = arith.select %467, %468, %462 : i32
      %470 = arith.index_cast %459 : i32 to index
      %c0_201 = arith.constant 0 : index
      %471 = vector.load %arg2[%470, %c0_201] : memref<512x128xf32, #tpu.memory_space<vmem>>, vector<1x128xf32>
      %472 = arith.index_cast %469 : i32 to index
      %c0_202 = arith.constant 0 : index
      %473 = vector.load %arg3[%472, %c0_202] : memref<16x128xf32, #tpu.memory_space<vmem>>, vector<1x128xf32>
      %474 = arith.addf %471, %473 : vector<1x128xf32>
      %475 = arith.index_cast %c12_i32 : i32 to index
      %c0_203 = arith.constant 0 : index
      %476 = vector.load %arg19[%475, %c0_203] : memref<32x128xf32, #tpu.memory_space<vmem>>, vector<1x128xf32>
      tpu.vector_store %arg19[%475, %c0_203], %474 {strides = array<i32>} : memref<32x128xf32, #tpu.memory_space<vmem>>, vector<1x128xf32>,
      %c13_i32 = arith.constant 13 : i32
      %477 = arith.index_cast %c13_i32 : i32 to index
      %478 = memref.load %arg1[%477] : memref<32xi32, #tpu.memory_space<smem>>
      %c16_i32_204 = arith.constant 16 : i32
      %c0_i32_205 = arith.constant 0 : i32
      %479 = arith.cmpi eq, %c16_i32_204, %c0_i32_205 : i32
      %c1_i32_206 = arith.constant 1 : i32
      %480 = arith.select %479, %c1_i32_206, %c16_i32_204 : i32
      %481 = arith.remsi %c13_i32, %480 : i32
      %c0_i32_207 = arith.constant 0 : i32
      %482 = arith.cmpi ne, %481, %c0_i32_207 : i32
      %c0_i32_208 = arith.constant 0 : i32
      %483 = arith.cmpi slt, %481, %c0_i32_208 : i32
      %c0_i32_209 = arith.constant 0 : i32
      %484 = arith.cmpi slt, %480, %c0_i32_209 : i32
      %485 = arith.xori %483, %484 : i1
      %486 = arith.andi %485, %482 : i1
      %487 = arith.addi %481, %480 : i32
      %488 = arith.select %486, %487, %481 : i32
      %489 = arith.index_cast %478 : i32 to index
      %c0_210 = arith.constant 0 : index
      %490 = vector.load %arg2[%489, %c0_210] : memref<512x128xf32, #tpu.memory_space<vmem>>, vector<1x128xf32>
      %491 = arith.index_cast %488 : i32 to index
      %c0_211 = arith.constant 0 : index
      %492 = vector.load %arg3[%491, %c0_211] : memref<16x128xf32, #tpu.memory_space<vmem>>, vector<1x128xf32>
      %493 = arith.addf %490, %492 : vector<1x128xf32>
      %494 = arith.index_cast %c13_i32 : i32 to index
      %c0_212 = arith.constant 0 : index
      %495 = vector.load %arg19[%494, %c0_212] : memref<32x128xf32, #tpu.memory_space<vmem>>, vector<1x128xf32>
      tpu.vector_store %arg19[%494, %c0_212], %493 {strides = array<i32>} : memref<32x128xf32, #tpu.memory_space<vmem>>, vector<1x128xf32>,
      %c14_i32 = arith.constant 14 : i32
      %496 = arith.index_cast %c14_i32 : i32 to index
      %497 = memref.load %arg1[%496] : memref<32xi32, #tpu.memory_space<smem>>
      %c16_i32_213 = arith.constant 16 : i32
      %c0_i32_214 = arith.constant 0 : i32
      %498 = arith.cmpi eq, %c16_i32_213, %c0_i32_214 : i32
      %c1_i32_215 = arith.constant 1 : i32
      %499 = arith.select %498, %c1_i32_215, %c16_i32_213 : i32
      %500 = arith.remsi %c14_i32, %499 : i32
      %c0_i32_216 = arith.constant 0 : i32
      %501 = arith.cmpi ne, %500, %c0_i32_216 : i32
      %c0_i32_217 = arith.constant 0 : i32
      %502 = arith.cmpi slt, %500, %c0_i32_217 : i32
      %c0_i32_218 = arith.constant 0 : i32
      %503 = arith.cmpi slt, %499, %c0_i32_218 : i32
      %504 = arith.xori %502, %503 : i1
      %505 = arith.andi %504, %501 : i1
      %506 = arith.addi %500, %499 : i32
      %507 = arith.select %505, %506, %500 : i32
      %508 = arith.index_cast %497 : i32 to index
      %c0_219 = arith.constant 0 : index
      %509 = vector.load %arg2[%508, %c0_219] : memref<512x128xf32, #tpu.memory_space<vmem>>, vector<1x128xf32>
      %510 = arith.index_cast %507 : i32 to index
      %c0_220 = arith.constant 0 : index
      %511 = vector.load %arg3[%510, %c0_220] : memref<16x128xf32, #tpu.memory_space<vmem>>, vector<1x128xf32>
      %512 = arith.addf %509, %511 : vector<1x128xf32>
      %513 = arith.index_cast %c14_i32 : i32 to index
      %c0_221 = arith.constant 0 : index
      %514 = vector.load %arg19[%513, %c0_221] : memref<32x128xf32, #tpu.memory_space<vmem>>, vector<1x128xf32>
      tpu.vector_store %arg19[%513, %c0_221], %512 {strides = array<i32>} : memref<32x128xf32, #tpu.memory_space<vmem>>, vector<1x128xf32>,
      %c15_i32 = arith.constant 15 : i32
      %515 = arith.index_cast %c15_i32 : i32 to index
      %516 = memref.load %arg1[%515] : memref<32xi32, #tpu.memory_space<smem>>
      %c16_i32_222 = arith.constant 16 : i32
      %c0_i32_223 = arith.constant 0 : i32
      %517 = arith.cmpi eq, %c16_i32_222, %c0_i32_223 : i32
      %c1_i32_224 = arith.constant 1 : i32
      %518 = arith.select %517, %c1_i32_224, %c16_i32_222 : i32
      %519 = arith.remsi %c15_i32, %518 : i32
      %c0_i32_225 = arith.constant 0 : i32
      %520 = arith.cmpi ne, %519, %c0_i32_225 : i32
      %c0_i32_226 = arith.constant 0 : i32
      %521 = arith.cmpi slt, %519, %c0_i32_226 : i32
      %c0_i32_227 = arith.constant 0 : i32
      %522 = arith.cmpi slt, %518, %c0_i32_227 : i32
      %523 = arith.xori %521, %522 : i1
      %524 = arith.andi %523, %520 : i1
      %525 = arith.addi %519, %518 : i32
      %526 = arith.select %524, %525, %519 : i32
      %527 = arith.index_cast %516 : i32 to index
      %c0_228 = arith.constant 0 : index
      %528 = vector.load %arg2[%527, %c0_228] : memref<512x128xf32, #tpu.memory_space<vmem>>, vector<1x128xf32>
      %529 = arith.index_cast %526 : i32 to index
      %c0_229 = arith.constant 0 : index
      %530 = vector.load %arg3[%529, %c0_229] : memref<16x128xf32, #tpu.memory_space<vmem>>, vector<1x128xf32>
      %531 = arith.addf %528, %530 : vector<1x128xf32>
      %532 = arith.index_cast %c15_i32 : i32 to index
      %c0_230 = arith.constant 0 : index
      %533 = vector.load %arg19[%532, %c0_230] : memref<32x128xf32, #tpu.memory_space<vmem>>, vector<1x128xf32>
      tpu.vector_store %arg19[%532, %c0_230], %531 {strides = array<i32>} : memref<32x128xf32, #tpu.memory_space<vmem>>, vector<1x128xf32>,
      %c16_i32_231 = arith.constant 16 : i32
      %534 = arith.index_cast %c16_i32_231 : i32 to index
      %535 = memref.load %arg1[%534] : memref<32xi32, #tpu.memory_space<smem>>
      %c16_i32_232 = arith.constant 16 : i32
      %c0_i32_233 = arith.constant 0 : i32
      %536 = arith.cmpi eq, %c16_i32_232, %c0_i32_233 : i32
      %c1_i32_234 = arith.constant 1 : i32
      %537 = arith.select %536, %c1_i32_234, %c16_i32_232 : i32
      %538 = arith.remsi %c16_i32_231, %537 : i32
      %c0_i32_235 = arith.constant 0 : i32
      %539 = arith.cmpi ne, %538, %c0_i32_235 : i32
      %c0_i32_236 = arith.constant 0 : i32
      %540 = arith.cmpi slt, %538, %c0_i32_236 : i32
      %c0_i32_237 = arith.constant 0 : i32
      %541 = arith.cmpi slt, %537, %c0_i32_237 : i32
      %542 = arith.xori %540, %541 : i1
      %543 = arith.andi %542, %539 : i1
      %544 = arith.addi %538, %537 : i32
      %545 = arith.select %543, %544, %538 : i32
      %546 = arith.index_cast %535 : i32 to index
      %c0_238 = arith.constant 0 : index
      %547 = vector.load %arg2[%546, %c0_238] : memref<512x128xf32, #tpu.memory_space<vmem>>, vector<1x128xf32>
      %548 = arith.index_cast %545 : i32 to index
      %c0_239 = arith.constant 0 : index
      %549 = vector.load %arg3[%548, %c0_239] : memref<16x128xf32, #tpu.memory_space<vmem>>, vector<1x128xf32>
      %550 = arith.addf %547, %549 : vector<1x128xf32>
      %551 = arith.index_cast %c16_i32_231 : i32 to index
      %c0_240 = arith.constant 0 : index
      %552 = vector.load %arg19[%551, %c0_240] : memref<32x128xf32, #tpu.memory_space<vmem>>, vector<1x128xf32>
      tpu.vector_store %arg19[%551, %c0_240], %550 {strides = array<i32>} : memref<32x128xf32, #tpu.memory_space<vmem>>, vector<1x128xf32>,
      %c17_i32 = arith.constant 17 : i32
      %553 = arith.index_cast %c17_i32 : i32 to index
      %554 = memref.load %arg1[%553] : memref<32xi32, #tpu.memory_space<smem>>
      %c16_i32_241 = arith.constant 16 : i32
      %c0_i32_242 = arith.constant 0 : i32
      %555 = arith.cmpi eq, %c16_i32_241, %c0_i32_242 : i32
      %c1_i32_243 = arith.constant 1 : i32
      %556 = arith.select %555, %c1_i32_243, %c16_i32_241 : i32
      %557 = arith.remsi %c17_i32, %556 : i32
      %c0_i32_244 = arith.constant 0 : i32
      %558 = arith.cmpi ne, %557, %c0_i32_244 : i32
      %c0_i32_245 = arith.constant 0 : i32
      %559 = arith.cmpi slt, %557, %c0_i32_245 : i32
      %c0_i32_246 = arith.constant 0 : i32
      %560 = arith.cmpi slt, %556, %c0_i32_246 : i32
      %561 = arith.xori %559, %560 : i1
      %562 = arith.andi %561, %558 : i1
      %563 = arith.addi %557, %556 : i32
      %564 = arith.select %562, %563, %557 : i32
      %565 = arith.index_cast %554 : i32 to index
      %c0_247 = arith.constant 0 : index
      %566 = vector.load %arg2[%565, %c0_247] : memref<512x128xf32, #tpu.memory_space<vmem>>, vector<1x128xf32>
      %567 = arith.index_cast %564 : i32 to index
      %c0_248 = arith.constant 0 : index
      %568 = vector.load %arg3[%567, %c0_248] : memref<16x128xf32, #tpu.memory_space<vmem>>, vector<1x128xf32>
      %569 = arith.addf %566, %568 : vector<1x128xf32>
      %570 = arith.index_cast %c17_i32 : i32 to index
      %c0_249 = arith.constant 0 : index
      %571 = vector.load %arg19[%570, %c0_249] : memref<32x128xf32, #tpu.memory_space<vmem>>, vector<1x128xf32>
      tpu.vector_store %arg19[%570, %c0_249], %569 {strides = array<i32>} : memref<32x128xf32, #tpu.memory_space<vmem>>, vector<1x128xf32>,
      %c18_i32 = arith.constant 18 : i32
      %572 = arith.index_cast %c18_i32 : i32 to index
      %573 = memref.load %arg1[%572] : memref<32xi32, #tpu.memory_space<smem>>
      %c16_i32_250 = arith.constant 16 : i32
      %c0_i32_251 = arith.constant 0 : i32
      %574 = arith.cmpi eq, %c16_i32_250, %c0_i32_251 : i32
      %c1_i32_252 = arith.constant 1 : i32
      %575 = arith.select %574, %c1_i32_252, %c16_i32_250 : i32
      %576 = arith.remsi %c18_i32, %575 : i32
      %c0_i32_253 = arith.constant 0 : i32
      %577 = arith.cmpi ne, %576, %c0_i32_253 : i32
      %c0_i32_254 = arith.constant 0 : i32
      %578 = arith.cmpi slt, %576, %c0_i32_254 : i32
      %c0_i32_255 = arith.constant 0 : i32
      %579 = arith.cmpi slt, %575, %c0_i32_255 : i32
      %580 = arith.xori %578, %579 : i1
      %581 = arith.andi %580, %577 : i1
      %582 = arith.addi %576, %575 : i32
      %583 = arith.select %581, %582, %576 : i32
      %584 = arith.index_cast %573 : i32 to index
      %c0_256 = arith.constant 0 : index
      %585 = vector.load %arg2[%584, %c0_256] : memref<512x128xf32, #tpu.memory_space<vmem>>, vector<1x128xf32>
      %586 = arith.index_cast %583 : i32 to index
      %c0_257 = arith.constant 0 : index
      %587 = vector.load %arg3[%586, %c0_257] : memref<16x128xf32, #tpu.memory_space<vmem>>, vector<1x128xf32>
      %588 = arith.addf %585, %587 : vector<1x128xf32>
      %589 = arith.index_cast %c18_i32 : i32 to index
      %c0_258 = arith.constant 0 : index
      %590 = vector.load %arg19[%589, %c0_258] : memref<32x128xf32, #tpu.memory_space<vmem>>, vector<1x128xf32>
      tpu.vector_store %arg19[%589, %c0_258], %588 {strides = array<i32>} : memref<32x128xf32, #tpu.memory_space<vmem>>, vector<1x128xf32>,
      %c19_i32 = arith.constant 19 : i32
      %591 = arith.index_cast %c19_i32 : i32 to index
      %592 = memref.load %arg1[%591] : memref<32xi32, #tpu.memory_space<smem>>
      %c16_i32_259 = arith.constant 16 : i32
      %c0_i32_260 = arith.constant 0 : i32
      %593 = arith.cmpi eq, %c16_i32_259, %c0_i32_260 : i32
      %c1_i32_261 = arith.constant 1 : i32
      %594 = arith.select %593, %c1_i32_261, %c16_i32_259 : i32
      %595 = arith.remsi %c19_i32, %594 : i32
      %c0_i32_262 = arith.constant 0 : i32
      %596 = arith.cmpi ne, %595, %c0_i32_262 : i32
      %c0_i32_263 = arith.constant 0 : i32
      %597 = arith.cmpi slt, %595, %c0_i32_263 : i32
      %c0_i32_264 = arith.constant 0 : i32
      %598 = arith.cmpi slt, %594, %c0_i32_264 : i32
      %599 = arith.xori %597, %598 : i1
      %600 = arith.andi %599, %596 : i1
      %601 = arith.addi %595, %594 : i32
      %602 = arith.select %600, %601, %595 : i32
      %603 = arith.index_cast %592 : i32 to index
      %c0_265 = arith.constant 0 : index
      %604 = vector.load %arg2[%603, %c0_265] : memref<512x128xf32, #tpu.memory_space<vmem>>, vector<1x128xf32>
      %605 = arith.index_cast %602 : i32 to index
      %c0_266 = arith.constant 0 : index
      %606 = vector.load %arg3[%605, %c0_266] : memref<16x128xf32, #tpu.memory_space<vmem>>, vector<1x128xf32>
      %607 = arith.addf %604, %606 : vector<1x128xf32>
      %608 = arith.index_cast %c19_i32 : i32 to index
      %c0_267 = arith.constant 0 : index
      %609 = vector.load %arg19[%608, %c0_267] : memref<32x128xf32, #tpu.memory_space<vmem>>, vector<1x128xf32>
      tpu.vector_store %arg19[%608, %c0_267], %607 {strides = array<i32>} : memref<32x128xf32, #tpu.memory_space<vmem>>, vector<1x128xf32>,
      %c20_i32 = arith.constant 20 : i32
      %610 = arith.index_cast %c20_i32 : i32 to index
      %611 = memref.load %arg1[%610] : memref<32xi32, #tpu.memory_space<smem>>
      %c16_i32_268 = arith.constant 16 : i32
      %c0_i32_269 = arith.constant 0 : i32
      %612 = arith.cmpi eq, %c16_i32_268, %c0_i32_269 : i32
      %c1_i32_270 = arith.constant 1 : i32
      %613 = arith.select %612, %c1_i32_270, %c16_i32_268 : i32
      %614 = arith.remsi %c20_i32, %613 : i32
      %c0_i32_271 = arith.constant 0 : i32
      %615 = arith.cmpi ne, %614, %c0_i32_271 : i32
      %c0_i32_272 = arith.constant 0 : i32
      %616 = arith.cmpi slt, %614, %c0_i32_272 : i32
      %c0_i32_273 = arith.constant 0 : i32
      %617 = arith.cmpi slt, %613, %c0_i32_273 : i32
      %618 = arith.xori %616, %617 : i1
      %619 = arith.andi %618, %615 : i1
      %620 = arith.addi %614, %613 : i32
      %621 = arith.select %619, %620, %614 : i32
      %622 = arith.index_cast %611 : i32 to index
      %c0_274 = arith.constant 0 : index
      %623 = vector.load %arg2[%622, %c0_274] : memref<512x128xf32, #tpu.memory_space<vmem>>, vector<1x128xf32>
      %624 = arith.index_cast %621 : i32 to index
      %c0_275 = arith.constant 0 : index
      %625 = vector.load %arg3[%624, %c0_275] : memref<16x128xf32, #tpu.memory_space<vmem>>, vector<1x128xf32>
      %626 = arith.addf %623, %625 : vector<1x128xf32>
      %627 = arith.index_cast %c20_i32 : i32 to index
      %c0_276 = arith.constant 0 : index
      %628 = vector.load %arg19[%627, %c0_276] : memref<32x128xf32, #tpu.memory_space<vmem>>, vector<1x128xf32>
      tpu.vector_store %arg19[%627, %c0_276], %626 {strides = array<i32>} : memref<32x128xf32, #tpu.memory_space<vmem>>, vector<1x128xf32>,
      %c21_i32 = arith.constant 21 : i32
      %629 = arith.index_cast %c21_i32 : i32 to index
      %630 = memref.load %arg1[%629] : memref<32xi32, #tpu.memory_space<smem>>
      %c16_i32_277 = arith.constant 16 : i32
      %c0_i32_278 = arith.constant 0 : i32
      %631 = arith.cmpi eq, %c16_i32_277, %c0_i32_278 : i32
      %c1_i32_279 = arith.constant 1 : i32
      %632 = arith.select %631, %c1_i32_279, %c16_i32_277 : i32
      %633 = arith.remsi %c21_i32, %632 : i32
      %c0_i32_280 = arith.constant 0 : i32
      %634 = arith.cmpi ne, %633, %c0_i32_280 : i32
      %c0_i32_281 = arith.constant 0 : i32
      %635 = arith.cmpi slt, %633, %c0_i32_281 : i32
      %c0_i32_282 = arith.constant 0 : i32
      %636 = arith.cmpi slt, %632, %c0_i32_282 : i32
      %637 = arith.xori %635, %636 : i1
      %638 = arith.andi %637, %634 : i1
      %639 = arith.addi %633, %632 : i32
      %640 = arith.select %638, %639, %633 : i32
      %641 = arith.index_cast %630 : i32 to index
      %c0_283 = arith.constant 0 : index
      %642 = vector.load %arg2[%641, %c0_283] : memref<512x128xf32, #tpu.memory_space<vmem>>, vector<1x128xf32>
      %643 = arith.index_cast %640 : i32 to index
      %c0_284 = arith.constant 0 : index
      %644 = vector.load %arg3[%643, %c0_284] : memref<16x128xf32, #tpu.memory_space<vmem>>, vector<1x128xf32>
      %645 = arith.addf %642, %644 : vector<1x128xf32>
      %646 = arith.index_cast %c21_i32 : i32 to index
      %c0_285 = arith.constant 0 : index
      %647 = vector.load %arg19[%646, %c0_285] : memref<32x128xf32, #tpu.memory_space<vmem>>, vector<1x128xf32>
      tpu.vector_store %arg19[%646, %c0_285], %645 {strides = array<i32>} : memref<32x128xf32, #tpu.memory_space<vmem>>, vector<1x128xf32>,
      %c22_i32 = arith.constant 22 : i32
      %648 = arith.index_cast %c22_i32 : i32 to index
      %649 = memref.load %arg1[%648] : memref<32xi32, #tpu.memory_space<smem>>
      %c16_i32_286 = arith.constant 16 : i32
      %c0_i32_287 = arith.constant 0 : i32
      %650 = arith.cmpi eq, %c16_i32_286, %c0_i32_287 : i32
      %c1_i32_288 = arith.constant 1 : i32
      %651 = arith.select %650, %c1_i32_288, %c16_i32_286 : i32
      %652 = arith.remsi %c22_i32, %651 : i32
      %c0_i32_289 = arith.constant 0 : i32
      %653 = arith.cmpi ne, %652, %c0_i32_289 : i32
      %c0_i32_290 = arith.constant 0 : i32
      %654 = arith.cmpi slt, %652, %c0_i32_290 : i32
      %c0_i32_291 = arith.constant 0 : i32
      %655 = arith.cmpi slt, %651, %c0_i32_291 : i32
      %656 = arith.xori %654, %655 : i1
      %657 = arith.andi %656, %653 : i1
      %658 = arith.addi %652, %651 : i32
      %659 = arith.select %657, %658, %652 : i32
      %660 = arith.index_cast %649 : i32 to index
      %c0_292 = arith.constant 0 : index
      %661 = vector.load %arg2[%660, %c0_292] : memref<512x128xf32, #tpu.memory_space<vmem>>, vector<1x128xf32>
      %662 = arith.index_cast %659 : i32 to index
      %c0_293 = arith.constant 0 : index
      %663 = vector.load %arg3[%662, %c0_293] : memref<16x128xf32, #tpu.memory_space<vmem>>, vector<1x128xf32>
      %664 = arith.addf %661, %663 : vector<1x128xf32>
      %665 = arith.index_cast %c22_i32 : i32 to index
      %c0_294 = arith.constant 0 : index
      %666 = vector.load %arg19[%665, %c0_294] : memref<32x128xf32, #tpu.memory_space<vmem>>, vector<1x128xf32>
      tpu.vector_store %arg19[%665, %c0_294], %664 {strides = array<i32>} : memref<32x128xf32, #tpu.memory_space<vmem>>, vector<1x128xf32>,
      %c23_i32 = arith.constant 23 : i32
      %667 = arith.index_cast %c23_i32 : i32 to index
      %668 = memref.load %arg1[%667] : memref<32xi32, #tpu.memory_space<smem>>
      %c16_i32_295 = arith.constant 16 : i32
      %c0_i32_296 = arith.constant 0 : i32
      %669 = arith.cmpi eq, %c16_i32_295, %c0_i32_296 : i32
      %c1_i32_297 = arith.constant 1 : i32
      %670 = arith.select %669, %c1_i32_297, %c16_i32_295 : i32
      %671 = arith.remsi %c23_i32, %670 : i32
      %c0_i32_298 = arith.constant 0 : i32
      %672 = arith.cmpi ne, %671, %c0_i32_298 : i32
      %c0_i32_299 = arith.constant 0 : i32
      %673 = arith.cmpi slt, %671, %c0_i32_299 : i32
      %c0_i32_300 = arith.constant 0 : i32
      %674 = arith.cmpi slt, %670, %c0_i32_300 : i32
      %675 = arith.xori %673, %674 : i1
      %676 = arith.andi %675, %672 : i1
      %677 = arith.addi %671, %670 : i32
      %678 = arith.select %676, %677, %671 : i32
      %679 = arith.index_cast %668 : i32 to index
      %c0_301 = arith.constant 0 : index
      %680 = vector.load %arg2[%679, %c0_301] : memref<512x128xf32, #tpu.memory_space<vmem>>, vector<1x128xf32>
      %681 = arith.index_cast %678 : i32 to index
      %c0_302 = arith.constant 0 : index
      %682 = vector.load %arg3[%681, %c0_302] : memref<16x128xf32, #tpu.memory_space<vmem>>, vector<1x128xf32>
      %683 = arith.addf %680, %682 : vector<1x128xf32>
      %684 = arith.index_cast %c23_i32 : i32 to index
      %c0_303 = arith.constant 0 : index
      %685 = vector.load %arg19[%684, %c0_303] : memref<32x128xf32, #tpu.memory_space<vmem>>, vector<1x128xf32>
      tpu.vector_store %arg19[%684, %c0_303], %683 {strides = array<i32>} : memref<32x128xf32, #tpu.memory_space<vmem>>, vector<1x128xf32>,
      %c24_i32 = arith.constant 24 : i32
      %686 = arith.index_cast %c24_i32 : i32 to index
      %687 = memref.load %arg1[%686] : memref<32xi32, #tpu.memory_space<smem>>
      %c16_i32_304 = arith.constant 16 : i32
      %c0_i32_305 = arith.constant 0 : i32
      %688 = arith.cmpi eq, %c16_i32_304, %c0_i32_305 : i32
      %c1_i32_306 = arith.constant 1 : i32
      %689 = arith.select %688, %c1_i32_306, %c16_i32_304 : i32
      %690 = arith.remsi %c24_i32, %689 : i32
      %c0_i32_307 = arith.constant 0 : i32
      %691 = arith.cmpi ne, %690, %c0_i32_307 : i32
      %c0_i32_308 = arith.constant 0 : i32
      %692 = arith.cmpi slt, %690, %c0_i32_308 : i32
      %c0_i32_309 = arith.constant 0 : i32
      %693 = arith.cmpi slt, %689, %c0_i32_309 : i32
      %694 = arith.xori %692, %693 : i1
      %695 = arith.andi %694, %691 : i1
      %696 = arith.addi %690, %689 : i32
      %697 = arith.select %695, %696, %690 : i32
      %698 = arith.index_cast %687 : i32 to index
      %c0_310 = arith.constant 0 : index
      %699 = vector.load %arg2[%698, %c0_310] : memref<512x128xf32, #tpu.memory_space<vmem>>, vector<1x128xf32>
      %700 = arith.index_cast %697 : i32 to index
      %c0_311 = arith.constant 0 : index
      %701 = vector.load %arg3[%700, %c0_311] : memref<16x128xf32, #tpu.memory_space<vmem>>, vector<1x128xf32>
      %702 = arith.addf %699, %701 : vector<1x128xf32>
      %703 = arith.index_cast %c24_i32 : i32 to index
      %c0_312 = arith.constant 0 : index
      %704 = vector.load %arg19[%703, %c0_312] : memref<32x128xf32, #tpu.memory_space<vmem>>, vector<1x128xf32>
      tpu.vector_store %arg19[%703, %c0_312], %702 {strides = array<i32>} : memref<32x128xf32, #tpu.memory_space<vmem>>, vector<1x128xf32>,
      %c25_i32 = arith.constant 25 : i32
      %705 = arith.index_cast %c25_i32 : i32 to index
      %706 = memref.load %arg1[%705] : memref<32xi32, #tpu.memory_space<smem>>
      %c16_i32_313 = arith.constant 16 : i32
      %c0_i32_314 = arith.constant 0 : i32
      %707 = arith.cmpi eq, %c16_i32_313, %c0_i32_314 : i32
      %c1_i32_315 = arith.constant 1 : i32
      %708 = arith.select %707, %c1_i32_315, %c16_i32_313 : i32
      %709 = arith.remsi %c25_i32, %708 : i32
      %c0_i32_316 = arith.constant 0 : i32
      %710 = arith.cmpi ne, %709, %c0_i32_316 : i32
      %c0_i32_317 = arith.constant 0 : i32
      %711 = arith.cmpi slt, %709, %c0_i32_317 : i32
      %c0_i32_318 = arith.constant 0 : i32
      %712 = arith.cmpi slt, %708, %c0_i32_318 : i32
      %713 = arith.xori %711, %712 : i1
      %714 = arith.andi %713, %710 : i1
      %715 = arith.addi %709, %708 : i32
      %716 = arith.select %714, %715, %709 : i32
      %717 = arith.index_cast %706 : i32 to index
      %c0_319 = arith.constant 0 : index
      %718 = vector.load %arg2[%717, %c0_319] : memref<512x128xf32, #tpu.memory_space<vmem>>, vector<1x128xf32>
      %719 = arith.index_cast %716 : i32 to index
      %c0_320 = arith.constant 0 : index
      %720 = vector.load %arg3[%719, %c0_320] : memref<16x128xf32, #tpu.memory_space<vmem>>, vector<1x128xf32>
      %721 = arith.addf %718, %720 : vector<1x128xf32>
      %722 = arith.index_cast %c25_i32 : i32 to index
      %c0_321 = arith.constant 0 : index
      %723 = vector.load %arg19[%722, %c0_321] : memref<32x128xf32, #tpu.memory_space<vmem>>, vector<1x128xf32>
      tpu.vector_store %arg19[%722, %c0_321], %721 {strides = array<i32>} : memref<32x128xf32, #tpu.memory_space<vmem>>, vector<1x128xf32>,
      %c26_i32 = arith.constant 26 : i32
      %724 = arith.index_cast %c26_i32 : i32 to index
      %725 = memref.load %arg1[%724] : memref<32xi32, #tpu.memory_space<smem>>
      %c16_i32_322 = arith.constant 16 : i32
      %c0_i32_323 = arith.constant 0 : i32
      %726 = arith.cmpi eq, %c16_i32_322, %c0_i32_323 : i32
      %c1_i32_324 = arith.constant 1 : i32
      %727 = arith.select %726, %c1_i32_324, %c16_i32_322 : i32
      %728 = arith.remsi %c26_i32, %727 : i32
      %c0_i32_325 = arith.constant 0 : i32
      %729 = arith.cmpi ne, %728, %c0_i32_325 : i32
      %c0_i32_326 = arith.constant 0 : i32
      %730 = arith.cmpi slt, %728, %c0_i32_326 : i32
      %c0_i32_327 = arith.constant 0 : i32
      %731 = arith.cmpi slt, %727, %c0_i32_327 : i32
      %732 = arith.xori %730, %731 : i1
      %733 = arith.andi %732, %729 : i1
      %734 = arith.addi %728, %727 : i32
      %735 = arith.select %733, %734, %728 : i32
      %736 = arith.index_cast %725 : i32 to index
      %c0_328 = arith.constant 0 : index
      %737 = vector.load %arg2[%736, %c0_328] : memref<512x128xf32, #tpu.memory_space<vmem>>, vector<1x128xf32>
      %738 = arith.index_cast %735 : i32 to index
      %c0_329 = arith.constant 0 : index
      %739 = vector.load %arg3[%738, %c0_329] : memref<16x128xf32, #tpu.memory_space<vmem>>, vector<1x128xf32>
      %740 = arith.addf %737, %739 : vector<1x128xf32>
      %741 = arith.index_cast %c26_i32 : i32 to index
      %c0_330 = arith.constant 0 : index
      %742 = vector.load %arg19[%741, %c0_330] : memref<32x128xf32, #tpu.memory_space<vmem>>, vector<1x128xf32>
      tpu.vector_store %arg19[%741, %c0_330], %740 {strides = array<i32>} : memref<32x128xf32, #tpu.memory_space<vmem>>, vector<1x128xf32>,
      %c27_i32 = arith.constant 27 : i32
      %743 = arith.index_cast %c27_i32 : i32 to index
      %744 = memref.load %arg1[%743] : memref<32xi32, #tpu.memory_space<smem>>
      %c16_i32_331 = arith.constant 16 : i32
      %c0_i32_332 = arith.constant 0 : i32
      %745 = arith.cmpi eq, %c16_i32_331, %c0_i32_332 : i32
      %c1_i32_333 = arith.constant 1 : i32
      %746 = arith.select %745, %c1_i32_333, %c16_i32_331 : i32
      %747 = arith.remsi %c27_i32, %746 : i32
      %c0_i32_334 = arith.constant 0 : i32
      %748 = arith.cmpi ne, %747, %c0_i32_334 : i32
      %c0_i32_335 = arith.constant 0 : i32
      %749 = arith.cmpi slt, %747, %c0_i32_335 : i32
      %c0_i32_336 = arith.constant 0 : i32
      %750 = arith.cmpi slt, %746, %c0_i32_336 : i32
      %751 = arith.xori %749, %750 : i1
      %752 = arith.andi %751, %748 : i1
      %753 = arith.addi %747, %746 : i32
      %754 = arith.select %752, %753, %747 : i32
      %755 = arith.index_cast %744 : i32 to index
      %c0_337 = arith.constant 0 : index
      %756 = vector.load %arg2[%755, %c0_337] : memref<512x128xf32, #tpu.memory_space<vmem>>, vector<1x128xf32>
      %757 = arith.index_cast %754 : i32 to index
      %c0_338 = arith.constant 0 : index
      %758 = vector.load %arg3[%757, %c0_338] : memref<16x128xf32, #tpu.memory_space<vmem>>, vector<1x128xf32>
      %759 = arith.addf %756, %758 : vector<1x128xf32>
      %760 = arith.index_cast %c27_i32 : i32 to index
      %c0_339 = arith.constant 0 : index
      %761 = vector.load %arg19[%760, %c0_339] : memref<32x128xf32, #tpu.memory_space<vmem>>, vector<1x128xf32>
      tpu.vector_store %arg19[%760, %c0_339], %759 {strides = array<i32>} : memref<32x128xf32, #tpu.memory_space<vmem>>, vector<1x128xf32>,
      %c28_i32 = arith.constant 28 : i32
      %762 = arith.index_cast %c28_i32 : i32 to index
      %763 = memref.load %arg1[%762] : memref<32xi32, #tpu.memory_space<smem>>
      %c16_i32_340 = arith.constant 16 : i32
      %c0_i32_341 = arith.constant 0 : i32
      %764 = arith.cmpi eq, %c16_i32_340, %c0_i32_341 : i32
      %c1_i32_342 = arith.constant 1 : i32
      %765 = arith.select %764, %c1_i32_342, %c16_i32_340 : i32
      %766 = arith.remsi %c28_i32, %765 : i32
      %c0_i32_343 = arith.constant 0 : i32
      %767 = arith.cmpi ne, %766, %c0_i32_343 : i32
      %c0_i32_344 = arith.constant 0 : i32
      %768 = arith.cmpi slt, %766, %c0_i32_344 : i32
      %c0_i32_345 = arith.constant 0 : i32
      %769 = arith.cmpi slt, %765, %c0_i32_345 : i32
      %770 = arith.xori %768, %769 : i1
      %771 = arith.andi %770, %767 : i1
      %772 = arith.addi %766, %765 : i32
      %773 = arith.select %771, %772, %766 : i32
      %774 = arith.index_cast %763 : i32 to index
      %c0_346 = arith.constant 0 : index
      %775 = vector.load %arg2[%774, %c0_346] : memref<512x128xf32, #tpu.memory_space<vmem>>, vector<1x128xf32>
      %776 = arith.index_cast %773 : i32 to index
      %c0_347 = arith.constant 0 : index
      %777 = vector.load %arg3[%776, %c0_347] : memref<16x128xf32, #tpu.memory_space<vmem>>, vector<1x128xf32>
      %778 = arith.addf %775, %777 : vector<1x128xf32>
      %779 = arith.index_cast %c28_i32 : i32 to index
      %c0_348 = arith.constant 0 : index
      %780 = vector.load %arg19[%779, %c0_348] : memref<32x128xf32, #tpu.memory_space<vmem>>, vector<1x128xf32>
      tpu.vector_store %arg19[%779, %c0_348], %778 {strides = array<i32>} : memref<32x128xf32, #tpu.memory_space<vmem>>, vector<1x128xf32>,
      %c29_i32 = arith.constant 29 : i32
      %781 = arith.index_cast %c29_i32 : i32 to index
      %782 = memref.load %arg1[%781] : memref<32xi32, #tpu.memory_space<smem>>
      %c16_i32_349 = arith.constant 16 : i32
      %c0_i32_350 = arith.constant 0 : i32
      %783 = arith.cmpi eq, %c16_i32_349, %c0_i32_350 : i32
      %c1_i32_351 = arith.constant 1 : i32
      %784 = arith.select %783, %c1_i32_351, %c16_i32_349 : i32
      %785 = arith.remsi %c29_i32, %784 : i32
      %c0_i32_352 = arith.constant 0 : i32
      %786 = arith.cmpi ne, %785, %c0_i32_352 : i32
      %c0_i32_353 = arith.constant 0 : i32
      %787 = arith.cmpi slt, %785, %c0_i32_353 : i32
      %c0_i32_354 = arith.constant 0 : i32
      %788 = arith.cmpi slt, %784, %c0_i32_354 : i32
      %789 = arith.xori %787, %788 : i1
      %790 = arith.andi %789, %786 : i1
      %791 = arith.addi %785, %784 : i32
      %792 = arith.select %790, %791, %785 : i32
      %793 = arith.index_cast %782 : i32 to index
      %c0_355 = arith.constant 0 : index
      %794 = vector.load %arg2[%793, %c0_355] : memref<512x128xf32, #tpu.memory_space<vmem>>, vector<1x128xf32>
      %795 = arith.index_cast %792 : i32 to index
      %c0_356 = arith.constant 0 : index
      %796 = vector.load %arg3[%795, %c0_356] : memref<16x128xf32, #tpu.memory_space<vmem>>, vector<1x128xf32>
      %797 = arith.addf %794, %796 : vector<1x128xf32>
      %798 = arith.index_cast %c29_i32 : i32 to index
      %c0_357 = arith.constant 0 : index
      %799 = vector.load %arg19[%798, %c0_357] : memref<32x128xf32, #tpu.memory_space<vmem>>, vector<1x128xf32>
      tpu.vector_store %arg19[%798, %c0_357], %797 {strides = array<i32>} : memref<32x128xf32, #tpu.memory_space<vmem>>, vector<1x128xf32>,
      %c30_i32 = arith.constant 30 : i32
      %800 = arith.index_cast %c30_i32 : i32 to index
      %801 = memref.load %arg1[%800] : memref<32xi32, #tpu.memory_space<smem>>
      %c16_i32_358 = arith.constant 16 : i32
      %c0_i32_359 = arith.constant 0 : i32
      %802 = arith.cmpi eq, %c16_i32_358, %c0_i32_359 : i32
      %c1_i32_360 = arith.constant 1 : i32
      %803 = arith.select %802, %c1_i32_360, %c16_i32_358 : i32
      %804 = arith.remsi %c30_i32, %803 : i32
      %c0_i32_361 = arith.constant 0 : i32
      %805 = arith.cmpi ne, %804, %c0_i32_361 : i32
      %c0_i32_362 = arith.constant 0 : i32
      %806 = arith.cmpi slt, %804, %c0_i32_362 : i32
      %c0_i32_363 = arith.constant 0 : i32
      %807 = arith.cmpi slt, %803, %c0_i32_363 : i32
      %808 = arith.xori %806, %807 : i1
      %809 = arith.andi %808, %805 : i1
      %810 = arith.addi %804, %803 : i32
      %811 = arith.select %809, %810, %804 : i32
      %812 = arith.index_cast %801 : i32 to index
      %c0_364 = arith.constant 0 : index
      %813 = vector.load %arg2[%812, %c0_364] : memref<512x128xf32, #tpu.memory_space<vmem>>, vector<1x128xf32>
      %814 = arith.index_cast %811 : i32 to index
      %c0_365 = arith.constant 0 : index
      %815 = vector.load %arg3[%814, %c0_365] : memref<16x128xf32, #tpu.memory_space<vmem>>, vector<1x128xf32>
      %816 = arith.addf %813, %815 : vector<1x128xf32>
      %817 = arith.index_cast %c30_i32 : i32 to index
      %c0_366 = arith.constant 0 : index
      %818 = vector.load %arg19[%817, %c0_366] : memref<32x128xf32, #tpu.memory_space<vmem>>, vector<1x128xf32>
      tpu.vector_store %arg19[%817, %c0_366], %816 {strides = array<i32>} : memref<32x128xf32, #tpu.memory_space<vmem>>, vector<1x128xf32>,
      %c31_i32 = arith.constant 31 : i32
      %819 = arith.index_cast %c31_i32 : i32 to index
      %820 = memref.load %arg1[%819] : memref<32xi32, #tpu.memory_space<smem>>
      %c16_i32_367 = arith.constant 16 : i32
      %c0_i32_368 = arith.constant 0 : i32
      %821 = arith.cmpi eq, %c16_i32_367, %c0_i32_368 : i32
      %c1_i32_369 = arith.constant 1 : i32
      %822 = arith.select %821, %c1_i32_369, %c16_i32_367 : i32
      %823 = arith.remsi %c31_i32, %822 : i32
      %c0_i32_370 = arith.constant 0 : i32
      %824 = arith.cmpi ne, %823, %c0_i32_370 : i32
      %c0_i32_371 = arith.constant 0 : i32
      %825 = arith.cmpi slt, %823, %c0_i32_371 : i32
      %c0_i32_372 = arith.constant 0 : i32
      %826 = arith.cmpi slt, %822, %c0_i32_372 : i32
      %827 = arith.xori %825, %826 : i1
      %828 = arith.andi %827, %824 : i1
      %829 = arith.addi %823, %822 : i32
      %830 = arith.select %828, %829, %823 : i32
      %831 = arith.index_cast %820 : i32 to index
      %c0_373 = arith.constant 0 : index
      %832 = vector.load %arg2[%831, %c0_373] : memref<512x128xf32, #tpu.memory_space<vmem>>, vector<1x128xf32>
      %833 = arith.index_cast %830 : i32 to index
      %c0_374 = arith.constant 0 : index
      %834 = vector.load %arg3[%833, %c0_374] : memref<16x128xf32, #tpu.memory_space<vmem>>, vector<1x128xf32>
      %835 = arith.addf %832, %834 : vector<1x128xf32>
      %836 = arith.index_cast %c31_i32 : i32 to index
      %c0_375 = arith.constant 0 : index
      %837 = vector.load %arg19[%836, %c0_375] : memref<32x128xf32, #tpu.memory_space<vmem>>, vector<1x128xf32>
      tpu.vector_store %arg19[%836, %c0_375], %835 {strides = array<i32>} : memref<32x128xf32, #tpu.memory_space<vmem>>, vector<1x128xf32>,
      %c32_i32 = arith.constant 32 : i32
    } else {
    }
    %c0 = arith.constant 0 : index
    %c0_1 = arith.constant 0 : index
    %3 = vector.load %arg19[%c0, %c0_1] : memref<32x128xf32, #tpu.memory_space<vmem>>, vector<32x128xf32>
    %c0_2 = arith.constant 0 : index
    %c0_3 = arith.constant 0 : index
    %c0_4 = arith.constant 0 : index
    %4 = vector.load %arg4[%c0_2, %c0_3, %c0_4] : memref<1x1x128xf32, #tpu.memory_space<vmem>>, vector<1x1x128xf32>
    %5 = vector.shape_cast %4 : vector<1x1x128xf32> to vector<1x128xf32>
    %c0_5 = arith.constant 0 : index
    %c0_6 = arith.constant 0 : index
    %c0_7 = arith.constant 0 : index
    %6 = vector.load %arg5[%c0_5, %c0_6, %c0_7] : memref<1x1x128xf32, #tpu.memory_space<vmem>>, vector<1x1x128xf32>
    %7 = vector.shape_cast %6 : vector<1x1x128xf32> to vector<1x128xf32>
    %cst = arith.constant dense<0.000000e+00> : vector<32xf32>
    %8 = vector.multi_reduction <add>, %3, %cst [1] : vector<32x128xf32> to vector<32xf32>
    %9 = vector.shape_cast %8 : vector<32xf32> to vector<32x1xf32>
    %cst_8 = arith.constant 1.280000e+02 : f32
    %10 = vector.broadcast %cst_8 : f32 to vector<32x1xf32>
    %11 = arith.divf %9, %10 : vector<32x1xf32>
    %12 = vector.broadcast %11 : vector<32x1xf32> to vector<32x128xf32>
    %13 = arith.subf %3, %12 : vector<32x128xf32>
    %14 = arith.mulf %13, %13 : vector<32x128xf32>
    %cst_9 = arith.constant dense<0.000000e+00> : vector<32xf32>
    %15 = vector.multi_reduction <add>, %14, %cst_9 [1] : vector<32x128xf32> to vector<32xf32>
    %16 = vector.shape_cast %15 : vector<32xf32> to vector<32x1xf32>
    %cst_10 = arith.constant 1.280000e+02 : f32
    %17 = vector.broadcast %cst_10 : f32 to vector<32x1xf32>
    %18 = arith.divf %16, %17 : vector<32x1xf32>
    %19 = vector.broadcast %11 : vector<32x1xf32> to vector<32x128xf32>
    %20 = arith.subf %3, %19 : vector<32x128xf32>
    %cst_11 = arith.constant 9.99999974E-6 : f32
    %21 = vector.broadcast %cst_11 : f32 to vector<32x1xf32>
    %22 = arith.addf %18, %21 : vector<32x1xf32>
    %23 = math.rsqrt %22 : vector<32x1xf32>
    %24 = vector.broadcast %23 : vector<32x1xf32> to vector<32x128xf32>
    %25 = arith.mulf %20, %24 : vector<32x128xf32>
    %26 = vector.broadcast %5 : vector<1x128xf32> to vector<32x128xf32>
    %27 = arith.mulf %25, %26 : vector<32x128xf32>
    %28 = vector.broadcast %7 : vector<1x128xf32> to vector<32x128xf32>
    %29 = arith.addf %27, %28 : vector<32x128xf32>
    %30 = arith.truncf %29 : vector<32x128xf32> to vector<32x128xbf16>
    %c0_12 = arith.constant 0 : index
    %c0_13 = arith.constant 0 : index
    %c0_14 = arith.constant 0 : index
    %31 = vector.load %arg6[%c0_12, %c0_13, %c0_14] : memref<1x128x384xbf16, #tpu.memory_space<vmem>>, vector<1x128x384xbf16>
    %32 = vector.shape_cast %31 : vector<1x128x384xbf16> to vector<128x384xbf16>
    %cst_15 = arith.constant dense<0.000000e+00> : vector<32x384xf32>
    %33 = tpu.matmul %30, %32, %cst_15 {dimension_numbers = #tpu.dot_dimension_numbers<[1], [0], [0], [1], [0, 0, 1, 1], [], []>} : vector<32x128xbf16>, vector<128x384xbf16>, vector<32x384xf32> -> vector<32x384xf32>
    %c0_16 = arith.constant 0 : index
    %c0_17 = arith.constant 0 : index
    %c0_18 = arith.constant 0 : index
    %34 = vector.load %arg7[%c0_16, %c0_17, %c0_18] : memref<1x1x384xf32, #tpu.memory_space<vmem>>, vector<1x1x384xf32>
    %35 = vector.shape_cast %34 : vector<1x1x384xf32> to vector<1x384xf32>
    %36 = vector.broadcast %35 : vector<1x384xf32> to vector<32x384xf32>
    %37 = arith.addf %33, %36 : vector<32x384xf32>
    %38 = vector.extract_strided_slice %37 {offsets = [0, 0], sizes = [32, 128], strides = [1, 1]} : vector<32x384xf32> to vector<32x128xf32>
    %39 = vector.shape_cast %38 : vector<32x128xf32> to vector<2x16x128xf32>
    %40 = vector.extract_strided_slice %37 {offsets = [0, 128], sizes = [32, 128], strides = [1, 1]} : vector<32x384xf32> to vector<32x128xf32>
    %41 = vector.shape_cast %40 : vector<32x128xf32> to vector<2x16x128xf32>
    %42 = vector.extract_strided_slice %37 {offsets = [0, 256], sizes = [32, 128], strides = [1, 1]} : vector<32x384xf32> to vector<32x128xf32>
    %43 = vector.shape_cast %42 : vector<32x128xf32> to vector<2x16x128xf32>
    %c0_19 = arith.constant 0 : index
    %c0_20 = arith.constant 0 : index
    %44 = vector.load %arg20[%c0_19, %c0_20] : memref<16x16xf32, #tpu.memory_space<vmem>>, vector<16x16xf32>
    %45 = vector.extract_strided_slice %39 {offsets = [0, 0, 0], sizes = [2, 16, 32], strides = [1, 1, 1]} : vector<2x16x128xf32> to vector<2x16x32xf32>
    %46 = arith.truncf %45 : vector<2x16x32xf32> to vector<2x16x32xbf16>
    %47 = vector.extract_strided_slice %41 {offsets = [0, 0, 0], sizes = [2, 16, 32], strides = [1, 1, 1]} : vector<2x16x128xf32> to vector<2x16x32xf32>
    %48 = arith.truncf %47 : vector<2x16x32xf32> to vector<2x16x32xbf16>
    %49 = vector.extract_strided_slice %43 {offsets = [0, 0, 0], sizes = [2, 16, 32], strides = [1, 1, 1]} : vector<2x16x128xf32> to vector<2x16x32xf32>
    %50 = arith.truncf %49 : vector<2x16x32xf32> to vector<2x16x32xbf16>
    "tpu.trace_start"() <{level = 10 : i32, message = "bqd,bkd->bqk"}> : () -> ()
    %cst_21 = arith.constant dense<0.000000e+00> : vector<2x16x16xf32>
    %51 = tpu.matmul %46, %48, %cst_21 {dimension_numbers = #tpu.dot_dimension_numbers<[2], [2], [1], [1], [0, 0, 0, 1, 1, 1], [0], [0]>} : vector<2x16x32xbf16>, vector<2x16x32xbf16>, vector<2x16x16xf32> -> vector<2x16x16xf32>
    "tpu.trace_stop"() : () -> ()
    %cst_22 = arith.constant 0.176776692 : f32
    %52 = vector.broadcast %cst_22 : f32 to vector<2x16x16xf32>
    %53 = arith.mulf %51, %52 : vector<2x16x16xf32>
    %54 = vector.shape_cast %44 : vector<16x16xf32> to vector<1x16x16xf32>
    %55 = vector.broadcast %54 : vector<1x16x16xf32> to vector<2x16x16xf32>
    %56 = arith.addf %53, %55 : vector<2x16x16xf32>
    %cst_23 = arith.constant dense<0xFF800000> : vector<2x16xf32>
    %57 = vector.multi_reduction <maximumf>, %56, %cst_23 [2] : vector<2x16x16xf32> to vector<2x16xf32>
    %58 = vector.shape_cast %57 : vector<2x16xf32> to vector<2x16x1xf32>
    %59 = vector.broadcast %58 : vector<2x16x1xf32> to vector<2x16x16xf32>
    %60 = arith.subf %56, %59 : vector<2x16x16xf32>
    %61 = math.exp %60 : vector<2x16x16xf32>
    %cst_24 = arith.constant dense<0.000000e+00> : vector<2x16xf32>
    %62 = vector.multi_reduction <add>, %61, %cst_24 [2] : vector<2x16x16xf32> to vector<2x16xf32>
    %63 = vector.shape_cast %62 : vector<2x16xf32> to vector<2x16x1xf32>
    %64 = tpu.reciprocal %63 {approx = true} : vector<2x16x1xf32> -> vector<2x16x1xf32>
    %65 = arith.mulf %63, %64 : vector<2x16x1xf32>
    %cst_25 = arith.constant 2.000000e+00 : f32
    %66 = vector.broadcast %cst_25 : f32 to vector<2x16x1xf32>
    %67 = arith.subf %66, %65 : vector<2x16x1xf32>
    %68 = arith.mulf %64, %67 : vector<2x16x1xf32>
    %69 = vector.broadcast %68 : vector<2x16x1xf32> to vector<2x16x16xf32>
    %70 = arith.mulf %61, %69 : vector<2x16x16xf32>
    %71 = arith.truncf %70 : vector<2x16x16xf32> to vector<2x16x16xbf16>
    "tpu.trace_start"() <{level = 10 : i32, message = "bqk,bkd->bqd"}> : () -> ()
    %cst_26 = arith.constant dense<0.000000e+00> : vector<2x16x32xf32>
    %72 = tpu.matmul %71, %50, %cst_26 {dimension_numbers = #tpu.dot_dimension_numbers<[2], [1], [1], [2], [0, 0, 0, 1, 1, 2], [0], [0]>} : vector<2x16x16xbf16>, vector<2x16x32xbf16>, vector<2x16x32xf32> -> vector<2x16x32xf32>
    "tpu.trace_stop"() : () -> ()
    %73 = vector.extract_strided_slice %39 {offsets = [0, 0, 32], sizes = [2, 16, 32], strides = [1, 1, 1]} : vector<2x16x128xf32> to vector<2x16x32xf32>
    %74 = arith.truncf %73 : vector<2x16x32xf32> to vector<2x16x32xbf16>
    %75 = vector.extract_strided_slice %41 {offsets = [0, 0, 32], sizes = [2, 16, 32], strides = [1, 1, 1]} : vector<2x16x128xf32> to vector<2x16x32xf32>
    %76 = arith.truncf %75 : vector<2x16x32xf32> to vector<2x16x32xbf16>
    %77 = vector.extract_strided_slice %43 {offsets = [0, 0, 32], sizes = [2, 16, 32], strides = [1, 1, 1]} : vector<2x16x128xf32> to vector<2x16x32xf32>
    %78 = arith.truncf %77 : vector<2x16x32xf32> to vector<2x16x32xbf16>
    "tpu.trace_start"() <{level = 10 : i32, message = "bqd,bkd->bqk"}> : () -> ()
    %cst_27 = arith.constant dense<0.000000e+00> : vector<2x16x16xf32>
    %79 = tpu.matmul %74, %76, %cst_27 {dimension_numbers = #tpu.dot_dimension_numbers<[2], [2], [1], [1], [0, 0, 0, 1, 1, 1], [0], [0]>} : vector<2x16x32xbf16>, vector<2x16x32xbf16>, vector<2x16x16xf32> -> vector<2x16x16xf32>
    "tpu.trace_stop"() : () -> ()
    %cst_28 = arith.constant 0.176776692 : f32
    %80 = vector.broadcast %cst_28 : f32 to vector<2x16x16xf32>
    %81 = arith.mulf %79, %80 : vector<2x16x16xf32>
    %82 = vector.shape_cast %44 : vector<16x16xf32> to vector<1x16x16xf32>
    %83 = vector.broadcast %82 : vector<1x16x16xf32> to vector<2x16x16xf32>
    %84 = arith.addf %81, %83 : vector<2x16x16xf32>
    %cst_29 = arith.constant dense<0xFF800000> : vector<2x16xf32>
    %85 = vector.multi_reduction <maximumf>, %84, %cst_29 [2] : vector<2x16x16xf32> to vector<2x16xf32>
    %86 = vector.shape_cast %85 : vector<2x16xf32> to vector<2x16x1xf32>
    %87 = vector.broadcast %86 : vector<2x16x1xf32> to vector<2x16x16xf32>
    %88 = arith.subf %84, %87 : vector<2x16x16xf32>
    %89 = math.exp %88 : vector<2x16x16xf32>
    %cst_30 = arith.constant dense<0.000000e+00> : vector<2x16xf32>
    %90 = vector.multi_reduction <add>, %89, %cst_30 [2] : vector<2x16x16xf32> to vector<2x16xf32>
    %91 = vector.shape_cast %90 : vector<2x16xf32> to vector<2x16x1xf32>
    %92 = tpu.reciprocal %91 {approx = true} : vector<2x16x1xf32> -> vector<2x16x1xf32>
    %93 = arith.mulf %91, %92 : vector<2x16x1xf32>
    %cst_31 = arith.constant 2.000000e+00 : f32
    %94 = vector.broadcast %cst_31 : f32 to vector<2x16x1xf32>
    %95 = arith.subf %94, %93 : vector<2x16x1xf32>
    %96 = arith.mulf %92, %95 : vector<2x16x1xf32>
    %97 = vector.broadcast %96 : vector<2x16x1xf32> to vector<2x16x16xf32>
    %98 = arith.mulf %89, %97 : vector<2x16x16xf32>
    %99 = arith.truncf %98 : vector<2x16x16xf32> to vector<2x16x16xbf16>
    "tpu.trace_start"() <{level = 10 : i32, message = "bqk,bkd->bqd"}> : () -> ()
    %cst_32 = arith.constant dense<0.000000e+00> : vector<2x16x32xf32>
    %100 = tpu.matmul %99, %78, %cst_32 {dimension_numbers = #tpu.dot_dimension_numbers<[2], [1], [1], [2], [0, 0, 0, 1, 1, 2], [0], [0]>} : vector<2x16x16xbf16>, vector<2x16x32xbf16>, vector<2x16x32xf32> -> vector<2x16x32xf32>
    "tpu.trace_stop"() : () -> ()
    %101 = vector.extract_strided_slice %39 {offsets = [0, 0, 64], sizes = [2, 16, 32], strides = [1, 1, 1]} : vector<2x16x128xf32> to vector<2x16x32xf32>
    %102 = arith.truncf %101 : vector<2x16x32xf32> to vector<2x16x32xbf16>
    %103 = vector.extract_strided_slice %41 {offsets = [0, 0, 64], sizes = [2, 16, 32], strides = [1, 1, 1]} : vector<2x16x128xf32> to vector<2x16x32xf32>
    %104 = arith.truncf %103 : vector<2x16x32xf32> to vector<2x16x32xbf16>
    %105 = vector.extract_strided_slice %43 {offsets = [0, 0, 64], sizes = [2, 16, 32], strides = [1, 1, 1]} : vector<2x16x128xf32> to vector<2x16x32xf32>
    %106 = arith.truncf %105 : vector<2x16x32xf32> to vector<2x16x32xbf16>
    "tpu.trace_start"() <{level = 10 : i32, message = "bqd,bkd->bqk"}> : () -> ()
    %cst_33 = arith.constant dense<0.000000e+00> : vector<2x16x16xf32>
    %107 = tpu.matmul %102, %104, %cst_33 {dimension_numbers = #tpu.dot_dimension_numbers<[2], [2], [1], [1], [0, 0, 0, 1, 1, 1], [0], [0]>} : vector<2x16x32xbf16>, vector<2x16x32xbf16>, vector<2x16x16xf32> -> vector<2x16x16xf32>
    "tpu.trace_stop"() : () -> ()
    %cst_34 = arith.constant 0.176776692 : f32
    %108 = vector.broadcast %cst_34 : f32 to vector<2x16x16xf32>
    %109 = arith.mulf %107, %108 : vector<2x16x16xf32>
    %110 = vector.shape_cast %44 : vector<16x16xf32> to vector<1x16x16xf32>
    %111 = vector.broadcast %110 : vector<1x16x16xf32> to vector<2x16x16xf32>
    %112 = arith.addf %109, %111 : vector<2x16x16xf32>
    %cst_35 = arith.constant dense<0xFF800000> : vector<2x16xf32>
    %113 = vector.multi_reduction <maximumf>, %112, %cst_35 [2] : vector<2x16x16xf32> to vector<2x16xf32>
    %114 = vector.shape_cast %113 : vector<2x16xf32> to vector<2x16x1xf32>
    %115 = vector.broadcast %114 : vector<2x16x1xf32> to vector<2x16x16xf32>
    %116 = arith.subf %112, %115 : vector<2x16x16xf32>
    %117 = math.exp %116 : vector<2x16x16xf32>
    %cst_36 = arith.constant dense<0.000000e+00> : vector<2x16xf32>
    %118 = vector.multi_reduction <add>, %117, %cst_36 [2] : vector<2x16x16xf32> to vector<2x16xf32>
    %119 = vector.shape_cast %118 : vector<2x16xf32> to vector<2x16x1xf32>
    %120 = tpu.reciprocal %119 {approx = true} : vector<2x16x1xf32> -> vector<2x16x1xf32>
    %121 = arith.mulf %119, %120 : vector<2x16x1xf32>
    %cst_37 = arith.constant 2.000000e+00 : f32
    %122 = vector.broadcast %cst_37 : f32 to vector<2x16x1xf32>
    %123 = arith.subf %122, %121 : vector<2x16x1xf32>
    %124 = arith.mulf %120, %123 : vector<2x16x1xf32>
    %125 = vector.broadcast %124 : vector<2x16x1xf32> to vector<2x16x16xf32>
    %126 = arith.mulf %117, %125 : vector<2x16x16xf32>
    %127 = arith.truncf %126 : vector<2x16x16xf32> to vector<2x16x16xbf16>
    "tpu.trace_start"() <{level = 10 : i32, message = "bqk,bkd->bqd"}> : () -> ()
    %cst_38 = arith.constant dense<0.000000e+00> : vector<2x16x32xf32>
    %128 = tpu.matmul %127, %106, %cst_38 {dimension_numbers = #tpu.dot_dimension_numbers<[2], [1], [1], [2], [0, 0, 0, 1, 1, 2], [0], [0]>} : vector<2x16x16xbf16>, vector<2x16x32xbf16>, vector<2x16x32xf32> -> vector<2x16x32xf32>
    "tpu.trace_stop"() : () -> ()
    %129 = vector.extract_strided_slice %39 {offsets = [0, 0, 96], sizes = [2, 16, 32], strides = [1, 1, 1]} : vector<2x16x128xf32> to vector<2x16x32xf32>
    %130 = arith.truncf %129 : vector<2x16x32xf32> to vector<2x16x32xbf16>
    %131 = vector.extract_strided_slice %41 {offsets = [0, 0, 96], sizes = [2, 16, 32], strides = [1, 1, 1]} : vector<2x16x128xf32> to vector<2x16x32xf32>
    %132 = arith.truncf %131 : vector<2x16x32xf32> to vector<2x16x32xbf16>
    %133 = vector.extract_strided_slice %43 {offsets = [0, 0, 96], sizes = [2, 16, 32], strides = [1, 1, 1]} : vector<2x16x128xf32> to vector<2x16x32xf32>
    %134 = arith.truncf %133 : vector<2x16x32xf32> to vector<2x16x32xbf16>
    "tpu.trace_start"() <{level = 10 : i32, message = "bqd,bkd->bqk"}> : () -> ()
    %cst_39 = arith.constant dense<0.000000e+00> : vector<2x16x16xf32>
    %135 = tpu.matmul %130, %132, %cst_39 {dimension_numbers = #tpu.dot_dimension_numbers<[2], [2], [1], [1], [0, 0, 0, 1, 1, 1], [0], [0]>} : vector<2x16x32xbf16>, vector<2x16x32xbf16>, vector<2x16x16xf32> -> vector<2x16x16xf32>
    "tpu.trace_stop"() : () -> ()
    %cst_40 = arith.constant 0.176776692 : f32
    %136 = vector.broadcast %cst_40 : f32 to vector<2x16x16xf32>
    %137 = arith.mulf %135, %136 : vector<2x16x16xf32>
    %138 = vector.shape_cast %44 : vector<16x16xf32> to vector<1x16x16xf32>
    %139 = vector.broadcast %138 : vector<1x16x16xf32> to vector<2x16x16xf32>
    %140 = arith.addf %137, %139 : vector<2x16x16xf32>
    %cst_41 = arith.constant dense<0xFF800000> : vector<2x16xf32>
    %141 = vector.multi_reduction <maximumf>, %140, %cst_41 [2] : vector<2x16x16xf32> to vector<2x16xf32>
    %142 = vector.shape_cast %141 : vector<2x16xf32> to vector<2x16x1xf32>
    %143 = vector.broadcast %142 : vector<2x16x1xf32> to vector<2x16x16xf32>
    %144 = arith.subf %140, %143 : vector<2x16x16xf32>
    %145 = math.exp %144 : vector<2x16x16xf32>
    %cst_42 = arith.constant dense<0.000000e+00> : vector<2x16xf32>
    %146 = vector.multi_reduction <add>, %145, %cst_42 [2] : vector<2x16x16xf32> to vector<2x16xf32>
    %147 = vector.shape_cast %146 : vector<2x16xf32> to vector<2x16x1xf32>
    %148 = tpu.reciprocal %147 {approx = true} : vector<2x16x1xf32> -> vector<2x16x1xf32>
    %149 = arith.mulf %147, %148 : vector<2x16x1xf32>
    %cst_43 = arith.constant 2.000000e+00 : f32
    %150 = vector.broadcast %cst_43 : f32 to vector<2x16x1xf32>
    %151 = arith.subf %150, %149 : vector<2x16x1xf32>
    %152 = arith.mulf %148, %151 : vector<2x16x1xf32>
    %153 = vector.broadcast %152 : vector<2x16x1xf32> to vector<2x16x16xf32>
    %154 = arith.mulf %145, %153 : vector<2x16x16xf32>
    %155 = arith.truncf %154 : vector<2x16x16xf32> to vector<2x16x16xbf16>
    "tpu.trace_start"() <{level = 10 : i32, message = "bqk,bkd->bqd"}> : () -> ()
    %cst_44 = arith.constant dense<0.000000e+00> : vector<2x16x32xf32>
    %156 = tpu.matmul %155, %134, %cst_44 {dimension_numbers = #tpu.dot_dimension_numbers<[2], [1], [1], [2], [0, 0, 0, 1, 1, 2], [0], [0]>} : vector<2x16x16xbf16>, vector<2x16x32xbf16>, vector<2x16x32xf32> -> vector<2x16x32xf32>
    "tpu.trace_stop"() : () -> ()
    %157 = tpu.concatenate %72, %100, %128, %156 in 2 : vector<2x16x32xf32>, vector<2x16x32xf32>, vector<2x16x32xf32>, vector<2x16x32xf32> -> vector<2x16x128xf32>
    %158 = vector.shape_cast %157 : vector<2x16x128xf32> to vector<32x128xf32>
    %159 = arith.truncf %158 : vector<32x128xf32> to vector<32x128xbf16>
    %c0_45 = arith.constant 0 : index
    %c0_46 = arith.constant 0 : index
    %c0_47 = arith.constant 0 : index
    %160 = vector.load %arg8[%c0_45, %c0_46, %c0_47] : memref<1x128x128xbf16, #tpu.memory_space<vmem>>, vector<1x128x128xbf16>
    %161 = vector.shape_cast %160 : vector<1x128x128xbf16> to vector<128x128xbf16>
    %cst_48 = arith.constant dense<0.000000e+00> : vector<32x128xf32>
    %162 = tpu.matmul %159, %161, %cst_48 {dimension_numbers = #tpu.dot_dimension_numbers<[1], [0], [0], [1], [0, 0, 1, 1], [], []>} : vector<32x128xbf16>, vector<128x128xbf16>, vector<32x128xf32> -> vector<32x128xf32>
    %c0_49 = arith.constant 0 : index
    %c0_50 = arith.constant 0 : index
    %c0_51 = arith.constant 0 : index
    %163 = vector.load %arg9[%c0_49, %c0_50, %c0_51] : memref<1x1x128xf32, #tpu.memory_space<vmem>>, vector<1x1x128xf32>
    %164 = vector.shape_cast %163 : vector<1x1x128xf32> to vector<1x128xf32>
    %165 = vector.broadcast %164 : vector<1x128xf32> to vector<32x128xf32>
    %166 = arith.addf %162, %165 : vector<32x128xf32>
    %167 = arith.addf %3, %166 : vector<32x128xf32>
    %c0_52 = arith.constant 0 : index
    %c0_53 = arith.constant 0 : index
    %c0_54 = arith.constant 0 : index
    %168 = vector.load %arg10[%c0_52, %c0_53, %c0_54] : memref<1x1x128xf32, #tpu.memory_space<vmem>>, vector<1x1x128xf32>
    %169 = vector.shape_cast %168 : vector<1x1x128xf32> to vector<1x128xf32>
    %c0_55 = arith.constant 0 : index
    %c0_56 = arith.constant 0 : index
    %c0_57 = arith.constant 0 : index
    %170 = vector.load %arg11[%c0_55, %c0_56, %c0_57] : memref<1x1x128xf32, #tpu.memory_space<vmem>>, vector<1x1x128xf32>
    %171 = vector.shape_cast %170 : vector<1x1x128xf32> to vector<1x128xf32>
    %cst_58 = arith.constant dense<0.000000e+00> : vector<32xf32>
    %172 = vector.multi_reduction <add>, %167, %cst_58 [1] : vector<32x128xf32> to vector<32xf32>
    %173 = vector.shape_cast %172 : vector<32xf32> to vector<32x1xf32>
    %cst_59 = arith.constant 1.280000e+02 : f32
    %174 = vector.broadcast %cst_59 : f32 to vector<32x1xf32>
    %175 = arith.divf %173, %174 : vector<32x1xf32>
    %176 = vector.broadcast %175 : vector<32x1xf32> to vector<32x128xf32>
    %177 = arith.subf %167, %176 : vector<32x128xf32>
    %178 = arith.mulf %177, %177 : vector<32x128xf32>
    %cst_60 = arith.constant dense<0.000000e+00> : vector<32xf32>
    %179 = vector.multi_reduction <add>, %178, %cst_60 [1] : vector<32x128xf32> to vector<32xf32>
    %180 = vector.shape_cast %179 : vector<32xf32> to vector<32x1xf32>
    %cst_61 = arith.constant 1.280000e+02 : f32
    %181 = vector.broadcast %cst_61 : f32 to vector<32x1xf32>
    %182 = arith.divf %180, %181 : vector<32x1xf32>
    %183 = vector.broadcast %175 : vector<32x1xf32> to vector<32x128xf32>
    %184 = arith.subf %167, %183 : vector<32x128xf32>
    %cst_62 = arith.constant 9.99999974E-6 : f32
    %185 = vector.broadcast %cst_62 : f32 to vector<32x1xf32>
    %186 = arith.addf %182, %185 : vector<32x1xf32>
    %187 = math.rsqrt %186 : vector<32x1xf32>
    %188 = vector.broadcast %187 : vector<32x1xf32> to vector<32x128xf32>
    %189 = arith.mulf %184, %188 : vector<32x128xf32>
    %190 = vector.broadcast %169 : vector<1x128xf32> to vector<32x128xf32>
    %191 = arith.mulf %189, %190 : vector<32x128xf32>
    %192 = vector.broadcast %171 : vector<1x128xf32> to vector<32x128xf32>
    %193 = arith.addf %191, %192 : vector<32x128xf32>
    %194 = arith.truncf %193 : vector<32x128xf32> to vector<32x128xbf16>
    %c0_63 = arith.constant 0 : index
    %c0_64 = arith.constant 0 : index
    %c0_65 = arith.constant 0 : index
    %195 = vector.load %arg12[%c0_63, %c0_64, %c0_65] : memref<1x128x512xbf16, #tpu.memory_space<vmem>>, vector<1x128x512xbf16>
    %196 = vector.shape_cast %195 : vector<1x128x512xbf16> to vector<128x512xbf16>
    %cst_66 = arith.constant dense<0.000000e+00> : vector<32x512xf32>
    %197 = tpu.matmul %194, %196, %cst_66 {dimension_numbers = #tpu.dot_dimension_numbers<[1], [0], [0], [1], [0, 0, 1, 1], [], []>} : vector<32x128xbf16>, vector<128x512xbf16>, vector<32x512xf32> -> vector<32x512xf32>
    %c0_67 = arith.constant 0 : index
    %c0_68 = arith.constant 0 : index
    %c0_69 = arith.constant 0 : index
    %198 = vector.load %arg13[%c0_67, %c0_68, %c0_69] : memref<1x1x512xf32, #tpu.memory_space<vmem>>, vector<1x1x512xf32>
    %199 = vector.shape_cast %198 : vector<1x1x512xf32> to vector<1x512xf32>
    %200 = vector.broadcast %199 : vector<1x512xf32> to vector<32x512xf32>
    %201 = arith.addf %197, %200 : vector<32x512xf32>
    %cst_70 = arith.constant 1.702000e+00 : f32
    %202 = vector.broadcast %cst_70 : f32 to vector<32x512xf32>
    %203 = arith.mulf %202, %201 : vector<32x512xf32>
    %204 = arith.negf %203 : vector<32x512xf32>
    %205 = math.exp %204 : vector<32x512xf32>
    %cst_71 = arith.constant 1.000000e+00 : f32
    %206 = vector.broadcast %cst_71 : f32 to vector<32x512xf32>
    %207 = arith.addf %206, %205 : vector<32x512xf32>
    %208 = arith.divf %206, %207 : vector<32x512xf32>
    %209 = arith.mulf %201, %208 : vector<32x512xf32>
    %210 = arith.truncf %209 : vector<32x512xf32> to vector<32x512xbf16>
    %c0_72 = arith.constant 0 : index
    %c0_73 = arith.constant 0 : index
    %c0_74 = arith.constant 0 : index
    %211 = vector.load %arg14[%c0_72, %c0_73, %c0_74] : memref<1x512x128xbf16, #tpu.memory_space<vmem>>, vector<1x512x128xbf16>
    %212 = vector.shape_cast %211 : vector<1x512x128xbf16> to vector<512x128xbf16>
    %cst_75 = arith.constant dense<0.000000e+00> : vector<32x128xf32>
    %213 = tpu.matmul %210, %212, %cst_75 {dimension_numbers = #tpu.dot_dimension_numbers<[1], [0], [0], [1], [0, 0, 1, 1], [], []>} : vector<32x512xbf16>, vector<512x128xbf16>, vector<32x128xf32> -> vector<32x128xf32>
    %c0_76 = arith.constant 0 : index
    %c0_77 = arith.constant 0 : index
    %c0_78 = arith.constant 0 : index
    %214 = vector.load %arg15[%c0_76, %c0_77, %c0_78] : memref<1x1x128xf32, #tpu.memory_space<vmem>>, vector<1x1x128xf32>
    %215 = vector.shape_cast %214 : vector<1x1x128xf32> to vector<1x128xf32>
    %216 = vector.broadcast %215 : vector<1x128xf32> to vector<32x128xf32>
    %217 = arith.addf %213, %216 : vector<32x128xf32>
    %218 = arith.addf %167, %217 : vector<32x128xf32>
    %c0_79 = arith.constant 0 : index
    %c0_80 = arith.constant 0 : index
    %219 = vector.load %arg19[%c0_79, %c0_80] : memref<32x128xf32, #tpu.memory_space<vmem>>, vector<32x128xf32>
    tpu.vector_store %arg19[%c0_79, %c0_80], %218 {strides = array<i32>} : memref<32x128xf32, #tpu.memory_space<vmem>>, vector<32x128xf32>,
    %c1_i32 = arith.constant 1 : i32
    %220 = arith.cmpi eq, %arg0, %c1_i32 : i32
    %221 = arith.extui %220 : i1 to i32
    %c0_i32_81 = arith.constant 0 : i32
    %222 = arith.cmpi ne, %221, %c0_i32_81 : i32
    scf.if %222 {
      %c0_82 = arith.constant 0 : index
      %c0_83 = arith.constant 0 : index
      %223 = vector.load %arg16[%c0_82, %c0_83] : memref<1x128xf32, #tpu.memory_space<vmem>>, vector<1x128xf32>
      %c0_84 = arith.constant 0 : index
      %c0_85 = arith.constant 0 : index
      %224 = vector.load %arg17[%c0_84, %c0_85] : memref<1x128xf32, #tpu.memory_space<vmem>>, vector<1x128xf32>
      %cst_86 = arith.constant dense<0.000000e+00> : vector<32xf32>
      %225 = vector.multi_reduction <add>, %218, %cst_86 [1] : vector<32x128xf32> to vector<32xf32>
      %226 = vector.shape_cast %225 : vector<32xf32> to vector<32x1xf32>
      %cst_87 = arith.constant 1.280000e+02 : f32
      %227 = vector.broadcast %cst_87 : f32 to vector<32x1xf32>
      %228 = arith.divf %226, %227 : vector<32x1xf32>
      %229 = vector.broadcast %228 : vector<32x1xf32> to vector<32x128xf32>
      %230 = arith.subf %218, %229 : vector<32x128xf32>
      %231 = arith.mulf %230, %230 : vector<32x128xf32>
      %cst_88 = arith.constant dense<0.000000e+00> : vector<32xf32>
      %232 = vector.multi_reduction <add>, %231, %cst_88 [1] : vector<32x128xf32> to vector<32xf32>
      %233 = vector.shape_cast %232 : vector<32xf32> to vector<32x1xf32>
      %cst_89 = arith.constant 1.280000e+02 : f32
      %234 = vector.broadcast %cst_89 : f32 to vector<32x1xf32>
      %235 = arith.divf %233, %234 : vector<32x1xf32>
      %236 = vector.broadcast %228 : vector<32x1xf32> to vector<32x128xf32>
      %237 = arith.subf %218, %236 : vector<32x128xf32>
      %cst_90 = arith.constant 9.99999974E-6 : f32
      %238 = vector.broadcast %cst_90 : f32 to vector<32x1xf32>
      %239 = arith.addf %235, %238 : vector<32x1xf32>
      %240 = math.rsqrt %239 : vector<32x1xf32>
      %241 = vector.broadcast %240 : vector<32x1xf32> to vector<32x128xf32>
      %242 = arith.mulf %237, %241 : vector<32x128xf32>
      %243 = vector.broadcast %223 : vector<1x128xf32> to vector<32x128xf32>
      %244 = arith.mulf %242, %243 : vector<32x128xf32>
      %245 = vector.broadcast %224 : vector<1x128xf32> to vector<32x128xf32>
      %246 = arith.addf %244, %245 : vector<32x128xf32>
      %c0_91 = arith.constant 0 : index
      %c0_92 = arith.constant 0 : index
      %247 = vector.load %arg18[%c0_91, %c0_92] : memref<32x128xf32, #tpu.memory_space<vmem>>, vector<32x128xf32>
      tpu.vector_store %arg18[%c0_91, %c0_92], %246 {strides = array<i32>} : memref<32x128xf32, #tpu.memory_space<vmem>>, vector<32x128xf32>,
    } else {
    }
    return
  }
  func.func @transform_0(%arg0: i32, %arg1: memref<32xi32, #tpu.memory_space<smem>>) -> (i32, i32) {
    %c0_i32 = arith.constant 0 : i32
    %c0_i32_0 = arith.constant 0 : i32
    %c0_i32_1 = arith.constant 0 : i32
    return %c0_i32, %c0_i32_0 : i32, i32
  }
  func.func @transform_1(%arg0: i32, %arg1: memref<32xi32, #tpu.memory_space<smem>>) -> (i32, i32) {
    %c0_i32 = arith.constant 0 : i32
    %c0_i32_0 = arith.constant 0 : i32
    %c0_i32_1 = arith.constant 0 : i32
    return %c0_i32, %c0_i32_0 : i32, i32
  }
  func.func @transform_2(%arg0: i32, %arg1: memref<32xi32, #tpu.memory_space<smem>>) -> (i32, i32, i32) {
    %c0_i32 = arith.constant 0 : i32
    %c0_i32_0 = arith.constant 0 : i32
    %c0_i32_1 = arith.constant 0 : i32
    return %arg0, %c0_i32, %c0_i32_0 : i32, i32, i32
  }
  func.func @transform_3(%arg0: i32, %arg1: memref<32xi32, #tpu.memory_space<smem>>) -> (i32, i32, i32) {
    %c0_i32 = arith.constant 0 : i32
    %c0_i32_0 = arith.constant 0 : i32
    %c0_i32_1 = arith.constant 0 : i32
    return %arg0, %c0_i32, %c0_i32_0 : i32, i32, i32
  }
  func.func @transform_4(%arg0: i32, %arg1: memref<32xi32, #tpu.memory_space<smem>>) -> (i32, i32, i32) {
    %c0_i32 = arith.constant 0 : i32
    %c0_i32_0 = arith.constant 0 : i32
    %c0_i32_1 = arith.constant 0 : i32
    return %arg0, %c0_i32, %c0_i32_0 : i32, i32, i32
  }
  func.func @transform_5(%arg0: i32, %arg1: memref<32xi32, #tpu.memory_space<smem>>) -> (i32, i32, i32) {
    %c0_i32 = arith.constant 0 : i32
    %c0_i32_0 = arith.constant 0 : i32
    %c0_i32_1 = arith.constant 0 : i32
    return %arg0, %c0_i32, %c0_i32_0 : i32, i32, i32
  }
  func.func @transform_6(%arg0: i32, %arg1: memref<32xi32, #tpu.memory_space<smem>>) -> (i32, i32, i32) {
    %c0_i32 = arith.constant 0 : i32
    %c0_i32_0 = arith.constant 0 : i32
    %c0_i32_1 = arith.constant 0 : i32
    return %arg0, %c0_i32, %c0_i32_0 : i32, i32, i32
  }
  func.func @transform_7(%arg0: i32, %arg1: memref<32xi32, #tpu.memory_space<smem>>) -> (i32, i32, i32) {
    %c0_i32 = arith.constant 0 : i32
    %c0_i32_0 = arith.constant 0 : i32
    %c0_i32_1 = arith.constant 0 : i32
    return %arg0, %c0_i32, %c0_i32_0 : i32, i32, i32
  }
  func.func @transform_8(%arg0: i32, %arg1: memref<32xi32, #tpu.memory_space<smem>>) -> (i32, i32, i32) {
    %c0_i32 = arith.constant 0 : i32
    %c0_i32_0 = arith.constant 0 : i32
    %c0_i32_1 = arith.constant 0 : i32
    return %arg0, %c0_i32, %c0_i32_0 : i32, i32, i32
  }
  func.func @transform_9(%arg0: i32, %arg1: memref<32xi32, #tpu.memory_space<smem>>) -> (i32, i32, i32) {
    %c0_i32 = arith.constant 0 : i32
    %c0_i32_0 = arith.constant 0 : i32
    %c0_i32_1 = arith.constant 0 : i32
    return %arg0, %c0_i32, %c0_i32_0 : i32, i32, i32
  }
  func.func @transform_10(%arg0: i32, %arg1: memref<32xi32, #tpu.memory_space<smem>>) -> (i32, i32, i32) {
    %c0_i32 = arith.constant 0 : i32
    %c0_i32_0 = arith.constant 0 : i32
    %c0_i32_1 = arith.constant 0 : i32
    return %arg0, %c0_i32, %c0_i32_0 : i32, i32, i32
  }
  func.func @transform_11(%arg0: i32, %arg1: memref<32xi32, #tpu.memory_space<smem>>) -> (i32, i32, i32) {
    %c0_i32 = arith.constant 0 : i32
    %c0_i32_0 = arith.constant 0 : i32
    %c0_i32_1 = arith.constant 0 : i32
    return %arg0, %c0_i32, %c0_i32_0 : i32, i32, i32
  }
  func.func @transform_12(%arg0: i32, %arg1: memref<32xi32, #tpu.memory_space<smem>>) -> (i32, i32, i32) {
    %c0_i32 = arith.constant 0 : i32
    %c0_i32_0 = arith.constant 0 : i32
    %c0_i32_1 = arith.constant 0 : i32
    return %arg0, %c0_i32, %c0_i32_0 : i32, i32, i32
  }
  func.func @transform_13(%arg0: i32, %arg1: memref<32xi32, #tpu.memory_space<smem>>) -> (i32, i32, i32) {
    %c0_i32 = arith.constant 0 : i32
    %c0_i32_0 = arith.constant 0 : i32
    %c0_i32_1 = arith.constant 0 : i32
    return %arg0, %c0_i32, %c0_i32_0 : i32, i32, i32
  }
  func.func @transform_14(%arg0: i32, %arg1: memref<32xi32, #tpu.memory_space<smem>>) -> (i32, i32) {
    %c0_i32 = arith.constant 0 : i32
    %c0_i32_0 = arith.constant 0 : i32
    %c0_i32_1 = arith.constant 0 : i32
    return %c0_i32, %c0_i32_0 : i32, i32
  }
  func.func @transform_15(%arg0: i32, %arg1: memref<32xi32, #tpu.memory_space<smem>>) -> (i32, i32) {
    %c0_i32 = arith.constant 0 : i32
    %c0_i32_0 = arith.constant 0 : i32
    %c0_i32_1 = arith.constant 0 : i32
    return %c0_i32, %c0_i32_0 : i32, i32
  }
  func.func @transform_16(%arg0: i32, %arg1: memref<32xi32, #tpu.memory_space<smem>>) -> (i32, i32) {
    %c0_i32 = arith.constant 0 : i32
    %c0_i32_0 = arith.constant 0 : i32
    %c0_i32_1 = arith.constant 0 : i32
    return %c0_i32, %c0_i32_0 : i32, i32
  }
}

</mosaic_0001>

<bundles_post_ra>
// kernel: tpu_custom_call.1
= control target key start
LH: loop header
LB: loop body
LE: loop exit
PB: predicated region body
PF: predicated region fallthrough
CT: control target
= control target key end

     0   :  { %s6185_s0 = inlined_call_operand.hbm [shape: s32[32], index: 0, kind: input, shape index: {}]   ;;  %s6186_s1 = inlined_call_operand.hbm [shape: f32[512,128], index: 1, kind: input, shape index: {}]   ;;  %s6187_s2 = inlined_call_operand.hbm [shape: f32[16,128], index: 2, kind: input, shape index: {}]   ;;  %s6188_s3 = inlined_call_operand.hbm [shape: f32[2,1,128], index: 3, kind: input, shape index: {}]   ;;  %s6189_s4 = inlined_call_operand.hbm [shape: f32[2,1,128], index: 4, kind: input, shape index: {}]   ;;  %s6190_s5 = inlined_call_operand.hbm [shape: bf16[2,128,384], index: 5, kind: input, shape index: {}]   ;;  %s6191_s6 = inlined_call_operand.vmem [shape: f32[2,1,384], index: 6, kind: input, shape index: {}]   ;;  %s6192_s7 = inlined_call_operand.hbm [shape: bf16[2,128,128], index: 7, kind: input, shape index: {}]   ;;  %s6193_s8 = inlined_call_operand.vmem [shape: f32[2,1,128], index: 8, kind: input, shape index: {}]   ;;  %s6194_s9 = inlined_call_operand.vmem [shape: f32[2,1,128], index: 9, kind: input, shape index: {}]   ;;  %s6195_s10 = inlined_call_operand.vmem [shape: f32[2,1,128], index: 10, kind: input, shape index: {}]   ;;  %s6196_s11 = inlined_call_operand.hbm [shape: bf16[2,128,512], index: 11, kind: input, shape index: {}]   ;;  %s6197_s12 = inlined_call_operand.vmem [shape: f32[2,1,512], index: 12, kind: input, shape index: {}]   ;;  %s6198_s13 = inlined_call_operand.hbm [shape: bf16[2,512,128], index: 13, kind: input, shape index: {}]   ;;  %s6199_s14 = inlined_call_operand.vmem [shape: f32[2,1,128], index: 14, kind: input, shape index: {}]   ;;  %s6200_s15 = inlined_call_operand.vmem [shape: f32[1,128], index: 15, kind: input, shape index: {}]   ;;  %s6201_s16 = inlined_call_operand.vmem [shape: f32[1,128], index: 16, kind: input, shape index: {}]   ;;  %s6202_s17 = inlined_call_operand.hbm [shape: f32[32,128], index: 17, kind: output, shape index: {}]  }
   0x1   :  { %6225 = sst [smem:[#allocation26_spill]] %s6185_s0 }
   0x2   :  { %6226 = sst [smem:[#allocation27_spill]] %s6186_s1  ;;  %s6241_s26 = sld [smem:[#allocation26_spill]] }
   0x3   :  { %6227 = sst [smem:[#allocation28_spill]] %s6187_s2 }
   0x4   :  { %6228 = sst [smem:[#allocation29_spill]] %s6188_s3 }
   0x5   :  { %6229 = sst [smem:[#allocation30_spill]] %s6189_s4 }
   0x6   :  { %6230 = sst [smem:[#allocation31_spill]] %s6190_s5 }
   0x7   :  { %6231 = sst [smem:[#allocation32_spill]] %s6191_s6 }
   0x8   :  { %6232 = sst [smem:[#allocation33_spill]] %s6192_s7  ;;  %s4717_s6 = scalar_lea.hbm %s6241_s26, 16 }
   0x9   :  { %6233 = sst [smem:[#allocation34_spill]] %s6194_s9  ;;  %p4718_p0 = scmp.ne.s32.totalorder %s6241_s26, %s4717_s6 }
   0xa   :  { %6234 = sst [smem:[#allocation35_spill]] %s6195_s10  ;;  %p4721_p1 = scmp.lt.u32.totalorder %s4717_s6, %s6241_s26 }
   0xb   :  { %6235 = sst [smem:[#allocation36_spill]] %s6196_s11 }
   0xc   :  { %6236 = sst [smem:[#allocation37_spill]] %s6197_s12  ;;  %p4723_p2 = pnand %p4721_p1, %p4718_p0 }
   0xd   :  { %6237 = sst [smem:[#allocation38_spill]] %s6199_s14 }
   0xe   :  { %6238 = sst [smem:[#allocation39_spill]] %s6200_s15 }
   0xf   :  { %6239 = sst [smem:[#allocation40_spill]] %s6201_s16 }
  0x10   :  { %6240 = sst [smem:[#allocation41_spill]] %s6202_s17 }
  0x11   :  { %4726 = shalt.err (!%p4723_p2)  }
  0x12   :  { %s5039_s30 = smov [#allocation5]  }
  0x13   :  { %23 = dma.hbm_to_smem %s6241_s26, 16, %s5039_s30, [#allocation4] }
  0x14   :  { %5005 = dma.done.wait [#allocation4], 16 }
  0x15   :  { %5006 = vsyncadd [#allocation4], 4294967280 }
  0x16   :  { %25 = sfence }
  0x17   :  { %26 = vsyncpa [#allocation7], 0 }
  0x18   :  { %27 = vsyncpa [#allocation10], 0 }
  0x19   :  { %28 = vsyncpa [#allocation8], 0  ;;  %s5168_s1 = smov 0   ;;  %s5170_s20 = smov 0  }
  0x1a   :  { %s5172_s21 = smov 0   ;;  %s5174_s6 = smov 0  }
  0x1b LB: > { %6242 = sst [smem:[#allocation23_spill]] %s5033_s21  ;;  %s5187_s22 = sadd.s32 4294967295, %s5037_s6   ;;  %s5037_s6 = sphi %s5174_s6, %s6290_s6   ;;  %s5033_s21 = sphi %s5172_s21, %s6292_s21   ;;  %s5029_s20 = sphi %s5170_s20, %s6294_s20   ;;  %s5025_s1 = sphi %s5168_s1, %s6293_s1  }
  0x1c   : > { %s5190_s23 = sadd.s32 1, %s5037_s6   ;;  %s83_s25 = sadd.s32 1, %s5033_s21 }
  0x1d   : > { %6243 = sst [smem:[#allocation24_spill]] %s5190_s23  ;;  %s80_s24 = ssub.s32 %s5037_s6, %s5190_s23 }
  0x1e   : > { %p81_p3 = scmp.eq.s32.totalorder %s80_s24, 0  ;;  %p90_p4 = scmp.ne.s32.totalorder %s5033_s21, %s5029_s20 }
  0x1f   : > { %p91_p5 = scmp.eq.s32.totalorder %s5037_s6, 0  ;;  %p96_p6 = scmp.ne.s32.totalorder %s5029_s20, %s5025_s1 }
  0x20   : > { %s5200_s26 = scalar_select %p81_p3, %s5033_s21, %s83_s25  }
  0x21   : > { %p5202_p7 = por %p91_p5, %p90_p4  ;;  %p6209_p8 = scmp.eq.s32.totalorder %s5187_s22, 0 }
  0x22   : > { %6244 = sst [smem:[#allocation25_spill]] %s5200_s26  ;;  %p3854_p9 = scmp.ge.s32.totalorder %s5037_s6, 1 }
  0x23   : > { %p456_p10 = scmp.lt.s32.totalorder %s5037_s6, 3  ;;  %p5211_p11 = por %p6209_p8, %p96_p6 }
  0x24   : > { %s5040_s0 = smov [#allocation6]   ;;  %p4353_p2 = scmp.lt.s32.totalorder %s5037_s6, 2 }
  0x25   : > { %s6246_s28 = scalar_select %p5211_p11, 1, 0 }
  0x26   : > { %p5216_p13 = pnand %p3854_p9, %p456_p10  ;;  %s468_s30 = sshll.u32 %s5040_s0, 4  ;;  %s469_s30 = int_to_ptr.vmem [resolvable:$true] %s468_s30 }
  0x27   : > { %s501_s19 = sand.u32 1, %s5037_s6   ;;  %s5231_s1 = sand.u32 1, %s5033_s21  }
  0x28   : > { %s6247_s29 = scalar_select %p5216_p13, 1, 0 }
  0x29   : > { %p4325_p0 = pneg %p5216_p13  ;;  %p5235_p3 = pnand %p4353_p2, %p5202_p7 }
  0x2a   : > { %s6250_s26 = sld [smem:[#allocation27_spill]] }
  0x2b   : > { %p5224_p1 = pnand %p4325_p0, %p6209_p8 }
  0x2c   : > { %s6249_s24 = scalar_select %p5235_p3, 1, 0 }
  0x2d   : > { %s6248_s18 = scalar_select %p5224_p1, 1, 0 }
  0x2e   : > { %p6213_p5 = pneg %p5224_p1 }
  0x30   : > { %s4727_s23 = scalar_lea.hbm %s6250_s26, 8192 }
  0x31   : > { %p4728_p4 = scmp.ne.s32.totalorder %s6250_s26, %s4727_s23  ;;  %p4734_p7 = scmp.lt.u32.totalorder %s4727_s23, %s6250_s26 }
  0x33   : > { %p4730_p6 = pnand %p6213_p5, %p4728_p4 }
  0x35   : > { %p4731_p9 = pneg %p4730_p6 }
  0x37   : > { %p4736_p10 = pnand %p4734_p7, %p4731_p9 }
  0x39   : > { %4739 = shalt.err (!%p4736_p10)
}
  0x3a   : > { %s4740_s15 = scalar_lea.vmem %s469_s30, 8192  ;;  %p4748_p8 = scmp.lt.s32.totalorder %s469_s30, %s469_s30 }
  0x3b   : > { %p4741_p0 = scmp.ne.s32.totalorder %s469_s30, %s4740_s15  ;;  %p4749_p11 = scmp.lt.s32.totalorder %s4740_s15, %s4740_s15 }
  0x3d   : > { %p4743_p2 = pnand %p4741_p0, %p6213_p5  ;;  %p4750_p13 = por %p4749_p11, %p4748_p8 }
  0x3f   : > { %p4744_p12 = pneg %p4743_p2 }
  0x41   : > { %p4751_p3 = pnand %p4750_p13, %p4744_p12 }
  0x43   : > { %4754 = shalt.err (!%p4751_p3)
}
  0x44   : > { %s6216_s16 = smov 128   ;;  %s6217_s17 = smov 8  }
  0x45   : > { %4328 = dma.hbm_to_vmem [thread:$0]  (!%p5224_p1), %s6250_s26, 8192, %s469_s30, [#allocation7], %s6216_s16, %s6216_s16, %s6217_s17  }
  0x46   : > { %s3858_s25 = sshll.u32 %s5037_s6, 4  ;;  %s6251_s3 = sld [smem:[#allocation29_spill]] }
  0x47   : > { %s504_s14 = scalar_lea.vmem [#allocation11], %s5231_s1  ;;  %s5275_s10 = scalar_lea.sflag [#allocation7], %s501_s19 }
  0x48   : > { %s511_s12 = sshll.u32 %s504_s14, 4  ;;  %p6252_p11 = scmp.ne.s32.totalorder %s6249_s24, 0  ;;  %s5273_s12 = int_to_ptr.vmem [resolvable:$true] %s511_s12 }
  0x4a   : > { %p5281_p12 = pneg %p6252_p11 }
  0x4c   : > { %s5270_s27 = scalar_lea.hbm %s6251_s3, %s3858_s25  ;;  %s4760_s15 = scalar_lea.hbm %s6251_s3, 32 }
  0x4d   : > { %s4755_s9 = scalar_lea.hbm %s5270_s27, 16  ;;  %p4761_p4 = scmp.lt.u32.totalorder %s5270_s27, %s6251_s3 }
  0x4e   : > { %p4756_p8 = scmp.ne.s32.totalorder %s5270_s27, %s4755_s9  ;;  %p4762_p6 = scmp.lt.u32.totalorder %s4760_s15, %s4755_s9 }
  0x4f   : > { %s6253_s30 = scalar_select %p5281_p12, 1, 0 }
  0x50   : > { %p4758_p13 = pnand %p5281_p12, %p4756_p8  ;;  %p4763_p9 = por %p4762_p6, %p4761_p4 }
  0x51   : > { %p4764_p7 = scmp.lt.u32.totalorder %s4755_s9, %s5270_s27 }
  0x52   : > { %p4759_p3 = pneg %p4758_p13 }
  0x53   : > { %p4765_p10 = por %p4764_p7, %p4763_p9 }
  0x55   : > { %p4766_p0 = pnand %p4765_p10, %p4759_p3 }
  0x57   : > { %4769 = shalt.err (!%p4766_p0)
}
  0x58   : > { %s4770_s19 = scalar_lea.vmem %s5273_s12, 16  ;;  %s5043_s21 = smov [#allocation11]  }
  0x59   : > { %p4771_p2 = scmp.ne.s32.totalorder %s5273_s12, %s4770_s19  ;;  %s4775_s23 = sshll.u32 %s5043_s21, 4  ;;  %s4776_s23 = int_to_ptr.vmem [resolvable:$false] %s4775_s23 }
  0x5a   : > { %s4777_s14 = scalar_lea.vmem %s4776_s23, 32  ;;  %p4778_p5 = scmp.lt.s32.totalorder %s5273_s12, %s4776_s23 }
  0x5b   : > { %p4773_p8 = pnand %p4771_p2, %p5281_p12  ;;  %p4779_p1 = scmp.lt.s32.totalorder %s4777_s14, %s4770_s19 }
  0x5d   : > { %p4774_p13 = pneg %p4773_p8  ;;  %p4780_p4 = por %p4779_p1, %p4778_p5 }
  0x5f   : > { %p4781_p6 = pnand %p4780_p4, %p4774_p13 }
  0x61   : > { %4784 = shalt.err (!%p4781_p6)
}
  0x62   : > { %4335 = dma.hbm_to_vmem [thread:$0]  (!%p6252_p11), %s5270_s27, 16, %s5273_s12, %s5275_s10  }
  0x63   : > { %s6254_s4 = sld [smem:[#allocation30_spill]]  ;;  %s521_s19 = scalar_lea.vmem [#allocation12], %s5231_s1 }
  0x64   : > { %s528_s21 = sshll.u32 %s521_s19, 4  ;;  %s4297_s23 = smul.u32 192, %s5231_s1  ;;  %s529_s21 = int_to_ptr.vmem [resolvable:$true] %s528_s21 }
  0x69   : > { %s5310_s0 = scalar_lea.hbm %s6254_s4, %s3858_s25  ;;  %s4790_s16 = scalar_lea.hbm %s6254_s4, 32 }
  0x6a   : > { %s4785_s14 = scalar_lea.hbm %s5310_s0, 16  ;;  %p4791_p9 = scmp.lt.u32.totalorder %s5310_s0, %s6254_s4 }
  0x6b   : > { %p4786_p1 = scmp.ne.s32.totalorder %s5310_s0, %s4785_s14  ;;  %p4792_p7 = scmp.lt.u32.totalorder %s4790_s16, %s4785_s14 }
  0x6c   : > { %p4794_p0 = scmp.lt.u32.totalorder %s4785_s14, %s5310_s0 }
  0x6d   : > { %p4788_p5 = pnand %p4786_p1, %p5281_p12  ;;  %p4793_p10 = por %p4792_p7, %p4791_p9 }
  0x6f   : > { %p4789_p3 = pneg %p4788_p5  ;;  %p4795_p2 = por %p4794_p0, %p4793_p10 }
  0x71   : > { %p4796_p8 = pnand %p4795_p2, %p4789_p3 }
  0x73   : > { %4799 = shalt.err (!%p4796_p8)
}
  0x74   : > { %s4800_s15 = scalar_lea.vmem %s529_s21, 16  ;;  %s5044_s19 = smov [#allocation12]  }
  0x75   : > { %p4801_p13 = scmp.ne.s32.totalorder %s529_s21, %s4800_s15  ;;  %s4805_s17 = sshll.u32 %s5044_s19, 4  ;;  %s4806_s17 = int_to_ptr.vmem [resolvable:$false] %s4805_s17 }
  0x76   : > { %s4807_s12 = scalar_lea.vmem %s4806_s17, 32  ;;  %p4808_p1 = scmp.lt.s32.totalorder %s529_s21, %s4806_s17 }
  0x77   : > { %p4803_p4 = pnand %p4801_p13, %p5281_p12  ;;  %p4809_p5 = scmp.lt.s32.totalorder %s4807_s12, %s4800_s15 }
  0x79   : > { %p4804_p6 = pneg %p4803_p4  ;;  %p4810_p11 = por %p4809_p5, %p4808_p1 }
  0x7b   : > { %p4811_p7 = pnand %p4810_p11, %p4804_p6 }
  0x7d   : > { %4814 = shalt.err (!%p4811_p7)
}
  0x7e   : > { %p6255_p9 = scmp.ne.s32.totalorder %s6249_s24, 0  ;;  %s4298_s16 = smul.u32 3072, %s5037_s6 }
  0x7f   : > { %s539_s14 = scalar_lea.vmem [#allocation13], %s4297_s23  ;;  %s6256_s5 = sld [smem:[#allocation31_spill]] }
  0x80   : > { %4338 = dma.hbm_to_vmem [thread:$0]  (!%p6255_p9), %s5310_s0, 16, %s529_s21, %s5275_s10  }
  0x81   : > { %s546_s27 = sshll.u32 %s539_s14, 4  ;;  %s3861_s17 = sshll.u32 %s5231_s1, 6  ;;  %s5338_s27 = int_to_ptr.vmem [resolvable:$true] %s546_s27 }
  0x85   : > { %s5336_s19 = scalar_lea.hbm %s6256_s5, %s4298_s16  ;;  %s4820_s23 = scalar_lea.hbm %s6256_s5, 6144 }
  0x86   : > { %s4815_s15 = scalar_lea.hbm %s5336_s19, 3072  ;;  %p4821_p0 = scmp.lt.u32.totalorder %s5336_s19, %s6256_s5 }
  0x87   : > { %p4816_p11 = scmp.ne.s32.totalorder %s5336_s19, %s4815_s15  ;;  %p4822_p2 = scmp.lt.u32.totalorder %s4820_s23, %s4815_s15 }
  0x88   : > { %p4824_p13 = scmp.lt.u32.totalorder %s4815_s15, %s5336_s19 }
  0x89   : > { %p4818_p3 = pnand %p4816_p11, %p5281_p12  ;;  %p4823_p8 = por %p4822_p2, %p4821_p0 }
  0x8b   : > { %p4819_p10 = pneg %p4818_p3  ;;  %p4825_p4 = por %p4824_p13, %p4823_p8 }
  0x8d   : > { %p4826_p6 = pnand %p4825_p4, %p4819_p10 }
  0x8f   : > { %4829 = shalt.err (!%p4826_p6)
}
  0x90   : > { %s4830_s16 = scalar_lea.vmem %s5338_s27, 3072  ;;  %s5045_s9 = smov [#allocation13]  }
  0x91   : > { %p4831_p1 = scmp.ne.s32.totalorder %s5338_s27, %s4830_s16  ;;  %s4835_s25 = sshll.u32 %s5045_s9, 4  ;;  %s4836_s25 = int_to_ptr.vmem [resolvable:$false] %s4835_s25 }
  0x92   : > { %s4837_s0 = scalar_lea.vmem %s4836_s25, 6144  ;;  %p4838_p11 = scmp.lt.s32.totalorder %s5338_s27, %s4836_s25 }
  0x93   : > { %p4833_p5 = pnand %p4831_p1, %p5281_p12  ;;  %p4839_p3 = scmp.lt.s32.totalorder %s4837_s0, %s4830_s16 }
  0x95   : > { %p4834_p7 = pneg %p4833_p5  ;;  %p4840_p0 = por %p4839_p3, %p4838_p11 }
  0x97   : > { %p4841_p2 = pnand %p4840_p0, %p4834_p7 }
  0x99   : > { %4844 = shalt.err (!%p4841_p2)
}
  0x9a   : > { %s5046_s15 = smov 192   ;;  %s5047_s21 = smov 12  }
  0x9b   : > { %4341 = dma.hbm_to_vmem [thread:$0]  (!%p6255_p9), %s5336_s19, 3072, %s5338_s27, %s5275_s10, %s5046_s15, %s5046_s15, %s5047_s21  }
  0x9c   : > { %s4050_s23 = sshll.u32 %s5037_s6, 10  ;;  %s6257_s7 = sld [smem:[#allocation33_spill]] }
  0x9d   : > { %s567_s9 = scalar_lea.vmem [#allocation14], %s3861_s17  ;;  %s6221_s0 = sshll.u32 %s5231_s1, 8 }
  0x9e   : > { %s574_s25 = sshll.u32 %s567_s9, 4  ;;  %s5371_s25 = int_to_ptr.vmem [resolvable:$true] %s574_s25 }
  0xa2   : > { %s5367_s16 = scalar_lea.hbm %s6257_s7, %s4050_s23  ;;  %s4850_s15 = scalar_lea.hbm %s6257_s7, 2048 }
  0xa3   : > { %s4845_s3 = scalar_lea.hbm %s5367_s16, 1024  ;;  %p4851_p4 = scmp.lt.u32.totalorder %s5367_s16, %s6257_s7 }
  0xa4   : > { %p4846_p10 = scmp.ne.s32.totalorder %s5367_s16, %s4845_s3  ;;  %p4852_p6 = scmp.lt.u32.totalorder %s4850_s15, %s4845_s3 }
  0xa5   : > { %p4854_p5 = scmp.lt.u32.totalorder %s4845_s3, %s5367_s16 }
  0xa6   : > { %p4848_p8 = pnand %p4846_p10, %p5281_p12  ;;  %p4853_p1 = por %p4852_p6, %p4851_p4 }
  0xa8   : > { %p4849_p13 = pneg %p4848_p8  ;;  %p4855_p7 = por %p4854_p5, %p4853_p1 }
  0xaa   : > { %p4856_p11 = pnand %p4855_p7, %p4849_p13 }
  0xac   : > { %4859 = shalt.err (!%p4856_p11)
}
  0xad   : > { %s4860_s17 = scalar_lea.vmem %s5371_s25, 1024  ;;  %s5048_s12 = smov [#allocation14]  }
  0xae   : > { %p4861_p3 = scmp.ne.s32.totalorder %s5371_s25, %s4860_s17  ;;  %s4865_s14 = sshll.u32 %s5048_s12, 4  ;;  %s4866_s14 = int_to_ptr.vmem [resolvable:$false] %s4865_s14 }
  0xaf   : > { %s4867_s9 = scalar_lea.vmem %s4866_s14, 2048  ;;  %p4868_p10 = scmp.lt.s32.totalorder %s5371_s25, %s4866_s14 }
  0xb0   : > { %p4863_p0 = pnand %p4861_p3, %p5281_p12  ;;  %p4869_p8 = scmp.lt.s32.totalorder %s4867_s9, %s4860_s17 }
  0xb2   : > { %p4864_p2 = pneg %p4863_p0  ;;  %p4870_p4 = por %p4869_p8, %p4868_p10 }
  0xb4   : > { %p4871_p6 = pnand %p4870_p4, %p4864_p2 }
  0xb6   : > { %4874 = shalt.err (!%p4871_p6)
}
  0xb7   : > { %s6219_s3 = smov 64   ;;  %s6220_s27 = smov 4  }
  0xb8   : > { %4344 = dma.hbm_to_vmem [thread:$0]  (!%p6255_p9), %s5367_s16, 1024, %s5371_s25, %s5275_s10, %s6219_s3, %s6219_s3, %s6220_s27  }
  0xb9   : > { %s4051_s19 = sshll.u32 %s5037_s6, 12  ;;  %s6258_s11 = sld [smem:[#allocation36_spill]] }
  0xba   : > { %s606_s17 = scalar_lea.vmem [#allocation15], %s6221_s0 }
  0xbb   : > { %s613_s12 = sshll.u32 %s606_s17, 4  ;;  %s5409_s12 = int_to_ptr.vmem [resolvable:$true] %s613_s12 }
  0xbf   : > { %s5405_s23 = scalar_lea.hbm %s6258_s11, %s4051_s19  ;;  %s4880_s9 = scalar_lea.hbm %s6258_s11, 8192 }
  0xc0   : > { %s4875_s14 = scalar_lea.hbm %s5405_s23, 4096  ;;  %p4881_p7 = scmp.lt.u32.totalorder %s5405_s23, %s6258_s11 }
  0xc1   : > { %p4876_p13 = scmp.ne.s32.totalorder %s5405_s23, %s4875_s14  ;;  %p4882_p11 = scmp.lt.u32.totalorder %s4880_s9, %s4875_s14 }
  0xc2   : > { %p4884_p0 = scmp.lt.u32.totalorder %s4875_s14, %s5405_s23 }
  0xc3   : > { %p4878_p1 = pnand %p4876_p13, %p5281_p12  ;;  %p4883_p3 = por %p4882_p11, %p4881_p7 }
  0xc5   : > { %p4879_p5 = pneg %p4878_p1  ;;  %p4885_p2 = por %p4884_p0, %p4883_p3 }
  0xc7   : > { %p4886_p10 = pnand %p4885_p2, %p4879_p5 }
  0xc9   : > { %4889 = shalt.err (!%p4886_p10)
}
  0xca   : > { %s4890_s17 = scalar_lea.vmem %s5409_s12, 4096  ;;  %s5051_s16 = smov [#allocation15]  }
  0xcb   : > { %p4891_p8 = scmp.ne.s32.totalorder %s5409_s12, %s4890_s17  ;;  %s4895_s25 = sshll.u32 %s5051_s16, 4  ;;  %s4896_s25 = int_to_ptr.vmem [resolvable:$false] %s4895_s25 }
  0xcc   : > { %s4897_s15 = scalar_lea.vmem %s4896_s25, 8192  ;;  %p4898_p13 = scmp.lt.s32.totalorder %s5409_s12, %s4896_s25 }
  0xcd   : > { %p4893_p4 = pnand %p4891_p8, %p5281_p12  ;;  %p4899_p1 = scmp.lt.s32.totalorder %s4897_s15, %s4890_s17 }
  0xcf   : > { %p4894_p6 = pneg %p4893_p4  ;;  %p4900_p7 = por %p4899_p1, %p4898_p13 }
  0xd1   : > { %p4901_p11 = pnand %p4900_p7, %p4894_p6 }
  0xd3   : > { %4904 = shalt.err (!%p4901_p11)
}
  0xd4   : > { %s5052_s14 = smov 256   ;;  %s5053_s9 = smov 16  }
  0xd5   : > { %4347 = dma.hbm_to_vmem [thread:$0]  (!%p6255_p9), %s5405_s23, 4096, %s5409_s12, %s5275_s10, %s5052_s14, %s5052_s14, %s5053_s9  }
  0xd6   : > { %s5054_s21 = smov [#allocation9]   ;;  %s5438_s17 = scalar_lea.hbm %s6198_s13, %s4051_s19 }
  0xd7   : > { %s481_s3 = sshll.u32 %s5054_s21, 4  ;;  %s6259_s2 = sld [smem:[#allocation28_spill]]  ;;  %s482_s3 = int_to_ptr.vmem [resolvable:$true] %s481_s3 }
  0xd8   : > { %p6260_p3 = scmp.ne.s32.totalorder %s6248_s18, 0 }
  0xda   : > { %p6261_p0 = pneg %p6260_p3 }
  0xdd   : > { %s4905_s0 = scalar_lea.hbm %s6259_s2, 256 }
  0xde   : > { %p4906_p5 = scmp.ne.s32.totalorder %s6259_s2, %s4905_s0  ;;  %p4912_p8 = scmp.lt.u32.totalorder %s4905_s0, %s6259_s2 }
  0xe0   : > { %p4908_p2 = pnand %p4906_p5, %p6261_p0 }
  0xe2   : > { %p4909_p10 = pneg %p4908_p2 }
  0xe4   : > { %p4914_p4 = pnand %p4912_p8, %p4909_p10 }
  0xe6   : > { %4917 = shalt.err (!%p4914_p4)
}
  0xe7   : > { %s4918_s6 = scalar_lea.vmem %s482_s3, 256  ;;  %p6262_p13 = pmov %p6261_p0 }
  0xe8   : > { %p4919_p6 = scmp.ne.s32.totalorder %s482_s3, %s4918_s6  ;;  %p4926_p11 = scmp.lt.s32.totalorder %s482_s3, %s482_s3 }
  0xe9   : > { %p4927_p9 = scmp.lt.s32.totalorder %s4918_s6, %s4918_s6 }
  0xea   : > { %p4921_p1 = pnand %p4919_p6, %p6262_p13 }
  0xeb   : > { %p4928_p12 = por %p4927_p9, %p4926_p11 }
  0xec   : > { %p4922_p7 = pneg %p4921_p1 }
  0xee   : > { %p4929_p0 = pnand %p4928_p12, %p4922_p7 }
  0xf0   : > { %4932 = shalt.err (!%p4929_p0)
}
  0xf1   : > { %s6263_s4 = smov 8   ;;  %s6264_s5 = smov 128  }
  0xf2   : > { %4331 = dma.hbm_to_vmem [thread:$0]  (!%p6260_p3), %s6259_s2, 256, %s482_s3, [#allocation10], %s6264_s5, %s6264_s5, %s6263_s4  }
  0xf3   : > { %s6265_s19 = sshll.u32 %s5231_s1, 8  ;;  %s4933_s21 = scalar_lea.hbm %s5438_s17, 4096 }
  0xf4   : > { %s634_s14 = scalar_lea.vmem [#allocation16], %s6265_s19  ;;  %p4934_p12 = scmp.ne.s32.totalorder %s5438_s17, %s4933_s21 }
  0xf5   : > { %s641_s9 = sshll.u32 %s634_s14, 4  ;;  %p6266_p9 = scmp.ne.s32.totalorder %s6253_s30, 0  ;;  %s5465_s9 = int_to_ptr.vmem [resolvable:$true] %s641_s9 }
  0xf6   : > { %s4938_s25 = scalar_lea.hbm %s6198_s13, 8192  ;;  %p4939_p10 = scmp.lt.u32.totalorder %s5438_s17, %s6198_s13 }
  0xf7   : > { %p4936_p5 = pnand %p4934_p12, %p6266_p9  ;;  %p4940_p8 = scmp.lt.u32.totalorder %s4938_s25, %s4933_s21 }
  0xf8   : > { %p4942_p4 = scmp.lt.u32.totalorder %s4933_s21, %s5438_s17 }
  0xf9   : > { %p4937_p2 = pneg %p4936_p5  ;;  %p4941_p3 = por %p4940_p8, %p4939_p10 }
  0xfb   : > { %p4943_p6 = por %p4942_p4, %p4941_p3 }
  0xfd   : > { %p4944_p13 = pnand %p4943_p6, %p4937_p2 }
  0xff   : > { %4947 = shalt.err (!%p4944_p13)
}
 0x100   : > { %s4948_s1 = scalar_lea.vmem %s5465_s9, 4096  ;;  %s5055_s3 = smov [#allocation16]  }
 0x101   : > { %p4949_p1 = scmp.ne.s32.totalorder %s5465_s9, %s4948_s1  ;;  %s4953_s12 = sshll.u32 %s5055_s3, 4  ;;  %s4954_s12 = int_to_ptr.vmem [resolvable:$false] %s4953_s12 }
 0x102   : > { %s4955_s6 = scalar_lea.vmem %s4954_s12, 8192  ;;  %p4956_p0 = scmp.lt.s32.totalorder %s5465_s9, %s4954_s12 }
 0x103   : > { %p4951_p7 = pnand %p4949_p1, %p6266_p9  ;;  %p4957_p12 = scmp.lt.s32.totalorder %s4955_s6, %s4948_s1 }
 0x105   : > { %p4952_p11 = pneg %p4951_p7  ;;  %p4958_p5 = por %p4957_p12, %p4956_p0 }
 0x107   : > { %p4959_p10 = pnand %p4958_p5, %p4952_p11 }
 0x109   : > { %4962 = shalt.err (!%p4959_p10)
}
 0x10a   : > { %p6267_p2 = scmp.ne.s32.totalorder %s6249_s24, 0  ;;  %s6268_s4 = smov 4  }
 0x10b   : > { %s6269_s5 = smov 64   ;;  %p6270_p9 = scmp.ne.s32.totalorder %s6247_s29, 0 }
 0x10c   : > { %4350 = dma.hbm_to_vmem [thread:$0]  (!%p6267_p2), %s5438_s17, 4096, %s5465_s9, %s5275_s10, %s6269_s5, %s6269_s5, %s6268_s4  }
 0x10d   : > { %659 = sbr.rel (%p6270_p9) target bundleno = 4847 (0x12ef), region = 84  ;;  %p6271_p8 = scmp.eq.s32.totalorder (!%p6270_p9), %s5187_s22, 0 }
 0x114   : > { %5008 = dma.done.wait (%p6271_p8), [#allocation7], 8192   ;;  %p6272_p3 = pmov %p6271_p8 }
 0x116   : > { %5010 = vsyncadd (%p6272_p3), [#allocation7], 4294959104  ;;  %p6273_p4 = pmov %p6272_p3 }
 0x117   : > { %p6274_p6 = pmov %p6272_p3 }
 0x118   : > { %5012 = dma.done.wait (%p6273_p4), [#allocation10], 256  }
 0x119   : > { %5014 = vsyncadd (%p6274_p6), [#allocation10], 4294967040  ;;  %s669_s24 = sand.u32 1, %s5187_s22   ;;  %s5504_s10 = sand.u32 1, %s5029_s20  }
 0x11a   : > { %s670_s29 = scalar_lea.sflag [#allocation7], %s669_s24  ;;  %p6275_p13 = scmp.ne.s32.totalorder %s6246_s28, 0 }
 0x11c   : > { %5016 = dma.done.wait (%p6275_p13), %s670_s29, 12320  }
 0x11d   : > { %5018 = vsyncadd (%p6275_p13), %s670_s29, 4294954976  ;;  %s4299_s17 = smul.u32 192, %s5504_s10  ;;  %s3873_s0 = sshll.u32 %s5504_s10, 6 }
 0x11e   : > { %s3874_s27 = sshll.u32 %s5504_s10, 8  ;;  %p803_p1 = scmp.lt.s32.totalorder %s5187_s22, 1 }
 0x11f   : > { %s6276_s25 = sld [smem:[#allocation34_spill]]  ;;  %s6277_s3 = sld [smem:[#allocation35_spill]] }
 0x120   : > { %s5516_s19 = scalar_select %p803_p1, %s5187_s22, 1 }
 0x121   : > { %s6278_s5 = sld [smem:[#allocation32_spill]]  ;;  %s6279_s7 = sld [smem:[#allocation37_spill]] }
 0x122   : > { %s4300_s28 = smul.u32 3, %s5516_s19  ;;  %s3876_s29 = sshll.u32 %s5516_s19, 2 }
 0x123   : > { %s6280_s21 = sld [smem:[#allocation38_spill]]  ;;  %s680_s16 = scalar_lea.vmem [#allocation12], %s5504_s10 }
 0x124   : > { %s5549_s23 = scalar_lea.vmem [#allocation14], %s3873_s0  ;;  %s5551_s1 = scalar_lea.vmem [#allocation15], %s3874_s27 }
 0x125   : > { %s812_s15 = scalar_lea.vmem %s6276_s25, %s5516_s19  ;;  %s815_s12 = scalar_lea.vmem %s6277_s3, %s5516_s19 }
 0x126   : > { %s5547_s25 = scalar_lea.vmem [#allocation13], %s4299_s17  ;;  %s5553_s3 = scalar_lea.vmem [#allocation16], %s3874_s27 }
 0x127   : > { %s5534_s24 = scalar_lea.vmem %s6278_s5, %s4300_s28  ;;  %s5540_s11 = scalar_lea.vmem %s6279_s7, %s3876_s29 }
 0x128   : > { %p6281_p7 = scmp.ne.s32.totalorder %s5187_s22, 0 }
 0x129   : > { %s822_s18 = scalar_lea.vmem %s6280_s21, %s5516_s19  ;;  %v828_v0 = vlaneseq (!%p6281_p7)  ;;  %s840_s2 = sld [smem:[#allocation5]] (!%p6281_p7)  ;;  %vm837_vm0 = vcmask (!%p6281_p7), 130048   ;;  %v843_v3 = vld [vmem:[#allocation9] sm:$0x1] (!%p6281_p7)  ;;  %v849_v5 = vld [vmem:[#allocation9 + $0x1] sm:$0x1] (!%p6281_p7) }
 0x12a   : > { %827 = sbr.rel (%p6281_p7) target bundleno = 347 (0x15b), region = 120  ;;  %s3878_s7 = sld [smem:[#allocation5 + $0x1]] (!%p6281_p7)  ;;  %v5056_v6 = vmov (!%p6281_p7), -1e+30   ;;  %v855_v8 = vld [vmem:[#allocation9 + $0x2] sm:$0x1] (!%p6281_p7) }
 0x12b   : > { %v829_v1 = vshrl.u32 (!%p6281_p7), %v828_v0, 7  ;;  %v832_v2 = vand.u32 (!%p6281_p7), 127, %v828_v0  ;;  %s5557_s30 = sld [smem:[#allocation5 + $0x2]] (!%p6281_p7)  ;;  %s5559_s17 = sld [smem:[#allocation5 + $0x3]] (!%p6281_p7)  ;;  %v861_v9 = vld [vmem:[#allocation9 + $0x3] sm:$0x1] (!%p6281_p7) }
 0x12c   : > { %s5561_s0 = sld [smem:[#allocation5 + $0x4]] (!%p6281_p7)  ;;  %s5563_s27 = sld [smem:[#allocation5 + $0x5]] (!%p6281_p7)  ;;  %v867_v10 = vld [vmem:[#allocation9 + $0x4] sm:$0x1] (!%p6281_p7)  ;;  %v873_v13 = vld [vmem:[#allocation9 + $0x5] sm:$0x1] (!%p6281_p7) }
 0x12d   : > { %vm833_vm1 = vcmp.le.s32.totalorder (!%p6281_p7), %v832_v2, %v829_v1  ;;  %v830_v4 = vadd.s32 (!%p6281_p7), 8, %v829_v1  ;;  %s5565_s28 = sld [smem:[#allocation5 + $0x6]] (!%p6281_p7)  ;;  %s5568_s21 = sld [smem:[#allocation5 + $0x7]] (!%p6281_p7)  ;;  %v879_v16 = vld [vmem:[#allocation9 + $0x6] sm:$0x1] (!%p6281_p7) }
 0x12e   : > { %v835_v7 = vsel (!%p6281_p7), %vm833_vm1, 0.0, %v5056_v6  ;;  %s5571_s5 = sld [smem:[#allocation5 + $0x8]] (!%p6281_p7)  ;;  %v885_v19 = vld [vmem:[#allocation9 + $0x7] sm:$0x1] (!%p6281_p7)  ;;  %v891_v30 = vld [vmem:[#allocation9 + $0x8] sm:$0x1] (!%p6281_p7) }
 0x12f   : > { %838 = vst.msk [vmem:[#allocation3] sm:$0xff] (!%p6281_p7), %vm837_vm0, %v835_v7  ;;  %vm834_vm2 = vcmp.le.s32.totalorder (!%p6281_p7), %v832_v2, %v830_v4  ;;  %s841_s6 = scalar_lea.vmem (!%p6281_p7), [#allocation6], %s840_s2  ;;  %v897_v33 = vld [vmem:[#allocation9 + $0x9] sm:$0x1] (!%p6281_p7)  ;;  %v903_v35 = vld [vmem:[#allocation9 + $0xa] sm:$0x1] (!%p6281_p7) }
 0x130   : > { %v836_v11 = vsel (!%p6281_p7), %vm834_vm2, 0.0, %v5056_v6  ;;  %v842_v12 = vld [vmem:[%s841_s6] sm:$0x1] (!%p6281_p7)  ;;  %s847_s4 = scalar_lea.vmem (!%p6281_p7), [#allocation6], %s3878_s7  ;;  %s5577_s7 = sld [smem:[#allocation5 + $0x9]] (!%p6281_p7) }
 0x131   : > { %839 = vst.msk [vmem:[#allocation3 + $0x8] sm:$0xff] %vm837_vm0, %v836_v11  ;;  %v844_v14 = vadd.f32 %v843_v3, %v842_v12  ;;  %v848_v15 = vld [vmem:[%s847_s4] sm:$0x1]  ;;  %s853_s29 = scalar_lea.vmem [#allocation6], %s5557_s30  ;;  %s859_s14 = scalar_lea.vmem [#allocation6], %s5559_s17 }
 0x132   : > { %v850_v17 = vadd.f32 %v849_v5, %v848_v15  ;;  %v854_v18 = vld [vmem:[%s853_s29] sm:$0x1]  ;;  %s865_s9 = scalar_lea.vmem [#allocation6], %s5561_s0  ;;  %s871_s2 = scalar_lea.vmem [#allocation6], %s5563_s27  ;;  %v909_v36 = vld [vmem:[#allocation9 + $0xb] sm:$0x1] }
 0x133   : > { %845 = vst [vmem:[#allocation2] sm:$0x1] %v844_v14  ;;  %v856_v20 = vadd.f32 %v855_v8, %v854_v18  ;;  %v860_v21 = vld [vmem:[%s859_s14] sm:$0x1]  ;;  %s877_s30 = scalar_lea.vmem [#allocation6], %s5565_s28  ;;  %s883_s17 = scalar_lea.vmem [#allocation6], %s5568_s21 }
 0x134   : > { %v866_v22 = vld [vmem:[%s865_s9] sm:$0x1]  ;;  %851 = vst [vmem:[#allocation2 + $0x1] sm:$0x1] %v850_v17  ;;  %v862_v23 = vadd.f32 %v861_v9, %v860_v21  ;;  %s3887_s0 = sld [smem:[#allocation5 + $0xa]]  ;;  %s3888_s6 = sld [smem:[#allocation5 + $0xb]] }
 0x135   : > { %v868_v24 = vadd.f32 %v867_v10, %v866_v22  ;;  %v872_v25 = vld [vmem:[%s871_s2] sm:$0x1]  ;;  %857 = vst [vmem:[#allocation2 + $0x2] sm:$0x1] %v856_v20  ;;  %s889_s27 = scalar_lea.vmem [#allocation6], %s5571_s5  ;;  %s3889_s4 = sld [smem:[#allocation5 + $0xc]] }
 0x136   : > { %v874_v26 = vadd.f32 %v873_v13, %v872_v25  ;;  %v878_v27 = vld [vmem:[%s877_s30] sm:$0x1]  ;;  %863 = vst [vmem:[#allocation2 + $0x3] sm:$0x1] %v862_v23  ;;  %s5582_s28 = sld [smem:[#allocation5 + $0xd]]  ;;  %s5584_s29 = sld [smem:[#allocation5 + $0xe]] }
 0x137   : > { %869 = vst [vmem:[#allocation2 + $0x4] sm:$0x1] %v868_v24  ;;  %v880_v28 = vadd.f32 %v879_v16, %v878_v27  ;;  %v884_v29 = vld [vmem:[%s883_s17] sm:$0x1]  ;;  %s5586_s21 = sld [smem:[#allocation5 + $0xf]]  ;;  %s895_s14 = scalar_lea.vmem [#allocation6], %s5577_s7 }
 0x138   : > { %875 = vst [vmem:[#allocation2 + $0x5] sm:$0x1] %v874_v26  ;;  %v886_v31 = vadd.f32 %v885_v19, %v884_v29  ;;  %v890_v32 = vld [vmem:[%s889_s27] sm:$0x1]  ;;  %v915_v38 = vld [vmem:[#allocation9 + $0xc] sm:$0x1] }
 0x139   : > { %881 = vst [vmem:[#allocation2 + $0x6] sm:$0x1] %v880_v28  ;;  %v892_v34 = vadd.f32 %v891_v30, %v890_v32  ;;  %v896_v37 = vld [vmem:[%s895_s14] sm:$0x1]  ;;  %s5589_s9 = sld [smem:[#allocation5 + $0x10]]  ;;  %s5591_s5 = sld [smem:[#allocation5 + $0x11]] }
 0x13a   : > { %887 = vst [vmem:[#allocation2 + $0x7] sm:$0x1] %v886_v31  ;;  %v898_v39 = vadd.f32 %v897_v33, %v896_v37  ;;  %v921_v40 = vld [vmem:[#allocation9 + $0xd] sm:$0x1]  ;;  %v927_v41 = vld [vmem:[#allocation9 + $0xe] sm:$0x1] }
 0x13b   : > { %893 = vst [vmem:[#allocation2 + $0x8] sm:$0x1] %v892_v34  ;;  %s901_s2 = scalar_lea.vmem [#allocation6], %s3887_s0  ;;  %v933_v43 = vld [vmem:[#allocation9 + $0xf] sm:$0x1]  ;;  %s907_s30 = scalar_lea.vmem [#allocation6], %s3888_s6 }
 0x13c   : > { %v902_v42 = vld [vmem:[%s901_s2] sm:$0x1]  ;;  %899 = vst [vmem:[#allocation2 + $0x9] sm:$0x1] %v898_v39  ;;  %s5593_s7 = sld [smem:[#allocation5 + $0x12]]  ;;  %s913_s17 = scalar_lea.vmem [#allocation6], %s3889_s4 }
 0x13d   : > { %v904_v44 = vadd.f32 %v903_v35, %v902_v42  ;;  %v908_v45 = vld [vmem:[%s907_s30] sm:$0x1]  ;;  %v945_v49 = vld [vmem:[#allocation9 + $0x1] sm:$0x1]  ;;  %s919_s27 = scalar_lea.vmem [#allocation6], %s5582_s28  ;;  %s925_s0 = scalar_lea.vmem [#allocation6], %s5584_s29 }
 0x13e   : > { %v939_v46 = vld [vmem:[#allocation9] sm:$0x1]  ;;  %v910_v47 = vadd.f32 %v909_v36, %v908_v45  ;;  %s931_s6 = scalar_lea.vmem [#allocation6], %s5586_s21  ;;  %s5598_s14 = sld [smem:[#allocation5 + $0x13]]  ;;  %v951_v60 = vld [vmem:[#allocation9 + $0x2] sm:$0x1] }
 0x13f   : > { %v914_v48 = vld [vmem:[%s913_s17] sm:$0x1]  ;;  %905 = vst [vmem:[#allocation2 + $0xa] sm:$0x1] %v904_v44  ;;  %s937_s4 = scalar_lea.vmem [#allocation6], %s5589_s9  ;;  %s943_s28 = scalar_lea.vmem [#allocation6], %s5591_s5 }
 0x140   : > { %v916_v50 = vadd.f32 %v915_v38, %v914_v48  ;;  %v920_v51 = vld [vmem:[%s919_s27] sm:$0x1]  ;;  %911 = vst [vmem:[#allocation2 + $0xb] sm:$0x1] %v910_v47  ;;  %s3897_s29 = sld [smem:[#allocation5 + $0x14]]  ;;  %s3898_s2 = sld [smem:[#allocation5 + $0x15]] }
 0x141   : > { %v926_v52 = vld [vmem:[%s925_s0] sm:$0x1]  ;;  %v922_v53 = vadd.f32 %v921_v40, %v920_v51  ;;  %v957_v63 = vld [vmem:[#allocation9 + $0x3] sm:$0x1]  ;;  %s3899_s30 = sld [smem:[#allocation5 + $0x16]]  ;;  %s5603_s9 = sld [smem:[#allocation5 + $0x17]] }
 0x142   : > { %v928_v54 = vadd.f32 %v927_v41, %v926_v52  ;;  %v932_v55 = vld [vmem:[%s931_s6] sm:$0x1]  ;;  %917 = vst [vmem:[#allocation2 + $0xc] sm:$0x1] %v916_v50  ;;  %s949_s21 = scalar_lea.vmem [#allocation6], %s5593_s7  ;;  %s5605_s17 = sld [smem:[#allocation5 + $0x18]] }
 0x143   : > { %v934_v56 = vadd.f32 %v933_v43, %v932_v55  ;;  %v938_v57 = vld [vmem:[%s937_s4] sm:$0x1]  ;;  %923 = vst [vmem:[#allocation2 + $0xd] sm:$0x1] %v922_v53  ;;  %v963_v1 = vld [vmem:[#allocation9 + $0x4] sm:$0x1] }
 0x144   : > { %929 = vst [vmem:[#allocation2 + $0xe] sm:$0x1] %v928_v54  ;;  %v940_v58 = vadd.f32 %v939_v46, %v938_v57  ;;  %v944_v59 = vld [vmem:[%s943_s28] sm:$0x1]  ;;  %v969_v2 = vld [vmem:[#allocation9 + $0x5] sm:$0x1] }
 0x145   : > { %935 = vst [vmem:[#allocation2 + $0xf] sm:$0x1] %v934_v56  ;;  %v946_v61 = vadd.f32 %v945_v49, %v944_v59  ;;  %v950_v62 = vld [vmem:[%s949_s21] sm:$0x1]  ;;  %s5607_s5 = sld [smem:[#allocation5 + $0x19]]  ;;  %s955_s27 = scalar_lea.vmem [#allocation6], %s5598_s14 }
 0x146   : > { %941 = vst [vmem:[#allocation2 + $0x10] sm:$0x1] %v940_v58  ;;  %v952_v0 = vadd.f32 %v951_v60, %v950_v62  ;;  %v956_v3 = vld [vmem:[%s955_s27] sm:$0x1]  ;;  %v975_v4 = vld [vmem:[#allocation9 + $0x6] sm:$0x1] }
 0x147   : > { %947 = vst [vmem:[#allocation2 + $0x11] sm:$0x1] %v946_v61  ;;  %s5610_s0 = sld [smem:[#allocation5 + $0x1a]]  ;;  %v958_v5 = vadd.f32 %v957_v63, %v956_v3  ;;  %v981_v6 = vld [vmem:[#allocation9 + $0x7] sm:$0x1]  ;;  %s5612_s7 = sld [smem:[#allocation5 + $0x1b]] }
 0x148   : > { %953 = vst [vmem:[#allocation2 + $0x12] sm:$0x1] %v952_v0  ;;  %v987_v7 = vld [vmem:[#allocation9 + $0x8] sm:$0x1]  ;;  %s961_s6 = scalar_lea.vmem [#allocation6], %s3897_s29  ;;  %s967_s4 = scalar_lea.vmem [#allocation6], %s3898_s2 }
 0x149   : > { %v962_v8 = vld [vmem:[%s961_s6] sm:$0x1]  ;;  %v993_v9 = vld [vmem:[#allocation9 + $0x9] sm:$0x1]  ;;  %959 = vst [vmem:[#allocation2 + $0x13] sm:$0x1] %v958_v5 }
 0x14a   : > { %v964_v10 = vadd.f32 %v963_v1, %v962_v8  ;;  %v968_v11 = vld [vmem:[%s967_s4] sm:$0x1]  ;;  %v999_v12 = vld [vmem:[#allocation9 + $0xa] sm:$0x1]  ;;  %s5614_s14 = sld [smem:[#allocation5 + $0x1c]]  ;;  %s973_s28 = scalar_lea.vmem [#allocation6], %s3899_s30 }
 0x14b   : > { %v970_v13 = vadd.f32 %v969_v2, %v968_v11  ;;  %v974_v14 = vld [vmem:[%s973_s28] sm:$0x1]  ;;  %v1005_v15 = vld [vmem:[#allocation9 + $0xb] sm:$0x1]  ;;  %s979_s21 = scalar_lea.vmem [#allocation6], %s5603_s9  ;;  %s985_s29 = scalar_lea.vmem [#allocation6], %s5605_s17 }
 0x14c   : > { %965 = vst [vmem:[#allocation2 + $0x14] sm:$0x1] %v964_v10  ;;  %v976_v16 = vadd.f32 %v975_v4, %v974_v14  ;;  %v980_v17 = vld [vmem:[%s979_s21] sm:$0x1]  ;;  %s991_s2 = scalar_lea.vmem [#allocation6], %s5607_s5  ;;  %s3906_s27 = sld [smem:[#allocation5 + $0x1d]] }
 0x14d   : > { %v986_v18 = vld [vmem:[%s985_s29] sm:$0x1]  ;;  %971 = vst [vmem:[#allocation2 + $0x15] sm:$0x1] %v970_v13  ;;  %v982_v19 = vadd.f32 %v981_v6, %v980_v17  ;;  %s997_s30 = scalar_lea.vmem [#allocation6], %s5610_s0  ;;  %s1003_s6 = scalar_lea.vmem [#allocation6], %s5612_s7 }
 0x14e   : > { %v988_v20 = vadd.f32 %v987_v7, %v986_v18  ;;  %v992_v21 = vld [vmem:[%s991_s2] sm:$0x1]  ;;  %977 = vst [vmem:[#allocation2 + $0x16] sm:$0x1] %v976_v16  ;;  %v1011_v26 = vld [vmem:[#allocation9 + $0xc] sm:$0x1] }
 0x14f   : > { %v994_v22 = vadd.f32 %v993_v9, %v992_v21  ;;  %v998_v23 = vld [vmem:[%s997_s30] sm:$0x1]  ;;  %983 = vst [vmem:[#allocation2 + $0x17] sm:$0x1] %v982_v19  ;;  %s3907_s9 = sld [smem:[#allocation5 + $0x1e]]  ;;  %s3908_s17 = sld [smem:[#allocation5 + $0x1f]] }
 0x150   : > { %989 = vst [vmem:[#allocation2 + $0x18] sm:$0x1] %v988_v20  ;;  %v1000_v24 = vadd.f32 %v999_v12, %v998_v23  ;;  %v1004_v25 = vld [vmem:[%s1003_s6] sm:$0x1]  ;;  %s1009_s4 = scalar_lea.vmem [#allocation6], %s5614_s14 }
 0x151   : > { %995 = vst [vmem:[#allocation2 + $0x19] sm:$0x1] %v994_v22  ;;  %v1006_v27 = vadd.f32 %v1005_v15, %v1004_v25  ;;  %v1010_v28 = vld [vmem:[%s1009_s4] sm:$0x1]  ;;  %v1017_v30 = vld [vmem:[#allocation9 + $0xd] sm:$0x1] }
 0x152   : > { %1001 = vst [vmem:[#allocation2 + $0x1a] sm:$0x1] %v1000_v24  ;;  %v1012_v29 = vadd.f32 %v1011_v26, %v1010_v28  ;;  %s1015_s5 = scalar_lea.vmem [#allocation6], %s3906_s27  ;;  %v1023_v32 = vld [vmem:[#allocation9 + $0xe] sm:$0x1] }
 0x153   : > { %1007 = vst [vmem:[#allocation2 + $0x1b] sm:$0x1] %v1006_v27  ;;  %v1016_v31 = vld [vmem:[%s1015_s5] sm:$0x1]  ;;  %v1029_v34 = vld [vmem:[#allocation9 + $0xf] sm:$0x1] }
 0x154   : > { %1013 = vst [vmem:[#allocation2 + $0x1c] sm:$0x1] %v1012_v29  ;;  %v1018_v33 = vadd.f32 %v1017_v30, %v1016_v31 }
 0x155   : > { %s1021_s0 = scalar_lea.vmem [#allocation6], %s3907_s9  ;;  %s1027_s7 = scalar_lea.vmem [#allocation6], %s3908_s17 }
 0x156   : > { %v1022_v35 = vld [vmem:[%s1021_s0] sm:$0x1]  ;;  %1019 = vst [vmem:[#allocation2 + $0x1d] sm:$0x1] %v1018_v33 }
 0x157   : > { %v1024_v36 = vadd.f32 %v1023_v32, %v1022_v35  ;;  %v1028_v37 = vld [vmem:[%s1027_s7] sm:$0x1] }
 0x158   : > { %v1030_v38 = vadd.f32 %v1029_v34, %v1028_v37 }
 0x159   : > { %1025 = vst [vmem:[#allocation2 + $0x1e] sm:$0x1] %v1024_v36 }
 0x15a   : > { %1031 = vst [vmem:[#allocation2 + $0x1f] sm:$0x1] %v1030_v38 }
 0x15b PF: > { %v1032_v39 = vld [vmem:[#allocation2] sm:$0xff]  ;;  %v1034_v40 = vld [vmem:[#allocation2 + $0x10] sm:$0xff]  ;;  %v1033_v41 = vld [vmem:[#allocation2 + $0x8] sm:$0xff]  ;;  %v5057_v14 = vmov 0   ;;  %vm5059_vm3 = vmmov 0   ;;  %vm1392_vm4 = vcmask 261120   ;;  %s6283_s28 = scalar_lea.vmem %s6193_s8, %s5516_s19 }
 0x15c   : > { %1038 = vadd.xlane.f32.xlu0 %v1032_v39  ;;  %1042 = vadd.xlane.f32.xlu1 %v1034_v40  ;;  %v4441_v43 = vld [vmem:[%s5547_s25 + $0x4] ss:$12 sps:$4 sm:$0xff]   ;;  %v4443_v44 = vld [vmem:[%s5547_s25] ss:$12 sps:$4 sm:$0xff]   ;;  %v4444_v45 = vld [vmem:[%s5547_s25 + $0x1c] ss:$12 sps:$4 sm:$0xff]  }
 0x15d   : > { %v4446_v46 = vld [vmem:[%s5547_s25 + $0x8] ss:$12 sps:$4 sm:$0xff]   ;;  %1282 = vmatprep.subr.bf16.mxu0 %v4441_v43  ;;  %v4447_v63 = vld [vmem:[%s5547_s25 + $0x18] ss:$12 sps:$4 sm:$0xff]   ;;  %v4450_v1 = vld [vmem:[%s5547_s25 + $0x20] ss:$12 sps:$4 sm:$0xff]   ;;  %1314 = vmatprep.mubr.bf16.mxu0 %v5057_v14 }
 0x15e   : > { %1283 = vmatpush1.bf16.msra.mxu0 %v4443_v44  ;;  %4161 = vmatprep.subr.bf16.mxu1 %v4446_v46  ;;  %v4448_v0 = vld [vmem:[%s5547_s25 + $0x34] ss:$12 sps:$4 sm:$0xff]   ;;  %v4451_v2 = vld [vmem:[%s5547_s25 + $0x30] ss:$12 sps:$4 sm:$0xff]   ;;  %v4452_v3 = vld [vmem:[%s5547_s25 + $0x4c] ss:$12 sps:$4 sm:$0xff]  }
 0x15f   : > { %1284 = vmatprep.subr.bf16.mxu0 %v4444_v45  ;;  %4162 = vmatpush3.bf16.msra.mxu1 %v4446_v46  ;;  %v4454_v4 = vld [vmem:[%s5547_s25 + $0x38] ss:$12 sps:$4 sm:$0xff]   ;;  %v4455_v5 = vld [vmem:[%s5547_s25 + $0x48] ss:$12 sps:$4 sm:$0xff]   ;;  %v4458_v7 = vld [vmem:[%s5547_s25 + $0x50] ss:$12 sps:$4 sm:$0xff]  }
 0x160   : > { %1040 = vadd.xlane.f32.xlu0 %v1033_v41  ;;  %4163 = vmatprep.subr.bf16.mxu1 %v4450_v1  ;;  %v4456_v6 = vld [vmem:[%s5547_s25 + $0x64] ss:$12 sps:$4 sm:$0xff]   ;;  %v4459_v8 = vld [vmem:[%s5547_s25 + $0x60] ss:$12 sps:$4 sm:$0xff]   ;;  %v4460_v9 = vld [vmem:[%s5547_s25 + $0x7c] ss:$12 sps:$4 sm:$0xff]  }
 0x161   : > { %v1035_v42 = vld [vmem:[#allocation2 + $0x18] sm:$0xff]  ;;  %v4466_v13 = vld [vmem:[%s5547_s25 + $0x80] ss:$12 sps:$4 sm:$0xff]   ;;  %v4467_v15 = vld [vmem:[%s5547_s25 + $0x90] ss:$12 sps:$4 sm:$0xff]   ;;  %vm1495_vm5 = vcmask 130048  }
 0x162   : > { %1044 = vadd.xlane.f32.xlu1 %v1035_v42  ;;  %1285 = vmatpush1.bf16.msra.mxu0 %v4447_v63  ;;  %v4462_v10 = vld [vmem:[%s5547_s25 + $0x68] ss:$12 sps:$4 sm:$0xff]   ;;  %v4463_v11 = vld [vmem:[%s5547_s25 + $0x78] ss:$12 sps:$4 sm:$0xff]   ;;  %v4472_v19 = vld [vmem:[%s5547_s25 + $0xb0] ss:$12 sps:$4 sm:$0xff]  }
 0x163   : > { %1286 = vmatprep.subr.bf16.mxu0 %v4448_v0  ;;  %4164 = vmatpush3.bf16.msra.mxu1 %v4450_v1  ;;  %v4464_v12 = vld [vmem:[%s5547_s25 + $0x94] ss:$12 sps:$4 sm:$0xff]   ;;  %v4468_v16 = vld [vmem:[%s5547_s25 + $0xac] ss:$12 sps:$4 sm:$0xff]   ;;  %vm2486_vm6 = vcmask 523264   ;;  %vm2491_vm7 = vcmask 785408  }
 0x164   : > { %4165 = vmatprep.subr.bf16.mxu1 %v4454_v4  ;;  %v4470_v17 = vld [vmem:[%s5547_s25 + $0x98] ss:$12 sps:$4 sm:$0xff]   ;;  %v4471_v18 = vld [vmem:[%s5547_s25 + $0xa8] ss:$12 sps:$4 sm:$0xff]   ;;  %s6282_s25 = scalar_lea.vmem [#allocation11], %s5504_s10  ;;  %s5060_s10 = smov 96  }
 0x165   : > { %v3909_v34 = vld [vmem:[%s6282_s25] ss:$0 sm:$0xff]  ;;  %p4043_p11 = scmp.ne.s32.totalorder %s5187_s22, 1 }
 0x166   : > { %1287 = vmatpush1.bf16.msra.mxu0 %v4451_v2  ;;  %s6288_s17 = sld [smem:[#allocation40_spill]] (!%p4043_p11) }
 0x167   : > { %1288 = vmatprep.subr.bf16.mxu0 %v4452_v3  ;;  %4166 = vmatpush3.bf16.msra.mxu1 %v4454_v4 }
 0x168   : > { %4167 = vmatprep.subr.bf16.mxu1 %v4458_v7 }
 0x16a   : > { %1289 = vmatpush1.bf16.msra.mxu0 %v4455_v5 }
 0x16b   : > { %1290 = vmatprep.subr.bf16.mxu0 %v4456_v6  ;;  %4168 = vmatpush3.bf16.msra.mxu1 %v4458_v7 }
 0x16c   : > { %4169 = vmatprep.subr.bf16.mxu1 %v4462_v10 }
 0x16e   : > { %1291 = vmatpush1.bf16.msra.mxu0 %v4459_v8 }
 0x16f   : > { %1292 = vmatprep.subr.bf16.mxu0 %v4460_v9  ;;  %4170 = vmatpush3.bf16.msra.mxu1 %v4462_v10 }
 0x170   : > { %4171 = vmatprep.subr.bf16.mxu1 %v4466_v13 }
 0x172   : > { %1293 = vmatpush1.bf16.msra.mxu0 %v4463_v11 }
 0x173   : > { %1294 = vmatprep.subr.bf16.mxu0 %v4464_v12  ;;  %4172 = vmatpush3.bf16.msra.mxu1 %v4466_v13 }
 0x174   : > { %4173 = vmatprep.subr.bf16.mxu1 %v4470_v17 }
 0x176   : > { %1295 = vmatpush1.bf16.msra.mxu0 %v4467_v15 }
 0x177   : > { %1296 = vmatprep.subr.bf16.mxu0 %v4468_v16  ;;  %4174 = vmatpush3.bf16.msra.mxu1 %v4470_v17 }
 0x178   : > { %4175 = vmatprep.subr.bf16.mxu1 %v4472_v19 }
 0x17a   : > { %1297 = vmatpush1.bf16.msra.mxu0 %v4471_v18 }
 0x17b   : > { %4176 = vmatpush3.bf16.msra.mxu1 %v4472_v19 }
 0x1e9   : > { %v1039_v47 = vpop.xlane.xlu0 %1038  ;;  %v1043_v48 = vpop.xlane.xlu1 %1042 }
 0x1ea   : > { %v1047_v49 = vmul.f32 0.0078125, %v1039_v47  ;;  %v1049_v50 = vmul.f32 0.0078125, %v1043_v48 }
 0x1ec   : > { %v5626_v51 = vsub.f32 %v1032_v39, %v1047_v49  ;;  %v5628_v52 = vsub.f32 %v1034_v40, %v1049_v50  ;;  %v3910_v39 = vld [vmem:[%s680_s16] ss:$0 sm:$0xff]  ;;  %s5062_s16 = smov 32  }
 0x1ed   : > { %v1041_v53 = vpop.xlane.xlu0 %1040 }
 0x1ee   : > { %v1048_v55 = vmul.f32 0.0078125, %v1041_v53  ;;  %v1055_v56 = vmul.f32 %v5626_v51, %v5626_v51  ;;  %v1057_v60 = vmul.f32 %v5628_v52, %v5628_v52  ;;  %v1139_v53 = vlaneseq }
 0x1ef   : > { %v1045_v54 = vpop.xlane.xlu1 %1044 }
 0x1f0   : > { %v1050_v57 = vmul.f32 0.0078125, %v1045_v54  ;;  %v5632_v58 = vsub.f32 %v1033_v41, %v1048_v55  ;;  %1059 = vadd.xlane.f32.xlu0 %v1055_v56  ;;  %v5678_v54 = vshrl.u32 %v1139_v53, 7  ;;  %v1137_v56 = vld [vmem:[%s5534_s24] sm:$0x7]  ;;  %s5061_s24 = smov 64  }
 0x1f2   : > { %v5634_v59 = vsub.f32 %v1035_v42, %v1050_v57  ;;  %v1056_v61 = vmul.f32 %v5632_v58, %v5632_v58  ;;  %v1141_v55 = vsub.s32 0, %v5678_v54  ;;  %v1145_v57 = vsub.s32 1, %v5678_v54 }
 0x1f4   : > { %1063 = vadd.xlane.f32.xlu0 %v1057_v60  ;;  %1061 = vadd.xlane.f32.xlu1 %v1056_v61  ;;  %v1058_v62 = vmul.f32 %v5634_v59, %v5634_v59  ;;  %v1146_v61 = vrot.slane %v1137_v56, %v1145_v57 }
 0x1f8   : > { %1065 = vadd.xlane.f32.xlu1 %v1058_v62 }
 0x27d   : > { %v1060_v20 = vpop.xlane.xlu0 %1059 }
 0x27e   : > { %v1067_v21 = vmul.f32 0.0078125, %v1060_v20 }
 0x280   : > { %v1071_v22 = vadd.f32 1e-05, %v1067_v21 }
 0x281   : > { %v1062_v23 = vpop.xlane.xlu1 %1061  ;;  %v1064_v24 = vpop.xlane.xlu0 %1063 }
 0x282   : > { %4561 = vrsqrt.f32 %v1071_v22  ;;  %v1068_v25 = vmul.f32 0.0078125, %v1062_v23  ;;  %v1069_v26 = vmul.f32 0.0078125, %v1064_v24 }
 0x284   : > { %v1072_v27 = vadd.f32 1e-05, %v1068_v25  ;;  %v1073_v28 = vadd.f32 1e-05, %v1069_v26 }
 0x285   : > { %v1066_v29 = vpop.xlane.xlu1 %1065 }
 0x286   : > { %4563 = vrsqrt.f32 %v1072_v27  ;;  %v1070_v30 = vmul.f32 0.0078125, %v1066_v29 }
 0x287   : > { %4565 = vrsqrt.f32 %v1073_v28 }
 0x288   : > { %v1074_v31 = vadd.f32 1e-05, %v1070_v30 }
 0x28a   : > { %4567 = vrsqrt.f32 %v1074_v31 }
 0x28c   : > { %v4562_v32 = vpop.eup %4561 }
 0x28d   : > { %v1079_v33 = vmul.f32 %v4562_v32, %v5626_v51  ;;  %v5720_v32 = vld [vmem:[#allocation3] sm:$0xff] }
 0x28f   : > { %v1089_v38 = vmul.f32 %v3909_v34, %v1079_v33 }
 0x290   : > { %v4564_v35 = vpop.eup %4563 }
 0x291   : > { %v4566_v36 = vpop.eup %4565  ;;  %v1080_v37 = vmul.f32 %v4564_v35, %v5632_v58  ;;  %v1099_v43 = vadd.f32 %v3910_v39, %v1089_v38  ;;  %v1142_v58 = vrot.slane %v1137_v56, %v1141_v55 }
 0x292   : > { %v1081_v40 = vmul.f32 %v4566_v36, %v5628_v52  ;;  %v5058_v52 = vmov 0.0   ;;  %v5722_v36 = vld [vmem:[#allocation3 + $0x8] sm:$0xff] }
 0x293   : > { %v1090_v41 = vmul.f32 %v3909_v34, %v1080_v37  ;;  %4181 = vmatprep.subr.bf16.mxu0 %v5058_v52  ;;  %4193 = vmatprep.subr.bf16.mxu1 %v5058_v52 }
 0x294   : > { %v4568_v42 = vpop.eup %4567  ;;  %v1091_v46 = vmul.f32 %v3909_v34, %v1081_v40 }
 0x295   : > { %v1100_v44 = vadd.f32 %v3910_v39, %v1090_v41  ;;  %v1082_v45 = vmul.f32 %v4568_v42, %v5634_v59  ;;  %v1149_v59 = vsub.s32 2, %v5678_v54 }
 0x296   : > { %v1101_v49 = vadd.f32 %v3910_v39, %v1091_v46 }
 0x297   : > { %v1103_v47 = vpack.c.bf16 %v1100_v44, %v1099_v43  ;;  %v1092_v48 = vmul.f32 %v3909_v34, %v1082_v45  ;;  %v1150_v3 = vrot.slane %v1137_v56, %v1149_v59 }
 0x299   : > { %1315 = vmatmul.mubr.bf16.vlgmr.msra.gmra.mrb[0].mxu0 %v1103_v47  ;;  %4177 = vmatprep.mubr.bf16.mxu1 %v1103_v47  ;;  %v1102_v50 = vadd.f32 %v3910_v39, %v1092_v48 }
 0x29a   : > { %1324 = vmatprep.mubr.bf16.mxu0 %v5057_v14 }
 0x29b   : > { %v1104_v51 = vpack.c.bf16 %v1102_v50, %v1101_v49 }
 0x29d   : > { %4178 = vmatmul.mubr.bf16.vlgmr.msra.gmra.mrb[0].mxu1 %v1104_v51 }
 0x29e   : > { %4195 = vmatprep.mubr.msk.bf16.mxu1 %vm5059_vm3, %v5058_v52 }
 0x2a1   : > { %1325 = vmatmul.mubr.bf16.gmra.mrb[4].mxu0 %v1104_v51 }
 0x2a2   : > { %4183 = vmatprep.mubr.msk.bf16.mxu0 %vm5059_vm3, %v5058_v52 }
 0x36c   : > { %v1316_v60 = vpop.f32.mrb[0].mxu0 }
 0x36d   : > { %v1318_v62 = vpop.f32.mrb[1].mxu0  ;;  %v1317_v0 = vadd.f32 %v1316_v60, %v1142_v58 }
 0x36e   : > { %v1320_v63 = vpop.f32.mrb[2].mxu0  ;;  %v1319_v4 = vadd.f32 %v1318_v62, %v1146_v61 }
 0x36f   : > { %v1321_v1 = vadd.f32 %v1320_v63, %v1142_v58  ;;  %v1322_v2 = vpop.f32.mrb[3].mxu0 }
 0x370   : > { %v1323_v5 = vadd.f32 %v1322_v2, %v1146_v61  ;;  %v4179_v6 = vpop.f32.mrb[0].mxu1 }
 0x371   : > { %v5690_v7 = vpack.c.bf16 %v1321_v1, %v1317_v0  ;;  %v1369_v8 = vpop.f32.mrb[1].mxu1  ;;  %v1378_v11 = vadd.f32 %v4179_v6, %v1150_v3 }
 0x372   : > { %v5692_v9 = vpack.c.bf16 %v1323_v5, %v1319_v4  ;;  %v4180_v10 = vpop.f32.mrb[2].mxu1  ;;  %v1370_v15 = vadd.f32 %v1369_v8, %v1150_v3 }
 0x373   : > { %v1381_v12 = vadd.f32 %v4180_v10, %v1150_v3  ;;  %v1372_v13 = vpop.f32.mrb[3].mxu1 }
 0x374   : > { %v1373_v16 = vadd.f32 %v1372_v13, %v1150_v3  ;;  %v1326_v17 = vpop.f32.mrb[4].mxu0  ;;  %v1397_v18 = vsel %vm1392_vm4, %v5692_v9, 0 }
 0x375   : > { %v5696_v19 = vpack.c.bf16 %v1381_v12, %v1378_v11  ;;  %v1328_v20 = vpop.f32.mrb[5].mxu0  ;;  %4182 = vmatpush3.bf16.xpose.msra.mxu0 %v1397_v18  ;;  %v1327_v23 = vadd.f32 %v1326_v17, %v1142_v58 }
 0x376   : > { %v5698_v21 = vpack.c.bf16 %v1373_v16, %v1370_v15  ;;  %v1330_v22 = vpop.f32.mrb[6].mxu0  ;;  %4187 = vmatprep.subr.bf16.mxu0 %v5058_v52  ;;  %v1329_v26 = vadd.f32 %v1328_v20, %v1146_v61 }
 0x377   : > { %v1331_v24 = vadd.f32 %v1330_v22, %v1142_v58  ;;  %v1332_v25 = vpop.f32.mrb[7].mxu0 }
 0x378   : > { %v1333_v27 = vadd.f32 %v1332_v25, %v1146_v61  ;;  %4194 = vmatpush3.bf16.msra.mxu1 %v5698_v21 }
 0x379   : > { %v5702_v28 = vpack.c.bf16 %v1331_v24, %v1327_v23  ;;  %4205 = vmatprep.subr.bf16.mxu1 %v5058_v52 }
 0x37a   : > { %v5705_v29 = vpack.c.bf16 %v1333_v27, %v1329_v26 }
 0x37c   : > { %4184 = vmatmul.mubr.msk.bf16.vlgmr.msra.gmra.mrb[8].mxu0 %vm1392_vm4, %v5690_v7  ;;  %v1444_v30 = vsel %vm1392_vm4, %v5705_v29, 0 }
 0x37d   : > { %4188 = vmatpush3.bf16.xpose.msra.mxu0 %v1444_v30  ;;  %4189 = vmatprep.mubr.msk.bf16.mxu0 %vm5059_vm3, %v5058_v52 }
 0x37e   : > { %4199 = vmatprep.subr.bf16.mxu0 %v5058_v52 }
 0x384   : > { %4190 = vmatmul.mubr.msk.bf16.vlgmr.msra.gmra.mrb[12].mxu0 %vm1392_vm4, %v5702_v28 }
 0x385   : > { %4200 = vmatpush3.bf16.msra.mxu0 %v5696_v19  ;;  %4201 = vmatprep.mubr.msk.bf16.mxu0 %vm5059_vm3, %v5058_v52 }
 0x386   : > { %4211 = vmatprep.subr.bf16.mxu0 %v5058_v52 }
 0x44f   : > { %v1433_v31 = vpop.f32.mrb[8].mxu0 }
 0x450   : > { %v1487_v33 = vmul.f32 0.17677669, %v1433_v31  ;;  %v4185_v34 = vpop.f32.mrb[9].mxu0 }
 0x451   : > { %v1436_v35 = vpop.f32.mrb[10].mxu0 }
 0x452   : > { %v1488_v37 = vmul.f32 0.17677669, %v1436_v35  ;;  %v4186_v38 = vpop.f32.mrb[11].mxu0  ;;  %v1491_v39 = vadd.f32 %v1487_v33, %v5720_v32 }
 0x454   : > { %v1496_v40 = vsel %vm1495_vm5, %v1491_v39, -inf  ;;  %v1492_v41 = vadd.f32 %v1488_v37, %v5722_v36 }
 0x455   : > { %1497 = vmax.xlane.f32.xlu0 %v1496_v40 }
 0x456   : > { %v1499_v42 = vsel %vm1495_vm5, %v1492_v41, -inf }
 0x457   : > { %1500 = vmax.xlane.f32.xlu1 %v1499_v42  ;;  %v1480_v43 = vpop.f32.mrb[12].mxu0 }
 0x458   : > { %v1489_v44 = vmul.f32 0.17677669, %v1480_v43  ;;  %v4191_v45 = vpop.f32.mrb[13].mxu0 }
 0x459   : > { %v1483_v46 = vpop.f32.mrb[14].mxu0 }
 0x45a   : > { %v1490_v47 = vmul.f32 0.17677669, %v1483_v46  ;;  %v4192_v48 = vpop.f32.mrb[15].mxu0  ;;  %v1493_v49 = vadd.f32 %v1489_v44, %v5720_v32 }
 0x45c   : > { %v1502_v50 = vsel %vm1495_vm5, %v1493_v49, -inf  ;;  %v1494_v51 = vadd.f32 %v1490_v47, %v5722_v36 }
 0x45d   : > { %1503 = vmax.xlane.f32.xlu0 %v1502_v50 }
 0x45e   : > { %v1505_v53 = vsel %vm1495_vm5, %v1494_v51, -inf }
 0x45f   : > { %1506 = vmax.xlane.f32.xlu1 %v1505_v53 }
 0x4e2   : > { %v1498_v56 = vpop.xlane.xlu0 %1497 }
 0x4e3   : > { %v1508_v58 = vsub.f32 %v1491_v39, %v1498_v56 }
 0x4e4   : > { %v1501_v60 = vpop.xlane.xlu1 %1500 }
 0x4e5   : > { %v1512_v61 = vmul.f32 1.442695, %v1508_v58  ;;  %v1509_v62 = vsub.f32 %v1492_v41, %v1501_v60 }
 0x4e7   : > { %4569 = vpow2.f32 %v1512_v61  ;;  %v1514_v63 = vmul.f32 1.442695, %v1509_v62 }
 0x4e9   : > { %4571 = vpow2.f32 %v1514_v63 }
 0x4ea   : > { %v1504_v0 = vpop.xlane.xlu0 %1503 }
 0x4eb   : > { %v1510_v1 = vsub.f32 %v1493_v49, %v1504_v0 }
 0x4ec   : > { %v1507_v2 = vpop.xlane.xlu1 %1506 }
 0x4ed   : > { %v1516_v3 = vmul.f32 1.442695, %v1510_v1  ;;  %v1511_v4 = vsub.f32 %v1494_v51, %v1507_v2 }
 0x4ef   : > { %4573 = vpow2.f32 %v1516_v3  ;;  %v1518_v5 = vmul.f32 1.442695, %v1511_v4 }
 0x4f1   : > { %v4570_v6 = vpop.eup %4569  ;;  %4575 = vpow2.f32 %v1518_v5 }
 0x4f2   : > { %v1520_v8 = vsel %vm1495_vm5, %v4570_v6, 0.0 }
 0x4f3   : > { %v4572_v10 = vpop.eup %4571  ;;  %1521 = vadd.xlane.f32.xlu0 %v1520_v8 }
 0x4f4   : > { %v1523_v11 = vsel %vm1495_vm5, %v4572_v10, 0.0 }
 0x4f5   : > { %1524 = vadd.xlane.f32.xlu1 %v1523_v11 }
 0x4f9   : > { %v4574_v12 = vpop.eup %4573 }
 0x4fa   : > { %v1526_v13 = vsel %vm1495_vm5, %v4574_v12, 0.0 }
 0x4fb   : > { %v4576_v15 = vpop.eup %4575  ;;  %1527 = vadd.xlane.f32.xlu0 %v1526_v13 }
 0x4fc   : > { %v1529_v16 = vsel %vm1495_vm5, %v4576_v15, 0.0 }
 0x4fd   : > { %1530 = vadd.xlane.f32.xlu1 %v1529_v16 }
 0x50e   : > { %1699 = vrot.lane.b32.xlu1 %v5705_v29, %s5060_s10 }
 0x511   : > { %1646 = vrot.lane.b32.xlu0 %v5692_v9, %s5060_s10 }
 0x512   : > { %1643 = vrot.lane.b32.xlu1 %v5690_v7, %s5060_s10 }
 0x516   : > { %1696 = vrot.lane.b32.xlu1 %v5702_v28, %s5060_s10 }
 0x580   : > { %v1522_v17 = vpop.xlane.xlu0 %1521 }
 0x581   : > { %4577 = vrcp.f32 %v1522_v17 }
 0x582   : > { %v1525_v18 = vpop.xlane.xlu1 %1524 }
 0x583   : > { %4579 = vrcp.f32 %v1525_v18 }
 0x588   : > { %v1528_v20 = vpop.xlane.xlu0 %1527 }
 0x589   : > { %4581 = vrcp.f32 %v1528_v20 }
 0x58a   : > { %v1531_v22 = vpop.xlane.xlu1 %1530 }
 0x58b   : > { %v4578_v23 = vpop.eup %4577  ;;  %4583 = vrcp.f32 %v1531_v22 }
 0x58c   : > { %v1536_v24 = vmul.f32 %v4578_v23, %v1522_v17  ;;  %v1647_v40 = vpop.permute.xlu0 %1646 }
 0x58d   : > { %v4580_v25 = vpop.eup %4579  ;;  %v1652_v46 = vsel %vm1392_vm4, %v1647_v40, 0 }
 0x58e   : > { %v1540_v26 = vsub.f32 2.0, %v1536_v24  ;;  %v1537_v27 = vmul.f32 %v4580_v25, %v1525_v18  ;;  %v1700_v47 = vpop.permute.xlu1 %1699 }
 0x58f   : > { %v1705_v56 = vsel %vm1392_vm4, %v1700_v47, 0 }
 0x590   : > { %v1544_v30 = vmul.f32 %v4578_v23, %v1540_v26  ;;  %v1541_v31 = vsub.f32 2.0, %v1537_v27 }
 0x592   : > { %v1545_v33 = vmul.f32 %v4580_v25, %v1541_v31  ;;  %v1548_v35 = vmul.f32 %v4570_v6, %v1544_v30  ;;  %v1644_v53 = vpop.permute.xlu1 %1643 }
 0x593   : > { %v4582_v34 = vpop.eup %4581 }
 0x594   : > { %v1549_v37 = vmul.f32 %v4572_v10, %v1545_v33  ;;  %v1538_v38 = vmul.f32 %v4582_v34, %v1528_v20 }
 0x595   : > { %v4584_v39 = vpop.eup %4583 }
 0x596   : > { %v1552_v41 = vpack.c.bf16 %v1549_v37, %v1548_v35  ;;  %v1542_v42 = vsub.f32 2.0, %v1538_v38  ;;  %v1539_v43 = vmul.f32 %v4584_v39, %v1531_v22  ;;  %v1697_v58 = vpop.permute.xlu1 %1696 }
 0x598   : > { %v1546_v44 = vmul.f32 %v4582_v34, %v1542_v42  ;;  %v1543_v45 = vsub.f32 2.0, %v1539_v43  ;;  %4196 = vmatmul.mubr.msk.bf16.vlgmr.msra.gmra.mrb[4].mxu1 %vm1495_vm5, %v1552_v41 }
 0x599   : > { %4206 = vmatpush3.bf16.xpose.msra.mxu1 %v1652_v46  ;;  %4207 = vmatprep.mubr.msk.bf16.mxu1 %vm5059_vm3, %v5058_v52 }
 0x59a   : > { %v1547_v48 = vmul.f32 %v4584_v39, %v1543_v45  ;;  %4217 = vmatprep.subr.bf16.mxu1 %v5058_v52  ;;  %v1550_v49 = vmul.f32 %v4574_v12, %v1546_v44 }
 0x59c   : > { %v1551_v50 = vmul.f32 %v4576_v15, %v1547_v48 }
 0x59e   : > { %v1553_v51 = vpack.c.bf16 %v1551_v50, %v1550_v49 }
 0x5a0   : > { %4202 = vmatmul.mubr.msk.bf16.vlgmr.msra.gmra.mrb[16].mxu0 %vm1495_vm5, %v1553_v51  ;;  %4208 = vmatmul.mubr.msk.bf16.vlgmr.msra.gmra.mrb[8].mxu1 %vm1392_vm4, %v1644_v53 }
 0x5a1   : > { %4212 = vmatpush3.bf16.xpose.msra.mxu0 %v1705_v56  ;;  %4213 = vmatprep.mubr.msk.bf16.mxu0 %vm5059_vm3, %v5058_v52 }
 0x5a2   : > { %4223 = vmatprep.subr.bf16.mxu0 %v5058_v52  ;;  %4219 = vmatprep.mubr.msk.bf16.mxu1 %vm5059_vm3, %v5058_v52 }
 0x5a8   : > { %4214 = vmatmul.mubr.msk.bf16.vlgmr.msra.gmra.mrb[20].mxu0 %vm1392_vm4, %v1697_v58 }
 0x5a9   : > { %4225 = vmatprep.mubr.msk.bf16.mxu0 %vm5059_vm3, %v5058_v52 }
 0x66b   : > { %v5760_v60 = vpop.f32.mrb[4].mxu1 }
 0x66c   : > { %v4197_v61 = vpop.f32.mrb[5].mxu1 }
 0x66d   : > { %v5762_v62 = vpop.f32.mrb[6].mxu1 }
 0x66e   : > { %v4198_v63 = vpop.f32.mrb[7].mxu1 }
 0x673   : > { %v5764_v0 = vpop.f32.mrb[16].mxu0  ;;  %v1688_v1 = vpop.f32.mrb[8].mxu1 }
 0x674   : > { %v1748_v2 = vmul.f32 0.17677669, %v1688_v1  ;;  %v4203_v3 = vpop.f32.mrb[17].mxu0  ;;  %v4209_v4 = vpop.f32.mrb[9].mxu1 }
 0x675   : > { %v5766_v5 = vpop.f32.mrb[18].mxu0  ;;  %v1691_v6 = vpop.f32.mrb[10].mxu1 }
 0x676   : > { %v1749_v8 = vmul.f32 0.17677669, %v1691_v6  ;;  %v4204_v10 = vpop.f32.mrb[19].mxu0  ;;  %v4210_v11 = vpop.f32.mrb[11].mxu1  ;;  %v1752_v12 = vadd.f32 %v1748_v2, %v5720_v32 }
 0x678   : > { %v1756_v13 = vsel %vm1495_vm5, %v1752_v12, -inf  ;;  %v1753_v15 = vadd.f32 %v1749_v8, %v5722_v36 }
 0x679   : > { %1757 = vmax.xlane.f32.xlu0 %v1756_v13 }
 0x67a   : > { %v1759_v16 = vsel %vm1495_vm5, %v1753_v15, -inf }
 0x67b   : > { %1760 = vmax.xlane.f32.xlu1 %v1759_v16  ;;  %v1741_v17 = vpop.f32.mrb[20].mxu0 }
 0x67c   : > { %v1750_v18 = vmul.f32 0.17677669, %v1741_v17  ;;  %v4215_v20 = vpop.f32.mrb[21].mxu0 }
 0x67d   : > { %v1744_v22 = vpop.f32.mrb[22].mxu0 }
 0x67e   : > { %v1751_v23 = vmul.f32 0.17677669, %v1744_v22  ;;  %v4216_v24 = vpop.f32.mrb[23].mxu0  ;;  %v1754_v25 = vadd.f32 %v1750_v18, %v5720_v32 }
 0x680   : > { %v1762_v26 = vsel %vm1495_vm5, %v1754_v25, -inf  ;;  %v1755_v27 = vadd.f32 %v1751_v23, %v5722_v36 }
 0x681   : > { %1763 = vmax.xlane.f32.xlu0 %v1762_v26 }
 0x682   : > { %v1765_v30 = vsel %vm1495_vm5, %v1755_v27, -inf }
 0x685   : > { %1766 = vmax.xlane.f32.xlu0 %v1765_v30 }
 0x706   : > { %v1758_v31 = vpop.xlane.xlu0 %1757 }
 0x707   : > { %v1768_v33 = vsub.f32 %v1752_v12, %v1758_v31 }
 0x708   : > { %v1761_v34 = vpop.xlane.xlu1 %1760 }
 0x709   : > { %v1772_v35 = vmul.f32 1.442695, %v1768_v33  ;;  %v1769_v37 = vsub.f32 %v1753_v15, %v1761_v34 }
 0x70b   : > { %4585 = vpow2.f32 %v1772_v35  ;;  %v1774_v38 = vmul.f32 1.442695, %v1769_v37 }
 0x70d   : > { %4587 = vpow2.f32 %v1774_v38 }
 0x70e   : > { %v1764_v39 = vpop.xlane.xlu0 %1763 }
 0x70f   : > { %v1770_v40 = vsub.f32 %v1754_v25, %v1764_v39 }
 0x711   : > { %v1776_v41 = vmul.f32 1.442695, %v1770_v40 }
 0x712   : > { %v1767_v48 = vpop.xlane.xlu0 %1766 }
 0x713   : > { %4589 = vpow2.f32 %v1776_v41  ;;  %v1771_v49 = vsub.f32 %v1755_v27, %v1767_v48 }
 0x715   : > { %v4586_v42 = vpop.eup %4585  ;;  %v1778_v50 = vmul.f32 1.442695, %v1771_v49 }
 0x716   : > { %v1780_v43 = vsel %vm1495_vm5, %v4586_v42, 0.0 }
 0x717   : > { %v4588_v44 = vpop.eup %4587  ;;  %1781 = vadd.xlane.f32.xlu0 %v1780_v43  ;;  %4591 = vpow2.f32 %v1778_v50 }
 0x718   : > { %v1783_v45 = vsel %vm1495_vm5, %v4588_v44, 0.0 }
 0x719   : > { %1784 = vadd.xlane.f32.xlu1 %v1783_v45 }
 0x71d   : > { %v4590_v46 = vpop.eup %4589 }
 0x71e   : > { %v1786_v47 = vsel %vm1495_vm5, %v4590_v46, 0.0 }
 0x71f   : > { %1787 = vadd.xlane.f32.xlu0 %v1786_v47 }
 0x721   : > { %v4592_v51 = vpop.eup %4591 }
 0x722   : > { %v1789_v53 = vsel %vm1495_vm5, %v4592_v51, 0.0 }
 0x72a   : > { %1863 = vrot.lane.b32.xlu1 %v5696_v19, %s5060_s10 }
 0x72e   : > { %1912 = vrot.lane.b32.xlu1 %v5692_v9, %s5061_s24 }
 0x735   : > { %1815 = vrot.lane.b32.xlu0 %v5698_v21, %s5060_s10 }
 0x739   : > { %1910 = vrot.lane.b32.xlu0 %v5690_v7, %s5061_s24 }
 0x752   : > { %1790 = vadd.xlane.f32.xlu1 %v1789_v53 }
 0x763   : > { %1963 = vrot.lane.b32.xlu1 %v5705_v29, %s5061_s24 }
 0x767   : > { %1961 = vrot.lane.b32.xlu1 %v5702_v28, %s5061_s24 }
 0x7a4   : > { %v1782_v56 = vpop.xlane.xlu0 %1781 }
 0x7a5   : > { %4593 = vrcp.f32 %v1782_v56 }
 0x7a6   : > { %v1785_v58 = vpop.xlane.xlu1 %1784 }
 0x7a7   : > { %4595 = vrcp.f32 %v1785_v58 }
 0x7aa   : > { %v1864_v61 = vpop.permute.xlu1 %1863 }
 0x7ab   : > { %4224 = vmatpush3.bf16.msra.mxu0 %v1864_v61 }
 0x7ac   : > { %v1788_v63 = vpop.xlane.xlu0 %1787  ;;  %4235 = vmatprep.subr.bf16.mxu0 %v5058_v52 }
 0x7ad   : > { %4597 = vrcp.f32 %v1788_v63 }
 0x7ae   : > { %v1913_v16 = vpop.permute.xlu1 %1912 }
 0x7af   : > { %v4594_v1 = vpop.eup %4593  ;;  %v1918_v18 = vsel %vm1392_vm4, %v1913_v16, 0 }
 0x7b0   : > { %v1796_v2 = vmul.f32 %v4594_v1, %v1782_v56  ;;  %v1816_v3 = vpop.permute.xlu0 %1815 }
 0x7b1   : > { %v4596_v4 = vpop.eup %4595  ;;  %4218 = vmatpush3.bf16.msra.mxu1 %v1816_v3 }
 0x7b2   : > { %v1800_v6 = vsub.f32 2.0, %v1796_v2  ;;  %v1797_v8 = vmul.f32 %v4596_v4, %v1785_v58  ;;  %4229 = vmatprep.subr.bf16.mxu1 %v5058_v52 }
 0x7b4   : > { %v1804_v10 = vmul.f32 %v4594_v1, %v1800_v6  ;;  %v1801_v11 = vsub.f32 2.0, %v1797_v8  ;;  %v1911_v20 = vpop.permute.xlu0 %1910 }
 0x7b6   : > { %v1805_v12 = vmul.f32 %v4596_v4, %v1801_v11  ;;  %v1808_v13 = vmul.f32 %v4586_v42, %v1804_v10 }
 0x7b7   : > { %v4598_v23 = vpop.eup %4597 }
 0x7b8   : > { %v1809_v15 = vmul.f32 %v4588_v44, %v1805_v12  ;;  %v1798_v24 = vmul.f32 %v4598_v23, %v1788_v63 }
 0x7ba   : > { %v1812_v17 = vpack.c.bf16 %v1809_v15, %v1808_v13  ;;  %v1802_v25 = vsub.f32 2.0, %v1798_v24 }
 0x7bc   : > { %4220 = vmatmul.mubr.msk.bf16.vlgmr.msra.gmra.mrb[12].mxu1 %vm1495_vm5, %v1812_v17  ;;  %v1806_v30 = vmul.f32 %v4598_v23, %v1802_v25 }
 0x7bd   : > { %4230 = vmatpush3.bf16.xpose.msra.mxu1 %v1918_v18  ;;  %4231 = vmatprep.mubr.msk.bf16.mxu1 %vm5059_vm3, %v5058_v52 }
 0x7be   : > { %4241 = vmatprep.subr.bf16.mxu1 %v5058_v52  ;;  %v1810_v34 = vmul.f32 %v4590_v46, %v1806_v30 }
 0x7c4   : > { %4232 = vmatmul.mubr.msk.bf16.vlgmr.msra.gmra.mrb[16].mxu1 %vm1392_vm4, %v1911_v20 }
 0x7c5   : > { %4243 = vmatprep.mubr.msk.bf16.mxu1 %vm5059_vm3, %v5058_v52 }
 0x7df   : > { %v1791_v22 = vpop.xlane.xlu1 %1790 }
 0x7e0   : > { %4599 = vrcp.f32 %v1791_v22 }
 0x7e3   : > { %v1964_v37 = vpop.permute.xlu1 %1963 }
 0x7e4   : > { %v1969_v39 = vsel %vm1392_vm4, %v1964_v37, 0 }
 0x7e7   : > { %v1962_v40 = vpop.permute.xlu1 %1961 }
 0x7ea   : > { %v4600_v26 = vpop.eup %4599 }
 0x7eb   : > { %v1799_v27 = vmul.f32 %v4600_v26, %v1791_v22 }
 0x7ed   : > { %v1803_v31 = vsub.f32 2.0, %v1799_v27 }
 0x7ef   : > { %v1807_v33 = vmul.f32 %v4600_v26, %v1803_v31 }
 0x7f1   : > { %v1811_v35 = vmul.f32 %v4592_v51, %v1807_v33 }
 0x7f3   : > { %v1813_v38 = vpack.c.bf16 %v1811_v35, %v1810_v34 }
 0x7f5   : > { %4226 = vmatmul.mubr.msk.bf16.vlgmr.msra.gmra.mrb[24].mxu0 %vm1495_vm5, %v1813_v38 }
 0x7f6   : > { %4236 = vmatpush3.bf16.xpose.msra.mxu0 %v1969_v39  ;;  %4237 = vmatprep.mubr.msk.bf16.mxu0 %vm5059_vm3, %v5058_v52 }
 0x7f7   : > { %4247 = vmatprep.subr.bf16.mxu0 %v5058_v52 }
 0x7fd   : > { %4238 = vmatmul.mubr.msk.bf16.vlgmr.msra.gmra.mrb[28].mxu0 %vm1392_vm4, %v1962_v40 }
 0x7fe   : > { %4249 = vmatprep.mubr.msk.bf16.mxu0 %vm5059_vm3, %v5058_v52 }
 0x88f   : > { %v5810_v41 = vpop.f32.mrb[12].mxu1 }
 0x890   : > { %v4221_v42 = vpop.f32.mrb[13].mxu1 }
 0x891   : > { %v5812_v43 = vpop.f32.mrb[14].mxu1 }
 0x892   : > { %v4411_v44 = vpack.i.bf16 %v5812_v43, %v5810_v41  ;;  %v4222_v45 = vpop.f32.mrb[15].mxu1 }
 0x897   : > { %v1954_v46 = vpop.f32.mrb[16].mxu1 }
 0x898   : > { %v2012_v47 = vmul.f32 0.17677669, %v1954_v46  ;;  %v4233_v48 = vpop.f32.mrb[17].mxu1 }
 0x899   : > { %v1957_v49 = vpop.f32.mrb[18].mxu1 }
 0x89a   : > { %v2013_v50 = vmul.f32 0.17677669, %v1957_v49  ;;  %v4234_v51 = vpop.f32.mrb[19].mxu1  ;;  %v2016_v53 = vadd.f32 %v2012_v47, %v5720_v32 }
 0x89c   : > { %v2020_v56 = vsel %vm1495_vm5, %v2016_v53, -inf  ;;  %v2017_v58 = vadd.f32 %v2013_v50, %v5722_v36 }
 0x89d   : > { %2021 = vmax.xlane.f32.xlu0 %v2020_v56 }
 0x89e   : > { %v2023_v61 = vsel %vm1495_vm5, %v2017_v58, -inf }
 0x89f   : > { %2024 = vmax.xlane.f32.xlu1 %v2023_v61 }
 0x8c8   : > { %v5820_v63 = vpop.f32.mrb[24].mxu0 }
 0x8c9   : > { %v4227_v1 = vpop.f32.mrb[25].mxu0 }
 0x8ca   : > { %v5822_v2 = vpop.f32.mrb[26].mxu0 }
 0x8cb   : > { %v4416_v3 = vpack.i.bf16 %v5822_v2, %v5820_v63  ;;  %v4228_v4 = vpop.f32.mrb[27].mxu0 }
 0x8d0   : > { %v2005_v6 = vpop.f32.mrb[28].mxu0 }
 0x8d1   : > { %v2014_v8 = vmul.f32 0.17677669, %v2005_v6  ;;  %v4239_v10 = vpop.f32.mrb[29].mxu0 }
 0x8d2   : > { %v2008_v11 = vpop.f32.mrb[30].mxu0 }
 0x8d3   : > { %v2015_v12 = vmul.f32 0.17677669, %v2008_v11  ;;  %v4240_v13 = vpop.f32.mrb[31].mxu0  ;;  %v2018_v15 = vadd.f32 %v2014_v8, %v5720_v32 }
 0x8d5   : > { %v2026_v16 = vsel %vm1495_vm5, %v2018_v15, -inf  ;;  %v2019_v17 = vadd.f32 %v2015_v12, %v5722_v36 }
 0x8d6   : > { %2027 = vmax.xlane.f32.xlu0 %v2026_v16 }
 0x8d7   : > { %v2029_v18 = vsel %vm1495_vm5, %v2019_v17, -inf }
 0x8da   : > { %2030 = vmax.xlane.f32.xlu0 %v2029_v18 }
 0x92a   : > { %v2022_v20 = vpop.xlane.xlu0 %2021 }
 0x92b   : > { %v2032_v22 = vsub.f32 %v2016_v53, %v2022_v20 }
 0x92c   : > { %v2025_v23 = vpop.xlane.xlu1 %2024 }
 0x92d   : > { %v2036_v24 = vmul.f32 1.442695, %v2032_v22  ;;  %v2033_v25 = vsub.f32 %v2017_v58, %v2025_v23 }
 0x92f   : > { %4601 = vpow2.f32 %v2036_v24  ;;  %v2038_v26 = vmul.f32 1.442695, %v2033_v25 }
 0x931   : > { %4603 = vpow2.f32 %v2038_v26 }
 0x939   : > { %v4602_v27 = vpop.eup %4601 }
 0x93a   : > { %v2044_v30 = vsel %vm1495_vm5, %v4602_v27, 0.0 }
 0x93b   : > { %v4604_v31 = vpop.eup %4603  ;;  %2045 = vadd.xlane.f32.xlu0 %v2044_v30 }
 0x93c   : > { %v2047_v33 = vsel %vm1495_vm5, %v4604_v31, 0.0 }
 0x93d   : > { %2048 = vadd.xlane.f32.xlu1 %v2047_v33 }
 0x94e   : > { %2125 = vrot.lane.b32.xlu1 %v5696_v19, %s5061_s24 }
 0x952   : > { %2174 = vrot.lane.b32.xlu1 %v5692_v9, %s5062_s16 }
 0x963   : > { %v2028_v34 = vpop.xlane.xlu0 %2027 }
 0x964   : > { %v2034_v35 = vsub.f32 %v2018_v15, %v2028_v34 }
 0x966   : > { %v2040_v37 = vmul.f32 1.442695, %v2034_v35 }
 0x967   : > { %v2031_v38 = vpop.xlane.xlu0 %2030 }
 0x968   : > { %4605 = vpow2.f32 %v2040_v37  ;;  %v2035_v39 = vsub.f32 %v2019_v17, %v2031_v38 }
 0x96a   : > { %v2042_v40 = vmul.f32 1.442695, %v2035_v39 }
 0x96c   : > { %4607 = vpow2.f32 %v2042_v40 }
 0x972   : > { %v4606_v42 = vpop.eup %4605 }
 0x973   : > { %v2050_v45 = vsel %vm1495_vm5, %v4606_v42, 0.0 }
 0x974   : > { %2051 = vadd.xlane.f32.xlu0 %v2050_v45 }
 0x976   : > { %v4608_v46 = vpop.eup %4607 }
 0x977   : > { %v2053_v47 = vsel %vm1495_vm5, %v4608_v46, 0.0 }
 0x978   : > { %2054 = vadd.xlane.f32.xlu1 %v2053_v47 }
 0x989   : > { %2225 = vrot.lane.b32.xlu1 %v5705_v29, %s5062_s16 }
 0x98a   : > { %2078 = vrot.lane.b32.xlu0 %v5698_v21, %s5061_s24 }
 0x98d   : > { %2223 = vrot.lane.b32.xlu1 %v5702_v28, %s5062_s16 }
 0x98e   : > { %2172 = vrot.lane.b32.xlu0 %v5690_v7, %s5062_s16 }
 0x9c8   : > { %v2046_v49 = vpop.xlane.xlu0 %2045 }
 0x9ca   : > { %v2049_v9 = vpop.xlane.xlu1 %2048 }
 0x9cb   : > { %4609 = vrcp.f32 %v2049_v9 }
 0x9cc   : > { %4611 = vrcp.f32 %v2046_v49 }
 0x9ce   : > { %v2126_v48 = vpop.permute.xlu1 %2125 }
 0x9cf   : > { %4248 = vmatpush3.bf16.msra.mxu0 %v2126_v48 }
 0x9d0   : > { %4259 = vmatprep.subr.bf16.mxu0 %v5058_v52 }
 0x9d2   : > { %v2175_v28 = vpop.permute.xlu1 %2174 }
 0x9d3   : > { %v2180_v15 = vsel %vm1392_vm4, %v2175_v28, 0 }
 0x9d5   : > { %v4610_v50 = vpop.eup %4609 }
 0x9d6   : > { %v4612_v51 = vpop.eup %4611  ;;  %v2061_v29 = vmul.f32 %v4610_v50, %v2049_v9 }
 0x9d7   : > { %v2060_v53 = vmul.f32 %v4612_v51, %v2046_v49 }
 0x9d8   : > { %v2065_v56 = vsub.f32 2.0, %v2061_v29 }
 0x9d9   : > { %v2064_v58 = vsub.f32 2.0, %v2060_v53 }
 0x9da   : > { %v2069_v61 = vmul.f32 %v4610_v50, %v2065_v56 }
 0x9db   : > { %v2068_v1 = vmul.f32 %v4612_v51, %v2064_v58 }
 0x9dc   : > { %v2073_v7 = vmul.f32 %v4604_v31, %v2069_v61 }
 0x9dd   : > { %v2072_v6 = vmul.f32 %v4602_v27, %v2068_v1 }
 0x9df   : > { %v2076_v11 = vpack.c.bf16 %v2073_v7, %v2072_v6 }
 0xa01   : > { %v2052_v4 = vpop.xlane.xlu0 %2051 }
 0xa02   : > { %4613 = vrcp.f32 %v2052_v4 }
 0xa05   : > { %v2055_v8 = vpop.xlane.xlu1 %2054  ;;  %v2079_v10 = vpop.permute.xlu0 %2078 }
 0xa06   : > { %4615 = vrcp.f32 %v2055_v8  ;;  %4242 = vmatpush3.bf16.msra.mxu1 %v2079_v10 }
 0xa07   : > { %4253 = vmatprep.subr.bf16.mxu1 %v5058_v52 }
 0xa09   : > { %4244 = vmatmul.mubr.msk.bf16.vlgmr.msra.gmra.mrb[20].mxu1 %vm1495_vm5, %v2076_v11  ;;  %v2173_v24 = vpop.permute.xlu0 %2172  ;;  %v2226_v27 = vpop.permute.xlu1 %2225 }
 0xa0a   : > { %4255 = vmatprep.mubr.msk.bf16.mxu1 %vm5059_vm3, %v5058_v52  ;;  %v2231_v31 = vsel %vm1392_vm4, %v2226_v27, 0 }
 0xa0c   : > { %v4614_v12 = vpop.eup %4613 }
 0xa0d   : > { %v2062_v13 = vmul.f32 %v4614_v12, %v2052_v4  ;;  %v2224_v33 = vpop.permute.xlu1 %2223 }
 0xa0f   : > { %v2066_v16 = vsub.f32 2.0, %v2062_v13  ;;  %4254 = vmatpush3.bf16.xpose.msra.mxu1 %v2180_v15 }
 0xa10   : > { %v4616_v17 = vpop.eup %4615  ;;  %4265 = vmatprep.subr.bf16.mxu1 %v5058_v52 }
 0xa11   : > { %v2063_v18 = vmul.f32 %v4616_v17, %v2055_v8  ;;  %v2070_v20 = vmul.f32 %v4614_v12, %v2066_v16 }
 0xa13   : > { %v2067_v22 = vsub.f32 2.0, %v2063_v18  ;;  %v2074_v25 = vmul.f32 %v4606_v42, %v2070_v20 }
 0xa15   : > { %v2071_v23 = vmul.f32 %v4616_v17, %v2067_v22 }
 0xa16   : > { %4256 = vmatmul.mubr.msk.bf16.vlgmr.msra.gmra.mrb[24].mxu1 %vm1392_vm4, %v2173_v24 }
 0xa17   : > { %v2075_v26 = vmul.f32 %v4608_v46, %v2071_v23  ;;  %4267 = vmatprep.mubr.msk.bf16.mxu1 %vm5059_vm3, %v5058_v52 }
 0xa19   : > { %v2077_v30 = vpack.c.bf16 %v2075_v26, %v2074_v25 }
 0xa1b   : > { %4250 = vmatmul.mubr.msk.bf16.vlgmr.msra.gmra.mrb[32].mxu0 %vm1495_vm5, %v2077_v30 }
 0xa1c   : > { %4260 = vmatpush3.bf16.xpose.msra.mxu0 %v2231_v31  ;;  %4261 = vmatprep.mubr.msk.bf16.mxu0 %vm5059_vm3, %v5058_v52 }
 0xa1d   : > { %4271 = vmatprep.subr.bf16.mxu0 %v5058_v52 }
 0xa23   : > { %4262 = vmatmul.mubr.msk.bf16.vlgmr.msra.gmra.mrb[36].mxu0 %vm1392_vm4, %v2224_v33 }
 0xa24   : > { %4273 = vmatprep.mubr.msk.bf16.mxu0 %vm5059_vm3, %v5058_v52 }
 0xadc   : > { %v5864_v34 = vpop.f32.mrb[20].mxu1 }
 0xadd   : > { %v4245_v35 = vpop.f32.mrb[21].mxu1 }
 0xade   : > { %v5866_v37 = vpop.f32.mrb[22].mxu1 }
 0xadf   : > { %v4421_v38 = vpack.i.bf16 %v5866_v37, %v5864_v34  ;;  %v4246_v39 = vpop.f32.mrb[23].mxu1 }
 0xae9   : > { %v2216_v40 = vpop.f32.mrb[24].mxu1 }
 0xaea   : > { %v2274_v42 = vmul.f32 0.17677669, %v2216_v40  ;;  %v4257_v45 = vpop.f32.mrb[25].mxu1 }
 0xaeb   : > { %v2219_v46 = vpop.f32.mrb[26].mxu1 }
 0xaec   : > { %v2275_v47 = vmul.f32 0.17677669, %v2219_v46  ;;  %v4258_v9 = vpop.f32.mrb[27].mxu1  ;;  %v2278_v48 = vadd.f32 %v2274_v42, %v5720_v32 }
 0xaee   : > { %v2165_v49 = vpop.f32.mrb[32].mxu0  ;;  %v2282_v52 = vsel %vm1495_vm5, %v2278_v48, -inf  ;;  %v2279_v50 = vadd.f32 %v2275_v47, %v5722_v36 }
 0xaef   : > { %2283 = vmax.xlane.f32.xlu0 %v2282_v52  ;;  %v4251_v51 = vpop.f32.mrb[33].mxu0 }
 0xaf0   : > { %v2168_v29 = vpop.f32.mrb[34].mxu0  ;;  %v2285_v53 = vsel %vm1495_vm5, %v2279_v50, -inf }
 0xaf1   : > { %v4426_v56 = vpack.i.bf16 %v2168_v29, %v2165_v49  ;;  %2286 = vmax.xlane.f32.xlu1 %v2285_v53  ;;  %v4252_v58 = vpop.f32.mrb[35].mxu0 }
 0xaf6   : > { %v2267_v61 = vpop.f32.mrb[36].mxu0 }
 0xaf7   : > { %v2276_v1 = vmul.f32 0.17677669, %v2267_v61  ;;  %v4263_v28 = vpop.f32.mrb[37].mxu0 }
 0xaf8   : > { %v2270_v4 = vpop.f32.mrb[38].mxu0 }
 0xaf9   : > { %v2277_v7 = vmul.f32 0.17677669, %v2270_v4  ;;  %v4264_v6 = vpop.f32.mrb[39].mxu0  ;;  %v2280_v8 = vadd.f32 %v2276_v1, %v5720_v32  ;;  %v4473_v4 = vld [vmem:[%s5549_s23] sm:$0xff]  }
 0xafa   : > { %v4475_v6 = vld [vmem:[%s5549_s23 + $0x10] sm:$0xff]  }
 0xafb   : > { %v2288_v10 = vsel %vm1495_vm5, %v2280_v8, -inf  ;;  %v2281_v11 = vadd.f32 %v2277_v7, %v5722_v36  ;;  %v4474_v7 = vld [vmem:[%s5549_s23 + $0x8] sm:$0xff]  }
 0xafc   : > { %2289 = vmax.xlane.f32.xlu0 %v2288_v10  ;;  %v4477_v10 = vld [vmem:[%s5549_s23 + $0x20] sm:$0xff]  }
 0xafd   : > { %v2291_v12 = vsel %vm1495_vm5, %v2281_v11, -inf }
 0xb00   : > { %2292 = vmax.xlane.f32.xlu0 %v2291_v12  ;;  %v4479_v12 = vld [vmem:[%s5549_s23 + $0x30] sm:$0xff]  }
 0xb7c   : > { %v2284_v13 = vpop.xlane.xlu0 %2283 }
 0xb7d   : > { %v2294_v15 = vsub.f32 %v2278_v48, %v2284_v13 }
 0xb7e   : > { %v2287_v16 = vpop.xlane.xlu1 %2286 }
 0xb7f   : > { %v2298_v17 = vmul.f32 1.442695, %v2294_v15  ;;  %v2295_v18 = vsub.f32 %v2279_v50, %v2287_v16 }
 0xb81   : > { %4617 = vpow2.f32 %v2298_v17  ;;  %v2300_v20 = vmul.f32 1.442695, %v2295_v18 }
 0xb83   : > { %4619 = vpow2.f32 %v2300_v20  ;;  %v4480_v20 = vld [vmem:[%s5549_s23 + $0x38] sm:$0xff]  }
 0xb89   : > { %v2290_v22 = vpop.xlane.xlu0 %2289 }
 0xb8a   : > { %v2296_v23 = vsub.f32 %v2280_v8, %v2290_v22  ;;  %v4476_v8 = vld [vmem:[%s5549_s23 + $0x18] sm:$0xff]  }
 0xb8b   : > { %v4618_v24 = vpop.eup %4617 }
 0xb8c   : > { %v2302_v32 = vmul.f32 1.442695, %v2296_v23  ;;  %v2306_v25 = vsel %vm1495_vm5, %v4618_v24, 0.0 }
 0xb8d   : > { %v4620_v26 = vpop.eup %4619  ;;  %2307 = vadd.xlane.f32.xlu0 %v2306_v25  ;;  %v2293_v36 = vpop.xlane.xlu0 %2292 }
 0xb8e   : > { %4621 = vpow2.f32 %v2302_v32  ;;  %v2297_v27 = vsub.f32 %v2281_v11, %v2293_v36  ;;  %v2309_v30 = vsel %vm1495_vm5, %v4620_v26, 0.0  ;;  %v4478_v11 = vld [vmem:[%s5549_s23 + $0x28] sm:$0xff]  }
 0xb8f   : > { %2310 = vadd.xlane.f32.xlu1 %v2309_v30 }
 0xb90   : > { %v2304_v31 = vmul.f32 1.442695, %v2297_v27 }
 0xb92   : > { %4623 = vpow2.f32 %v2304_v31 }
 0xb98   : > { %v4622_v33 = vpop.eup %4621 }
 0xb99   : > { %v2312_v34 = vsel %vm1495_vm5, %v4622_v33, 0.0 }
 0xb9a   : > { %2313 = vadd.xlane.f32.xlu0 %v2312_v34 }
 0xb9c   : > { %v4624_v35 = vpop.eup %4623 }
 0xb9d   : > { %v2315_v37 = vsel %vm1495_vm5, %v4624_v35, 0.0 }
 0xb9e   : > { %2316 = vadd.xlane.f32.xlu1 %v2315_v37 }
 0xbaf   : > { %2387 = vrot.lane.b32.xlu1 %v5696_v19, %s5062_s16 }
 0xbb0   : > { %2340 = vrot.lane.b32.xlu0 %v5698_v21, %s5062_s16 }
 0xbb3   : > { %4412 = vrot.lane.b32.xlu1 %v4411_v44, %s5062_s16 }
 0xbb4   : > { %4422 = vrot.lane.b32.xlu0 %v4421_v38, %s5061_s24 }
 0xbb7   : > { %4417 = vrot.lane.b32.xlu1 %v4416_v3, %s5062_s16 }
 0xbbb   : > { %4427 = vrot.lane.b32.xlu1 %v4426_v56, %s5061_s24 }
 0xc1a   : > { %v2308_v39 = vpop.xlane.xlu0 %2307 }
 0xc1b   : > { %4625 = vrcp.f32 %v2308_v39 }
 0xc1c   : > { %v2311_v19 = vpop.xlane.xlu1 %2310 }
 0xc1d   : > { %4627 = vrcp.f32 %v2311_v19 }
 0xc25   : > { %v4626_v40 = vpop.eup %4625 }
 0xc26   : > { %v2322_v21 = vmul.f32 %v4626_v40, %v2308_v39 }
 0xc27   : > { %v4628_v42 = vpop.eup %4627  ;;  %v2314_v45 = vpop.xlane.xlu0 %2313 }
 0xc28   : > { %v2326_v46 = vsub.f32 2.0, %v2322_v21  ;;  %v2323_v41 = vmul.f32 %v4628_v42, %v2311_v19  ;;  %4629 = vrcp.f32 %v2314_v45 }
 0xc2a   : > { %v2330_v43 = vmul.f32 %v4626_v40, %v2326_v46  ;;  %v2327_v44 = vsub.f32 2.0, %v2323_v41 }
 0xc2b   : > { %v2317_v38 = vpop.xlane.xlu1 %2316  ;;  %v2341_v47 = vpop.permute.xlu0 %2340 }
 0xc2c   : > { %v2331_v9 = vmul.f32 %v4628_v42, %v2327_v44  ;;  %4631 = vrcp.f32 %v2317_v38  ;;  %4266 = vmatpush3.bf16.msra.mxu1 %v2341_v47  ;;  %v2334_v63 = vmul.f32 %v4618_v24, %v2330_v43 }
 0xc2d   : > { %4277 = vmatprep.subr.bf16.mxu1 %v4473_v4 }
 0xc2e   : > { %v2335_v2 = vmul.f32 %v4620_v26, %v2331_v9 }
 0xc2f   : > { %v2388_v3 = vpop.permute.xlu1 %2387  ;;  %v4423_v30 = vpop.permute.xlu0 %4422 }
 0xc30   : > { %v2338_v48 = vpack.c.bf16 %v2335_v2, %v2334_v63  ;;  %4272 = vmatpush3.bf16.msra.mxu0 %v2388_v3  ;;  %v4425_v34 = vunpack.i.h.bf16 %v4423_v30 }
 0xc32   : > { %v4630_v49 = vpop.eup %4629  ;;  %4268 = vmatmul.mubr.msk.bf16.vlgmr.msra.gmra.mrb[28].mxu1 %vm1495_vm5, %v2338_v48 }
 0xc33   : > { %v2324_v52 = vmul.f32 %v4630_v49, %v2314_v45  ;;  %4278 = vmatpush3.bf16.msra.mxu1 %v4473_v4  ;;  %v4413_v26 = vpop.permute.xlu1 %4412 }
 0xc34   : > { %4279 = vmatprep.subr.bf16.mxu1 %v4474_v7  ;;  %v4415_v36 = vunpack.i.h.bf16 %v4413_v26  ;;  %v4414_v27 = vunpack.i.l.bf16 %v4413_v26 }
 0xc35   : > { %v2328_v50 = vsub.f32 2.0, %v2324_v52 }
 0xc36   : > { %v4632_v51 = vpop.eup %4631  ;;  %v2483_v31 = vsel %vm1392_vm4, %v5762_v62, %v4415_v36 }
 0xc37   : > { %v2325_v29 = vmul.f32 %v4632_v51, %v2317_v38  ;;  %v2332_v53 = vmul.f32 %v4630_v49, %v2328_v50  ;;  %4280 = vmatpush3.bf16.msra.mxu1 %v4474_v7  ;;  %v2488_v21 = vsel %vm2486_vm6, %v2483_v31, %v4425_v34  ;;  %v4418_v46 = vpop.permute.xlu1 %4417  ;;  %v4706_v7 = vld [vmem:[#allocation2 + $0x8] sm:$0xff] }
 0xc38   : > { %4281 = vmatprep.subr.bf16.mxu1 %v4475_v6  ;;  %v4419_v43 = vunpack.i.l.bf16 %v4418_v46 }
 0xc39   : > { %v2329_v56 = vsub.f32 2.0, %v2325_v29  ;;  %v2336_v61 = vmul.f32 %v4622_v33, %v2332_v53  ;;  %v2482_v33 = vsel %vm1392_vm4, %v5760_v60, %v4414_v27  ;;  %v4420_v60 = vunpack.i.h.bf16 %v4418_v46  ;;  %v4498_v46 = vld [vmem:[%s5551_s1 + $0x4c] ss:$16 sps:$4 sm:$0xff]  }
 0xc3a   : > { %v2484_v63 = vsel %vm1392_vm4, %v5764_v0, %v4419_v43  ;;  %v4504_v43 = vld [vmem:[%s5551_s1 + $0x6c] ss:$16 sps:$4 sm:$0xff]  }
 0xc3b   : > { %v2333_v58 = vmul.f32 %v4632_v51, %v2329_v56  ;;  %4282 = vmatpush3.bf16.msra.mxu1 %v4475_v6  ;;  %v4428_v41 = vpop.permute.xlu1 %4427  ;;  %v2485_v9 = vsel %vm1392_vm4, %v5766_v5, %v4420_v60  ;;  %v3951_v5 = vld [vmem:[%s6283_s28] ss:$0 sm:$0xff]  ;;  %v4501_v60 = vld [vmem:[%s5551_s1 + $0x64] ss:$16 sps:$4 sm:$0xff]  }
 0xc3c   : > { %4283 = vmatprep.subr.bf16.mxu1 %v4476_v8  ;;  %v4430_v44 = vunpack.i.h.bf16 %v4428_v41  ;;  %v4429_v38 = vunpack.i.l.bf16 %v4428_v41  ;;  %v4496_v41 = vld [vmem:[%s5551_s1 + $0x48] ss:$16 sps:$4 sm:$0xff]  }
 0xc3d   : > { %v2337_v1 = vmul.f32 %v4624_v35, %v2333_v58  ;;  %v4424_v35 = vunpack.i.l.bf16 %v4423_v30 }
 0xc3e   : > { %v2489_v48 = vsel %vm2486_vm6, %v2484_v63, %v4429_v38  ;;  %v2490_v49 = vsel %vm2486_vm6, %v2485_v9, %v4430_v44  ;;  %v4499_v44 = vld [vmem:[%s5551_s1 + $0x60] ss:$16 sps:$4 sm:$0xff]   ;;  %v4502_v38 = vld [vmem:[%s5551_s1 + $0x68] ss:$16 sps:$4 sm:$0xff]   ;;  %v4510_v9 = vld [vmem:[%s5551_s1 + $0x8c] ss:$16 sps:$4 sm:$0xff]  }
 0xc3f   : > { %v2339_v28 = vpack.c.bf16 %v2337_v1, %v2336_v61  ;;  %4284 = vmatpush3.bf16.msra.mxu1 %v4476_v8  ;;  %v2487_v40 = vsel %vm2486_vm6, %v2482_v33, %v4424_v35  ;;  %v4705_v1 = vld [vmem:[#allocation2] sm:$0xff]  ;;  %v4707_v8 = vld [vmem:[#allocation2 + $0x10] sm:$0xff] }
 0xc40   : > { %4285 = vmatprep.subr.bf16.mxu1 %v4477_v10  ;;  %v4505_v63 = vld [vmem:[%s5551_s1 + $0x80] ss:$16 sps:$4 sm:$0xff]  }
 0xc41   : > { %4274 = vmatmul.mubr.msk.bf16.vlgmr.msra.gmra.mrb[40].mxu0 %vm1495_vm5, %v2339_v28 }
 0xc42   : > { %2936 = vmatprep.mubr.bf16.mxu0 %v5057_v14 }
 0xc43   : > { %4286 = vmatpush3.bf16.msra.mxu1 %v4477_v10 }
 0xc44   : > { %4287 = vmatprep.subr.bf16.mxu1 %v4478_v11 }
 0xc47   : > { %4288 = vmatpush3.bf16.msra.mxu1 %v4478_v11 }
 0xc48   : > { %4289 = vmatprep.subr.bf16.mxu1 %v4479_v12 }
 0xc4b   : > { %4290 = vmatpush3.bf16.msra.mxu1 %v4479_v12  ;;  %v4708_v12 = vld [vmem:[#allocation2 + $0x18] sm:$0xff] }
 0xc4c   : > { %4291 = vmatprep.subr.bf16.mxu1 %v4480_v20 }
 0xc4f   : > { %4292 = vmatpush3.bf16.msra.mxu1 %v4480_v20  ;;  %v4489_v20 = vld [vmem:[%s5551_s1 + $0x24] ss:$16 sps:$4 sm:$0xff]  }
 0xd05   : > { %v2380_v13 = vpop.f32.mrb[28].mxu1 }
 0xd06   : > { %v4269_v15 = vpop.f32.mrb[29].mxu1 }
 0xd07   : > { %v2383_v16 = vpop.f32.mrb[30].mxu1  ;;  %v4481_v15 = vld [vmem:[%s5551_s1] ss:$16 sps:$4 sm:$0xff]  }
 0xd08   : > { %v4431_v17 = vpack.i.bf16 %v2383_v16, %v2380_v13  ;;  %v4270_v18 = vpop.f32.mrb[31].mxu1  ;;  %v4483_v16 = vld [vmem:[%s5551_s1 + $0x4] ss:$16 sps:$4 sm:$0xff]  }
 0xd09   : > { %v4486_v18 = vld [vmem:[%s5551_s1 + $0xc] ss:$16 sps:$4 sm:$0xff]   ;;  %2904 = vmatprep.subr.bf16.mxu0 %v4483_v16 }
 0xd0a   : > { %4432 = vrot.lane.b32.xlu0 %v4431_v17, %s5060_s10  ;;  %v4484_v17 = vld [vmem:[%s5551_s1 + $0x8] ss:$16 sps:$4 sm:$0xff]   ;;  %2957 = vmatprep.subr.bf16.mxu1 %v4486_v18 }
 0xd0b   : > { %2905 = vmatpush1.bf16.msra.mxu0 %v4481_v15 }
 0xd0c   : > { %2906 = vmatprep.subr.bf16.mxu0 %v4489_v20 }
 0xd14   : > { %v2427_v22 = vpop.f32.mrb[40].mxu0 }
 0xd15   : > { %v4275_v23 = vpop.f32.mrb[41].mxu0 }
 0xd16   : > { %v2430_v24 = vpop.f32.mrb[42].mxu0  ;;  %v4487_v23 = vld [vmem:[%s5551_s1 + $0x20] ss:$16 sps:$4 sm:$0xff]  }
 0xd17   : > { %v4436_v32 = vpack.i.bf16 %v2430_v24, %v2427_v22  ;;  %v4276_v25 = vpop.f32.mrb[43].mxu0  ;;  %v4492_v22 = vld [vmem:[%s5551_s1 + $0x2c] ss:$16 sps:$4 sm:$0xff]   ;;  %v4490_v24 = vld [vmem:[%s5551_s1 + $0x28] ss:$16 sps:$4 sm:$0xff]   ;;  %2907 = vmatpush1.bf16.msra.mxu0 %v4487_v23 }
 0xd18   : > { %v3960_v23 = vld [vmem:[%s812_s15] ss:$0 sm:$0xff] }
 0xd19   : > { %4437 = vrot.lane.b32.xlu1 %v4436_v32, %s5060_s10 }
 0xd7c   : > { %v4433_v37 = vpop.permute.xlu0 %4432 }
 0xd7d   : > { %v4435_v39 = vunpack.i.h.bf16 %v4433_v37  ;;  %v4434_v19 = vunpack.i.l.bf16 %v4433_v37 }
 0xd7f   : > { %v2492_v42 = vsel %vm2491_vm7, %v2487_v40, %v4434_v19  ;;  %v2493_v45 = vsel %vm2491_vm7, %v2488_v21, %v4435_v39 }
 0xd80   : > { %v2496_v62 = vpack.c.bf16 %v2493_v45, %v2492_v42  ;;  %v4495_v45 = vld [vmem:[%s5551_s1 + $0x44] ss:$16 sps:$4 sm:$0xff]  }
 0xd81   : > { %2908 = vmatprep.subr.bf16.mxu0 %v4495_v45 }
 0xd82   : > { %4293 = vmatprep.mubr.bf16.mxu1 %v2496_v62  ;;  %v4493_v62 = vld [vmem:[%s5551_s1 + $0x40] ss:$16 sps:$4 sm:$0xff]  }
 0xd83   : > { %2909 = vmatpush1.bf16.msra.mxu0 %v4493_v62  ;;  %v4529_v62 = vld [vmem:[%s5553_s3 + $0x40] sm:$0xff]  }
 0xd84   : > { %2910 = vmatprep.subr.bf16.mxu0 %v4501_v60  ;;  %v4532_v60 = vld [vmem:[%s5553_s3 + $0x80] sm:$0xff]  }
 0xd87   : > { %2911 = vmatpush1.bf16.msra.mxu0 %v4499_v44  ;;  %v4535_v44 = vld [vmem:[%s5553_s3 + $0x8] sm:$0xff]  }
 0xd8b   : > { %v4438_v47 = vpop.permute.xlu1 %4437 }
 0xd8c   : > { %v4440_v2 = vunpack.i.h.bf16 %v4438_v47  ;;  %v4439_v3 = vunpack.i.l.bf16 %v4438_v47  ;;  %v4507_v47 = vld [vmem:[%s5551_s1 + $0x84] ss:$16 sps:$4 sm:$0xff]  }
 0xd8d   : > { %2912 = vmatprep.subr.bf16.mxu0 %v4507_v47  ;;  %v4537_v47 = vld [vmem:[%s5553_s3 + $0x50] sm:$0xff]  }
 0xd8e   : > { %v2495_v52 = vsel %vm2491_vm7, %v2490_v49, %v4440_v2  ;;  %v2494_v50 = vsel %vm2491_vm7, %v2489_v48, %v4439_v3  ;;  %v4508_v2 = vld [vmem:[%s5551_s1 + $0x88] ss:$16 sps:$4 sm:$0xff]   ;;  %2913 = vmatpush1.bf16.msra.mxu0 %v4505_v63  ;;  %v4513_v3 = vld [vmem:[%s5551_s1 + $0xa4] ss:$16 sps:$4 sm:$0xff]   ;;  %v4516_v48 = vld [vmem:[%s5551_s1 + $0xac] ss:$16 sps:$4 sm:$0xff]  }
 0xd8f   : > { %v2497_v51 = vpack.c.bf16 %v2495_v52, %v2494_v50  ;;  %v4511_v49 = vld [vmem:[%s5551_s1 + $0xa0] ss:$16 sps:$4 sm:$0xff]   ;;  %v4514_v52 = vld [vmem:[%s5551_s1 + $0xa8] ss:$16 sps:$4 sm:$0xff]   ;;  %2914 = vmatprep.subr.bf16.mxu0 %v4513_v3  ;;  %v4519_v50 = vld [vmem:[%s5551_s1 + $0xc4] ss:$16 sps:$4 sm:$0xff]  }
 0xd90   : > { %v4539_v63 = vld [vmem:[%s5553_s3 + $0x10] sm:$0xff]   ;;  %v4541_v3 = vld [vmem:[%s5553_s3 + $0x58] sm:$0xff]  }
 0xd91   : > { %4294 = vmatmul.mubr.bf16.vlgmr.msra.gmra.mrb[32].mxu1 %v2497_v51  ;;  %v4522_v51 = vld [vmem:[%s5551_s1 + $0xcc] ss:$16 sps:$4 sm:$0xff]  }
 0xd92   : > { %2989 = vmatprep.mubr.bf16.mxu1 %v5057_v14  ;;  %2958 = vmatpush1.bf16.msra.mxu1 %v4484_v17 }
 0xd93   : > { %2959 = vmatprep.subr.bf16.mxu1 %v4492_v22  ;;  %2915 = vmatpush1.bf16.msra.mxu0 %v4511_v49  ;;  %v4543_v49 = vld [vmem:[%s5553_s3 + $0x18] sm:$0xff]  }
 0xd94   : > { %2916 = vmatprep.subr.bf16.mxu0 %v4519_v50  ;;  %v4545_v50 = vld [vmem:[%s5553_s3 + $0x60] sm:$0xff]  }
 0xd96   : > { %2960 = vmatpush1.bf16.msra.mxu1 %v4490_v24 }
 0xd97   : > { %2961 = vmatprep.subr.bf16.mxu1 %v4498_v46 }
 0xd9a   : > { %2962 = vmatpush1.bf16.msra.mxu1 %v4496_v41  ;;  %v4531_v41 = vld [vmem:[%s5553_s3] sm:$0xff]  }
 0xd9b   : > { %2963 = vmatprep.subr.bf16.mxu1 %v4504_v43  ;;  %v4534_v43 = vld [vmem:[%s5553_s3 + $0xc8] sm:$0xff]  }
 0xd9e   : > { %2964 = vmatpush1.bf16.msra.mxu1 %v4502_v38  ;;  %v4536_v38 = vld [vmem:[%s5553_s3 + $0x88] sm:$0xff]  }
 0xd9f   : > { %2965 = vmatprep.subr.bf16.mxu1 %v4510_v9  ;;  %v4538_v9 = vld [vmem:[%s5553_s3 + $0xd0] sm:$0xff]  }
 0xda2   : > { %2966 = vmatpush1.bf16.msra.mxu1 %v4508_v2  ;;  %v4540_v2 = vld [vmem:[%s5553_s3 + $0x90] sm:$0xff]  }
 0xda3   : > { %2967 = vmatprep.subr.bf16.mxu1 %v4516_v48  ;;  %v4542_v48 = vld [vmem:[%s5553_s3 + $0xd8] sm:$0xff]  }
 0xda6   : > { %2968 = vmatpush1.bf16.msra.mxu1 %v4514_v52  ;;  %v4544_v52 = vld [vmem:[%s5553_s3 + $0x98] sm:$0xff]  }
 0xda7   : > { %2969 = vmatprep.subr.bf16.mxu1 %v4522_v51  ;;  %v4546_v51 = vld [vmem:[%s5553_s3 + $0xe0] sm:$0xff]  }
 0xe64   : > { %v4295_v0 = vpop.f32.mrb[32].mxu1 }
 0xe65   : > { %v2603_v29 = vpop.f32.mrb[33].mxu1  ;;  %v2612_v61 = vadd.f32 %v4295_v0, %v3951_v5  ;;  %v4520_v0 = vld [vmem:[%s5551_s1 + $0xc8] ss:$16 sps:$4 sm:$0xff]  }
 0xe66   : > { %v2604_v53 = vadd.f32 %v3951_v5, %v2603_v29  ;;  %v4296_v56 = vpop.f32.mrb[34].mxu1  ;;  %v4525_v29 = vld [vmem:[%s5551_s1 + $0xe4] ss:$16 sps:$4 sm:$0xff]   ;;  %2970 = vmatpush1.bf16.msra.mxu1 %v4520_v0 }
 0xe67   : > { %v2606_v58 = vpop.f32.mrb[35].mxu1  ;;  %v5936_v10 = vadd.f32 %v4707_v8, %v2612_v61  ;;  %v2615_v11 = vadd.f32 %v4296_v56, %v3951_v5  ;;  %v4523_v56 = vld [vmem:[%s5551_s1 + $0xe0] ss:$16 sps:$4 sm:$0xff]  }
 0xe68   : > { %v5931_v28 = vadd.f32 %v4705_v1, %v2604_v53  ;;  %v2607_v4 = vadd.f32 %v3951_v5, %v2606_v58  ;;  %v4517_v5 = vld [vmem:[%s5551_s1 + $0xc0] ss:$16 sps:$4 sm:$0xff]   ;;  %v4528_v53 = vld [vmem:[%s5551_s1 + $0xec] ss:$16 sps:$4 sm:$0xff]   ;;  %v4526_v58 = vld [vmem:[%s5551_s1 + $0xe8] ss:$16 sps:$4 sm:$0xff]  }
 0xe69   : > { %v5940_v13 = vadd.f32 %v4708_v12, %v2615_v11  ;;  %2917 = vmatpush1.bf16.msra.mxu0 %v4517_v5  ;;  %2971 = vmatprep.subr.bf16.mxu1 %v4528_v53  ;;  %v4547_v5 = vld [vmem:[%s5553_s3 + $0x20] sm:$0xff]   ;;  %v4550_v53 = vld [vmem:[%s5553_s3 + $0xe8] sm:$0xff]  }
 0xe6a   : > { %v5933_v6 = vadd.f32 %v4706_v7, %v2607_v4  ;;  %2624 = vadd.xlane.f32.xlu0 %v5931_v28  ;;  %2918 = vmatprep.subr.bf16.mxu0 %v4525_v29  ;;  %v4548_v0 = vld [vmem:[%s5553_s3 + $0xa0] sm:$0xff]   ;;  %v4549_v29 = vld [vmem:[%s5553_s3 + $0x68] sm:$0xff]  }
 0xe6b   : > { %2972 = vmatpush1.bf16.msra.mxu1 %v4526_v58  ;;  %v4552_v58 = vld [vmem:[%s5553_s3 + $0xa8] sm:$0xff]  }
 0xe6c   : > { %2626 = vadd.xlane.f32.xlu1 %v5933_v6 }
 0xe6d   : > { %2919 = vmatpush1.bf16.msra.mxu0 %v4523_v56  ;;  %v4551_v56 = vld [vmem:[%s5553_s3 + $0x28] sm:$0xff]  }
 0xe6e   : > { %2628 = vadd.xlane.f32.xlu0 %v5936_v10  ;;  %4105 = vmatprep.subr.bf16.mxu0 %v4529_v62 }
 0xe72   : > { %2630 = vadd.xlane.f32.xlu0 %v5940_v13 }
 0xef7   : > { %v2625_v32 = vpop.xlane.xlu0 %2624 }
 0xef8   : > { %v2632_v25 = vmul.f32 0.0078125, %v2625_v32 }
 0xef9   : > { %v2627_v26 = vpop.xlane.xlu1 %2626 }
 0xefa   : > { %v5952_v36 = vsub.f32 %v5931_v28, %v2632_v25  ;;  %v2633_v27 = vmul.f32 0.0078125, %v2627_v26 }
 0xefb   : > { %v2629_v30 = vpop.xlane.xlu0 %2628 }
 0xefc   : > { %v5955_v31 = vsub.f32 %v5933_v6, %v2633_v27  ;;  %v2634_v33 = vmul.f32 0.0078125, %v2629_v30  ;;  %v2640_v34 = vmul.f32 %v5952_v36, %v5952_v36  ;;  %v3961_v30 = vld [vmem:[%s815_s12] ss:$0 sm:$0xff] }
 0xefe   : > { %v5960_v35 = vsub.f32 %v5936_v10, %v2634_v33  ;;  %2644 = vadd.xlane.f32.xlu0 %v2640_v34  ;;  %v2641_v37 = vmul.f32 %v5955_v31, %v5955_v31 }
 0xeff   : > { %v2631_v39 = vpop.xlane.xlu0 %2630 }
 0xf00   : > { %v2635_v19 = vmul.f32 0.0078125, %v2631_v39  ;;  %2646 = vadd.xlane.f32.xlu1 %v2641_v37  ;;  %v2642_v40 = vmul.f32 %v5960_v35, %v5960_v35 }
 0xf02   : > { %v5967_v21 = vsub.f32 %v5940_v13, %v2635_v19  ;;  %2648 = vadd.xlane.f32.xlu0 %v2642_v40 }
 0xf04   : > { %v2643_v42 = vmul.f32 %v5967_v21, %v5967_v21 }
 0xf06   : > { %2650 = vadd.xlane.f32.xlu1 %v2643_v42 }
 0xf8b   : > { %v2645_v61 = vpop.xlane.xlu0 %2644 }
 0xf8c   : > { %v2652_v1 = vmul.f32 0.0078125, %v2645_v61  ;;  %v4553_v61 = vld [vmem:[%s5553_s3 + $0x70] sm:$0xff]  }
 0xf8d   : > { %v2647_v4 = vpop.xlane.xlu1 %2646 }
 0xf8e   : > { %v2656_v7 = vadd.f32 1e-05, %v2652_v1  ;;  %v2653_v8 = vmul.f32 0.0078125, %v2647_v4  ;;  %v4554_v1 = vld [vmem:[%s5553_s3 + $0xf0] sm:$0xff]  }
 0xf8f   : > { %v2649_v11 = vpop.xlane.xlu0 %2648  ;;  %v4555_v4 = vld [vmem:[%s5553_s3 + $0x30] sm:$0xff]  }
 0xf90   : > { %4633 = vrsqrt.f32 %v2656_v7  ;;  %v2657_v12 = vadd.f32 1e-05, %v2653_v8  ;;  %v2654_v15 = vmul.f32 0.0078125, %v2649_v11  ;;  %v4556_v7 = vld [vmem:[%s5553_s3 + $0xb0] sm:$0xff]   ;;  %v4557_v8 = vld [vmem:[%s5553_s3 + $0x78] sm:$0xff]  }
 0xf91   : > { %v4558_v11 = vld [vmem:[%s5553_s3 + $0xf8] sm:$0xff]  }
 0xf92   : > { %4635 = vrsqrt.f32 %v2657_v12  ;;  %v2658_v16 = vadd.f32 1e-05, %v2654_v15  ;;  %v4559_v12 = vld [vmem:[%s5553_s3 + $0x38] sm:$0xff]  }
 0xf93   : > { %v2651_v17 = vpop.xlane.xlu1 %2650  ;;  %v4560_v15 = vld [vmem:[%s5553_s3 + $0xb8] sm:$0xff]  }
 0xf94   : > { %4637 = vrsqrt.f32 %v2658_v16  ;;  %v2655_v18 = vmul.f32 0.0078125, %v2651_v17  ;;  %v2722_v16 = vld [vmem:[%s5540_s11] sm:$0xf]  ;;  %v2738_v17 = vsub.s32 3, %v5678_v54 }
 0xf96   : > { %v2659_v20 = vadd.f32 1e-05, %v2655_v18  ;;  %v2727_v18 = vrot.slane %v2722_v16, %v1141_v55 }
 0xf98   : > { %4639 = vrsqrt.f32 %v2659_v20  ;;  %v6049_v20 = vrot.slane %v2722_v16, %v1149_v59 }
 0xf9a   : > { %v4634_v22 = vpop.eup %4633 }
 0xf9b   : > { %v2664_v24 = vmul.f32 %v4634_v22, %v5952_v36  ;;  %v6053_v22 = vrot.slane %v2722_v16, %v1145_v57 }
 0xf9c   : > { %v4636_v32 = vpop.eup %4635 }
 0xf9d   : > { %v2665_v25 = vmul.f32 %v4636_v32, %v5955_v31  ;;  %v2674_v26 = vmul.f32 %v3960_v23, %v2664_v24 }
 0xf9e   : > { %v4638_v27 = vpop.eup %4637 }
 0xf9f   : > { %v2675_v33 = vmul.f32 %v3960_v23, %v2665_v25  ;;  %v2684_v34 = vadd.f32 %v3961_v30, %v2674_v26  ;;  %v2666_v39 = vmul.f32 %v4638_v27, %v5960_v35 }
 0xfa1   : > { %v2685_v37 = vadd.f32 %v3961_v30, %v2675_v33  ;;  %v2676_v40 = vmul.f32 %v3960_v23, %v2666_v39 }
 0xfa2   : > { %v4640_v19 = vpop.eup %4639 }
 0xfa3   : > { %v2688_v36 = vpack.c.bf16 %v2685_v37, %v2684_v34  ;;  %v2667_v31 = vmul.f32 %v4640_v19, %v5967_v21  ;;  %v2686_v35 = vadd.f32 %v3961_v30, %v2676_v40  ;;  %v4530_v21 = vld [vmem:[%s5553_s3 + $0xc0] sm:$0xff]  }
 0xfa4   : > { %4133 = vmatprep.subr.bf16.mxu1 %v4530_v21 }
 0xfa5   : > { %2937 = vmatmul.mubr.bf16.vlgmr.msra.gmra.mrb[44].mxu0 %v2688_v36  ;;  %2990 = vmatmul.mubr.bf16.vlgmr.msra.gmra.mrb[36].mxu1 %v2688_v36  ;;  %v2677_v42 = vmul.f32 %v3960_v23, %v2667_v31  ;;  %v6055_v23 = vrot.slane %v2722_v16, %v2738_v17 }
 0xfa6   : > { %2946 = vmatprep.mubr.bf16.mxu0 %v5057_v14  ;;  %2999 = vmatprep.mubr.bf16.mxu1 %v5057_v14  ;;  %v4533_v14 = vld [vmem:[%s5553_s3 + $0x48] sm:$0xff]   ;;  %s6287_s3 = sld [smem:[#allocation39_spill]] (!%p4043_p11) }
 0xfa7   : > { %v2687_v45 = vadd.f32 %v3961_v30, %v2677_v42  ;;  %4106 = vmatpush3.bf16.msra.mxu0 %v4531_v41  ;;  %4134 = vmatpush3.bf16.msra.mxu1 %v4532_v60 }
 0xfa8   : > { %4107 = vmatprep.subr.bf16.mxu0 %v4533_v14  ;;  %4135 = vmatprep.subr.bf16.mxu1 %v4534_v43 }
 0xfa9   : > { %v2689_v46 = vpack.c.bf16 %v2687_v45, %v2686_v35 }
 0xfab   : > { %4108 = vmatpush3.bf16.msra.mxu0 %v4535_v44  ;;  %4136 = vmatpush3.bf16.msra.mxu1 %v4536_v38 }
 0xfac   : > { %4109 = vmatprep.subr.bf16.mxu0 %v4537_v47  ;;  %4137 = vmatprep.subr.bf16.mxu1 %v4538_v9 }
 0xfad   : > { %2947 = vmatmul.mubr.bf16.gmra.mrb[48].mxu0 %v2689_v46  ;;  %3000 = vmatmul.mubr.bf16.gmra.mrb[40].mxu1 %v2689_v46 }
 0xfaf   : > { %4110 = vmatpush3.bf16.msra.mxu0 %v4539_v63  ;;  %4138 = vmatpush3.bf16.msra.mxu1 %v4540_v2 }
 0xfb0   : > { %4111 = vmatprep.subr.bf16.mxu0 %v4541_v3  ;;  %4139 = vmatprep.subr.bf16.mxu1 %v4542_v48 }
 0xfb3   : > { %4112 = vmatpush3.bf16.msra.mxu0 %v4543_v49  ;;  %4140 = vmatpush3.bf16.msra.mxu1 %v4544_v52 }
 0xfb4   : > { %4113 = vmatprep.subr.bf16.mxu0 %v4545_v50  ;;  %4141 = vmatprep.subr.bf16.mxu1 %v4546_v51 }
 0xfb7   : > { %4114 = vmatpush3.bf16.msra.mxu0 %v4547_v5  ;;  %4142 = vmatpush3.bf16.msra.mxu1 %v4548_v0 }
 0xfb8   : > { %4115 = vmatprep.subr.bf16.mxu0 %v4549_v29  ;;  %4143 = vmatprep.subr.bf16.mxu1 %v4550_v53 }
 0xfbb   : > { %4116 = vmatpush3.bf16.msra.mxu0 %v4551_v56  ;;  %4144 = vmatpush3.bf16.msra.mxu1 %v4552_v58 }
 0xfbc   : > { %4117 = vmatprep.subr.bf16.mxu0 %v4553_v61  ;;  %4145 = vmatprep.subr.bf16.mxu1 %v4554_v1 }
 0xfbf   : > { %4118 = vmatpush3.bf16.msra.mxu0 %v4555_v4  ;;  %4146 = vmatpush3.bf16.msra.mxu1 %v4556_v7 }
 0xfc0   : > { %4119 = vmatprep.subr.bf16.mxu0 %v4557_v8  ;;  %4147 = vmatprep.subr.bf16.mxu1 %v4558_v11 }
 0xfc3   : > { %4120 = vmatpush3.bf16.msra.mxu0 %v4559_v12  ;;  %4148 = vmatpush3.bf16.msra.mxu1 %v4560_v15 }
0x1078   : > { %v2938_v24 = vpop.f32.mrb[44].mxu0  ;;  %v2991_v32 = vpop.f32.mrb[36].mxu1 }
0x1079   : > { %v6057_v25 = vadd.f32 %v2938_v24, %v2727_v18  ;;  %v6060_v26 = vadd.f32 %v2991_v32, %v6049_v20  ;;  %v2940_v27 = vpop.f32.mrb[45].mxu0  ;;  %v2993_v30 = vpop.f32.mrb[37].mxu1 }
0x107a   : > { %v6063_v55 = vadd.f32 %v2940_v27, %v6053_v22  ;;  %v6066_v59 = vadd.f32 %v2993_v30, %v6055_v23  ;;  %v2942_v54 = vpop.f32.mrb[46].mxu0  ;;  %v2995_v57 = vpop.f32.mrb[38].mxu1 }
0x107b   : > { %v3994_v33 = vmul.f32 -1.702, %v6057_v25  ;;  %v3996_v34 = vmul.f32 -1.702, %v6060_v26  ;;  %v6070_v37 = vadd.f32 %v2942_v54, %v2727_v18  ;;  %v6073_v39 = vadd.f32 %v2995_v57, %v6049_v20  ;;  %v2944_v19 = vpop.f32.mrb[47].mxu0  ;;  %v2997_v36 = vpop.f32.mrb[39].mxu1 }
0x107c   : > { %v3995_v31 = vmul.f32 -1.702, %v6063_v55  ;;  %v3997_v40 = vmul.f32 -1.702, %v6066_v59  ;;  %v6078_v42 = vadd.f32 %v2944_v19, %v6053_v22  ;;  %v6081_v45 = vadd.f32 %v2997_v36, %v6055_v23 }
0x107d   : > { %v3042_v35 = vmul.f32 1.442695, %v3994_v33  ;;  %v3046_v46 = vmul.f32 1.442695, %v3996_v34  ;;  %v3998_v62 = vmul.f32 -1.702, %v6070_v37 }
0x107e   : > { %v3044_v21 = vmul.f32 1.442695, %v3995_v31  ;;  %v3048_v41 = vmul.f32 1.442695, %v3997_v40  ;;  %v4000_v60 = vmul.f32 -1.702, %v6073_v39 }
0x107f   : > { %4641 = vpow2.f32 %v3042_v35  ;;  %v3050_v14 = vmul.f32 1.442695, %v3998_v62  ;;  %v3999_v43 = vmul.f32 -1.702, %v6078_v42  ;;  %v4001_v44 = vmul.f32 -1.702, %v6081_v45 }
0x1080   : > { %4643 = vpow2.f32 %v3046_v46  ;;  %v3054_v38 = vmul.f32 1.442695, %v4000_v60  ;;  %v2948_v47 = vpop.f32.mrb[48].mxu0  ;;  %v3001_v9 = vpop.f32.mrb[40].mxu1 }
0x1081   : > { %4645 = vpow2.f32 %v3044_v21  ;;  %v3052_v63 = vmul.f32 1.442695, %v3999_v43  ;;  %v6087_v2 = vadd.f32 %v2948_v47, %v2727_v18  ;;  %v2950_v3 = vpop.f32.mrb[49].mxu0  ;;  %v3003_v48 = vpop.f32.mrb[41].mxu1  ;;  %v3056_v49 = vmul.f32 1.442695, %v4001_v44 }
0x1082   : > { %4647 = vpow2.f32 %v3048_v41  ;;  %v6090_v52 = vadd.f32 %v3001_v9, %v6049_v20  ;;  %v6093_v50 = vadd.f32 %v2950_v3, %v6053_v22  ;;  %v2952_v51 = vpop.f32.mrb[50].mxu0  ;;  %v3005_v5 = vpop.f32.mrb[42].mxu1  ;;  %v6102_v12 = vadd.f32 %v3003_v48, %v6055_v23 }
0x1083   : > { %4649 = vpow2.f32 %v3050_v14  ;;  %v4002_v0 = vmul.f32 -1.702, %v6087_v2  ;;  %v6096_v29 = vadd.f32 %v2952_v51, %v2727_v18  ;;  %v2954_v53 = vpop.f32.mrb[51].mxu0  ;;  %v3007_v56 = vpop.f32.mrb[43].mxu1  ;;  %v6106_v33 = vadd.f32 %v3005_v5, %v6049_v20 }
0x1084   : > { %4651 = vpow2.f32 %v3054_v38  ;;  %v4004_v58 = vmul.f32 -1.702, %v6090_v52  ;;  %v4003_v61 = vmul.f32 -1.702, %v6093_v50  ;;  %v4005_v30 = vmul.f32 -1.702, %v6102_v12 }
0x1085   : > { %4653 = vpow2.f32 %v3052_v63  ;;  %v3058_v1 = vmul.f32 1.442695, %v4002_v0  ;;  %v4006_v4 = vmul.f32 -1.702, %v6096_v29  ;;  %v6109_v36 = vadd.f32 %v2954_v53, %v6053_v22 }
0x1086   : > { %4655 = vpow2.f32 %v3056_v49  ;;  %v3062_v7 = vmul.f32 1.442695, %v4004_v58  ;;  %v3060_v8 = vmul.f32 1.442695, %v4003_v61  ;;  %v6112_v35 = vadd.f32 %v3007_v56, %v6055_v23 }
0x1087   : > { %4657 = vpow2.f32 %v3058_v1  ;;  %v3066_v11 = vmul.f32 1.442695, %v4006_v4  ;;  %v3064_v21 = vmul.f32 1.442695, %v4005_v30  ;;  %v4008_v60 = vmul.f32 -1.702, %v6106_v33 }
0x1088   : > { %4659 = vpow2.f32 %v3062_v7  ;;  %v4007_v22 = vmul.f32 -1.702, %v6109_v36  ;;  %v4009_v44 = vmul.f32 -1.702, %v6112_v35 }
0x1089   : > { %v4642_v15 = vpop.eup %4641  ;;  %4661 = vpow2.f32 %v3060_v8  ;;  %v3070_v47 = vmul.f32 1.442695, %v4008_v60 }
0x108a   : > { %v4644_v16 = vpop.eup %4643  ;;  %v3074_v17 = vadd.f32 1.0, %v4642_v15  ;;  %4663 = vpow2.f32 %v3066_v11  ;;  %v3068_v3 = vmul.f32 1.442695, %v4007_v22  ;;  %v3072_v49 = vmul.f32 1.442695, %v4009_v44 }
0x108b   : > { %v4646_v18 = vpop.eup %4645  ;;  %v3076_v24 = vadd.f32 1.0, %v4644_v16 }
0x108c   : > { %v4648_v32 = vpop.eup %4647  ;;  %4665 = vrcp.f32 %v3074_v17  ;;  %v3075_v27 = vadd.f32 1.0, %v4646_v18 }
0x108d   : > { %v4650_v54 = vpop.eup %4649  ;;  %4667 = vrcp.f32 %v3076_v24  ;;  %v3077_v57 = vadd.f32 1.0, %v4648_v32 }
0x108e   : > { %v4652_v34 = vpop.eup %4651  ;;  %4669 = vrcp.f32 %v3075_v27  ;;  %v3078_v19 = vadd.f32 1.0, %v4650_v54 }
0x108f   : > { %v4654_v31 = vpop.eup %4653  ;;  %4671 = vrcp.f32 %v3077_v57  ;;  %v3080_v40 = vadd.f32 1.0, %v4652_v34 }
0x1090   : > { %v4656_v46 = vpop.eup %4655  ;;  %4673 = vrcp.f32 %v3078_v19  ;;  %v3079_v62 = vadd.f32 1.0, %v4654_v31 }
0x1091   : > { %v4658_v41 = vpop.eup %4657  ;;  %4675 = vrcp.f32 %v3080_v40  ;;  %v3081_v20 = vadd.f32 1.0, %v4656_v46 }
0x1092   : > { %4677 = vrcp.f32 %v3079_v62  ;;  %v3082_v14 = vadd.f32 1.0, %v4658_v41  ;;  %v4660_v43 = vpop.eup %4659 }
0x1093   : > { %4679 = vrcp.f32 %v3081_v20  ;;  %v4662_v38 = vpop.eup %4661  ;;  %v3084_v24 = vadd.f32 1.0, %v4660_v43 }
0x1094   : > { %4681 = vpow2.f32 %v3064_v21  ;;  %v4664_v23 = vpop.eup %4663  ;;  %v3083_v27 = vadd.f32 1.0, %v4662_v38 }
0x1095   : > { %4683 = vrcp.f32 %v3082_v14  ;;  %v3086_v63 = vadd.f32 1.0, %v4664_v23 }
0x1096   : > { %v4666_v9 = vpop.eup %4665 }
0x1097   : > { %v4668_v48 = vpop.eup %4667  ;;  %4685 = vrcp.f32 %v3086_v63  ;;  %v3122_v56 = vmul.f32 %v4666_v9, %v6057_v25 }
0x1098   : > { %v4670_v51 = vpop.eup %4669  ;;  %4687 = vpow2.f32 %v3070_v47  ;;  %v3124_v1 = vmul.f32 %v4668_v48, %v6060_v26 }
0x1099   : > { %v4672_v5 = vpop.eup %4671  ;;  %4689 = vpow2.f32 %v3068_v3  ;;  %v3123_v8 = vmul.f32 %v4670_v51, %v6063_v55 }
0x109a   : > { %v4674_v0 = vpop.eup %4673  ;;  %4691 = vpow2.f32 %v3072_v49  ;;  %v3125_v17 = vmul.f32 %v4672_v5, %v6066_v59 }
0x109b   : > { %v4676_v53 = vpop.eup %4675  ;;  %v3126_v58 = vmul.f32 %v4674_v0, %v6070_v37  ;;  %4693 = vrcp.f32 %v3084_v24 }
0x109c   : > { %v4678_v61 = vpop.eup %4677  ;;  %v3128_v4 = vmul.f32 %v4676_v53, %v6073_v39  ;;  %4695 = vrcp.f32 %v3083_v27 }
0x109d   : > { %v4680_v7 = vpop.eup %4679  ;;  %v3138_v11 = vpack.c.bf16 %v3126_v58, %v3122_v56  ;;  %v3127_v15 = vmul.f32 %v4678_v61, %v6078_v42 }
0x109e   : > { %v4682_v16 = vpop.eup %4681  ;;  %v3140_v18 = vpack.c.bf16 %v3128_v4, %v3124_v1  ;;  %v3129_v25 = vmul.f32 %v4680_v7, %v6081_v45 }
0x109f   : > { %v3139_v37 = vpack.c.bf16 %v3127_v15, %v3123_v8  ;;  %v4684_v32 = vpop.eup %4683  ;;  %v3085_v26 = vadd.f32 1.0, %v4682_v16 }
0x10a0   : > { %v3141_v30 = vpack.c.bf16 %v3129_v25, %v3125_v17  ;;  %v3130_v54 = vmul.f32 %v4684_v32, %v6087_v2 }
0x10a1   : > { %3441 = vmatprep.mubr.bf16.mxu0 %v3139_v37  ;;  %v4686_v39 = vpop.eup %4685  ;;  %4697 = vrcp.f32 %v3085_v26 }
0x10a2   : > { %3490 = vmatprep.mubr.bf16.mxu1 %v3141_v30  ;;  %3442 = vmatmul.mubr.bf16.vlgmr.msra.gmra.mrb[52].mxu0 %v3138_v11  ;;  %v4688_v55 = vpop.eup %4687  ;;  %v3134_v42 = vmul.f32 %v4686_v39, %v6096_v29 }
0x10a3   : > { %3491 = vmatmul.mubr.bf16.vlgmr.msra.gmra.mrb[44].mxu1 %v3140_v18  ;;  %v4690_v59 = vpop.eup %4689  ;;  %v3088_v45 = vadd.f32 1.0, %v4688_v55 }
0x10a4   : > { %v4692_v57 = vpop.eup %4691  ;;  %v3087_v34 = vadd.f32 1.0, %v4690_v59  ;;  %v3142_v19 = vpack.c.bf16 %v3134_v42, %v3130_v54 }
0x10a5   : > { %4699 = vrcp.f32 %v3088_v45  ;;  %v3089_v31 = vadd.f32 1.0, %v4692_v57  ;;  %v4694_v40 = vpop.eup %4693 }
0x10a6   : > { %4701 = vrcp.f32 %v3087_v34  ;;  %v4696_v46 = vpop.eup %4695  ;;  %v3132_v41 = vmul.f32 %v4694_v40, %v6090_v52 }
0x10a7   : > { %4703 = vrcp.f32 %v3089_v31  ;;  %v3131_v60 = vmul.f32 %v4696_v46, %v6093_v50  ;;  %v4010_v50 = vld [vmem:[%s822_s18] ss:$0 sm:$0xff] }
0x10ab   : > { %v4698_v62 = vpop.eup %4697 }
0x10ac   : > { %v3133_v22 = vmul.f32 %v4698_v62, %v6102_v12 }
0x10af   : > { %v4700_v21 = vpop.eup %4699 }
0x10b0   : > { %v4702_v2 = vpop.eup %4701  ;;  %v3136_v29 = vmul.f32 %v4700_v21, %v6106_v33 }
0x10b1   : > { %v4704_v20 = vpop.eup %4703  ;;  %v3135_v14 = vmul.f32 %v4702_v2, %v6109_v36 }
0x10b2   : > { %v3137_v43 = vmul.f32 %v4704_v20, %v6112_v35  ;;  %v3144_v44 = vpack.c.bf16 %v3136_v29, %v3132_v41 }
0x10b3   : > { %v3143_v38 = vpack.c.bf16 %v3135_v14, %v3131_v60 }
0x10b4   : > { %v3145_v23 = vpack.c.bf16 %v3137_v43, %v3133_v22 }
0x10b5   : > { %3449 = vmatprep.mubr.bf16.mxu0 %v3143_v38 }
0x10b6   : > { %3498 = vmatprep.mubr.bf16.mxu1 %v3145_v23  ;;  %3450 = vmatmul.mubr.bf16.gmra.mrb[56].mxu0 %v3142_v19 }
0x10b7   : > { %3499 = vmatmul.mubr.bf16.gmra.mrb[48].mxu1 %v3144_v44 }
0x1175   : > { %v4121_v52 = vpop.f32.mrb[52].mxu0 }
0x1176   : > { %v4149_v47 = vpop.f32.mrb[44].mxu1  ;;  %v4122_v33 = vpop.f32.mrb[53].mxu0 }
0x1177   : > { %v4123_v36 = vadd.f32 %v4122_v33, %v4121_v52  ;;  %v4150_v9 = vpop.f32.mrb[45].mxu1  ;;  %v4124_v12 = vpop.f32.mrb[54].mxu0 }
0x1178   : > { %v4151_v63 = vadd.f32 %v4150_v9, %v4149_v47  ;;  %v4152_v35 = vpop.f32.mrb[46].mxu1  ;;  %v4125_v3 = vpop.f32.mrb[55].mxu0 }
0x1179   : > { %v3444_v48 = vadd.f32 %v4123_v36, %v4010_v50  ;;  %v4126_v49 = vadd.f32 %v4125_v3, %v4124_v12  ;;  %v4153_v51 = vpop.f32.mrb[47].mxu1  ;;  %v4045_v36 = vld [vmem:[%s6288_s17] ss:$0 sm:$0xff] (!%p4043_p11) }
0x117a   : > { %v4154_v5 = vadd.f32 %v4153_v51, %v4152_v35 }
0x117b   : > { %v3493_v0 = vadd.f32 %v4151_v63, %v3444_v48  ;;  %v3447_v53 = vadd.f32 %v4126_v49, %v4010_v50 }
0x117d   : > { %v3507_v56 = vadd.f32 %v3493_v0, %v5931_v28  ;;  %v3496_v58 = vadd.f32 %v4154_v5, %v3447_v53 }
0x117f   : > { %3511 = vst [vmem:[#allocation2] sm:$0xff] %v3507_v56  ;;  %v3508_v61 = vadd.f32 %v3496_v58, %v5933_v6  ;;  %3521 = vadd.xlane.f32.xlu0 (!%p4043_p11), %v3507_v56 }
0x1181   : > { %3512 = vst [vmem:[#allocation2 + $0x8] sm:$0xff] %v3508_v61 }
0x1183   : > { %3523 = vadd.xlane.f32.xlu0 (!%p4043_p11), %v3508_v61 }
0x1189   : > { %v4127_v1 = vpop.f32.mrb[56].mxu0 }
0x118a   : > { %v4155_v4 = vpop.f32.mrb[48].mxu1  ;;  %v4128_v7 = vpop.f32.mrb[57].mxu0 }
0x118b   : > { %v4129_v8 = vadd.f32 %v4128_v7, %v4127_v1  ;;  %v4156_v11 = vpop.f32.mrb[49].mxu1  ;;  %v4130_v15 = vpop.f32.mrb[58].mxu0 }
0x118c   : > { %v4157_v16 = vadd.f32 %v4156_v11, %v4155_v4  ;;  %v4158_v17 = vpop.f32.mrb[50].mxu1  ;;  %v4131_v18 = vpop.f32.mrb[59].mxu0 }
0x118d   : > { %v3452_v25 = vadd.f32 %v4129_v8, %v4010_v50  ;;  %v4132_v24 = vadd.f32 %v4131_v18, %v4130_v15  ;;  %v4159_v37 = vpop.f32.mrb[51].mxu1 }
0x118e   : > { %v4160_v32 = vadd.f32 %v4159_v37, %v4158_v17 }
0x118f   : > { %v3501_v27 = vadd.f32 %v4157_v16, %v3452_v25  ;;  %v3455_v28 = vadd.f32 %v4132_v24, %v4010_v50  ;;  %3518 = sbr.rel (%p4043_p11) target bundleno = 4815 (0x12cf), region = 124  ;;  %v4044_v50 = vld [vmem:[%s6287_s3] ss:$0 sm:$0xff] (!%p4043_p11) }
0x1191   : > { %v3509_v30 = vadd.f32 %v3501_v27, %v5936_v10  ;;  %v3504_v26 = vadd.f32 %v4160_v32, %v3455_v28 }
0x1193   : > { %3513 = vst [vmem:[#allocation2 + $0x10] sm:$0xff] %v3509_v30  ;;  %v3510_v6 = vadd.f32 %v3504_v26, %v5940_v13  ;;  %3525 = vadd.xlane.f32.xlu1 (!%p4043_p11), %v3509_v30 }
0x1195   : > { %3514 = vst [vmem:[#allocation2 + $0x18] sm:$0xff] %v3510_v6 }
0x1197   : > { %3527 = vadd.xlane.f32.xlu1 %v3510_v6 }
0x120c   : > { %v3522_v39 = vpop.xlane.xlu0 %3521 }
0x120d   : > { %v3529_v54 = vmul.f32 0.0078125, %v3522_v39 }
0x120f   : > { %v3533_v59 = vsub.f32 %v3507_v56, %v3529_v54 }
0x1210   : > { %v3524_v57 = vpop.xlane.xlu0 %3523 }
0x1211   : > { %v3530_v34 = vmul.f32 0.0078125, %v3524_v57  ;;  %v3537_v19 = vmul.f32 %v3533_v59, %v3533_v59 }
0x1213   : > { %v3534_v13 = vsub.f32 %v3508_v61, %v3530_v34  ;;  %3541 = vadd.xlane.f32.xlu0 %v3537_v19 }
0x1215   : > { %v3538_v62 = vmul.f32 %v3534_v13, %v3534_v13 }
0x1217   : > { %3543 = vadd.xlane.f32.xlu1 %v3538_v62 }
0x1220   : > { %v3526_v55 = vpop.xlane.xlu1 %3525 }
0x1221   : > { %v3531_v42 = vmul.f32 0.0078125, %v3526_v55 }
0x1223   : > { %v3535_v45 = vsub.f32 %v3509_v30, %v3531_v42 }
0x1224   : > { %v3528_v10 = vpop.xlane.xlu1 %3527 }
0x1225   : > { %v3532_v31 = vmul.f32 0.0078125, %v3528_v10  ;;  %v3539_v46 = vmul.f32 %v3535_v45, %v3535_v45 }
0x1227   : > { %v3536_v40 = vsub.f32 %v3510_v6, %v3532_v31  ;;  %3545 = vadd.xlane.f32.xlu0 %v3539_v46 }
0x1229   : > { %v3540_v21 = vmul.f32 %v3536_v40, %v3536_v40 }
0x122b   : > { %3547 = vadd.xlane.f32.xlu1 %v3540_v21 }
0x12a0   : > { %v3542_v2 = vpop.xlane.xlu0 %3541 }
0x12a1   : > { %v3549_v41 = vmul.f32 0.0078125, %v3542_v2 }
0x12a3   : > { %v3553_v29 = vadd.f32 1e-05, %v3549_v41 }
0x12a4   : > { %v3544_v20 = vpop.xlane.xlu1 %3543 }
0x12a5   : > { %4709 = vrsqrt.f32 %v3553_v29  ;;  %v3550_v14 = vmul.f32 0.0078125, %v3544_v20 }
0x12a7   : > { %v3554_v43 = vadd.f32 1e-05, %v3550_v14 }
0x12a9   : > { %4711 = vrsqrt.f32 %v3554_v43 }
0x12af   : > { %v4710_v47 = vpop.eup %4709 }
0x12b0   : > { %v3561_v33 = vmul.f32 %v4710_v47, %v3533_v59 }
0x12b2   : > { %v3571_v9 = vmul.f32 %v4044_v50, %v3561_v33 }
0x12b3   : > { %v4712_v12 = vpop.eup %4711 }
0x12b4   : > { %v3546_v60 = vpop.xlane.xlu0 %3545  ;;  %v3581_v35 = vadd.f32 %v4045_v36, %v3571_v9  ;;  %v3562_v3 = vmul.f32 %v4712_v12, %v3534_v13 }
0x12b5   : > { %v3551_v22 = vmul.f32 0.0078125, %v3546_v60 }
0x12b6   : > { %3585 = vst [vmem:[#allocation17] sm:$0xff] %v3581_v35  ;;  %v3572_v49 = vmul.f32 %v4044_v50, %v3562_v3 }
0x12b7   : > { %v3555_v44 = vadd.f32 1e-05, %v3551_v22 }
0x12b8   : > { %v3548_v38 = vpop.xlane.xlu1 %3547  ;;  %v3582_v0 = vadd.f32 %v4045_v36, %v3572_v49 }
0x12b9   : > { %v3552_v23 = vmul.f32 0.0078125, %v3548_v38  ;;  %4713 = vrsqrt.f32 %v3555_v44 }
0x12ba   : > { %3586 = vst [vmem:[#allocation17 + $0x8] sm:$0xff] %v3582_v0 }
0x12bb   : > { %v3556_v52 = vadd.f32 1e-05, %v3552_v23 }
0x12bd   : > { %4715 = vrsqrt.f32 %v3556_v52 }
0x12c3   : > { %v4714_v63 = vpop.eup %4713 }
0x12c4   : > { %v3563_v48 = vmul.f32 %v4714_v63, %v3535_v45 }
0x12c6   : > { %v3573_v5 = vmul.f32 %v4044_v50, %v3563_v48 }
0x12c7   : > { %v4716_v51 = vpop.eup %4715 }
0x12c8   : > { %v3564_v53 = vmul.f32 %v4716_v51, %v3536_v40  ;;  %v3583_v56 = vadd.f32 %v4045_v36, %v3573_v5 }
0x12ca   : > { %v3574_v58 = vmul.f32 %v4044_v50, %v3564_v53  ;;  %3587 = vst [vmem:[#allocation17 + $0x10] sm:$0xff] %v3583_v56 }
0x12cc   : > { %v3584_v61 = vadd.f32 %v4045_v36, %v3574_v58 }
0x12ce   : > { %3588 = vst [vmem:[#allocation17 + $0x18] sm:$0xff] %v3584_v61 }
0x12cf PF: > { %p4356_p0 = scmp.eq.s32.totalorder %s5187_s22, 1  ;;  %s5063_s4 = smov [#allocation17]  }
0x12d0   : > { %s3595_s5 = sshll.u32 %s5063_s4, 4  ;;  %s3596_s5 = int_to_ptr.vmem [resolvable:$true] %s3595_s5 }
0x12d1   : > { %s4963_s0 = scalar_lea.vmem %s3596_s5, 512  ;;  %p4970_p2 = scmp.lt.s32.totalorder %s3596_s5, %s3596_s5 }
0x12d2   : > { %p4964_p12 = scmp.ne.s32.totalorder %s3596_s5, %s4963_s0  ;;  %p4971_p9 = scmp.lt.s32.totalorder %s4963_s0, %s4963_s0 }
0x12d4   : > { %p4965_p5 = pnand %p4964_p12, %p4356_p0  ;;  %p4972_p8 = por %p4971_p9, %p4970_p2 }
0x12d6   : > { %p4966_p10 = pneg %p4965_p5 }
0x12d8   : > { %p4973_p3 = pnand %p4972_p8, %p4966_p10 }
0x12da   : > { %4976 = shalt.err (!%p4973_p3)
}
0x12db   : > { %s6289_s10 = sld [smem:[#allocation41_spill]] }
0x12e1   : > { %s4977_s24 = scalar_lea.hbm %s6289_s10, 512 }
0x12e2   : > { %p4978_p4 = scmp.ne.s32.totalorder %s6289_s10, %s4977_s24  ;;  %p4983_p1 = scmp.lt.u32.totalorder %s4977_s24, %s6289_s10 }
0x12e4   : > { %p4979_p6 = pnand %p4978_p4, %p4356_p0 }
0x12e6   : > { %p4980_p13 = pneg %p4979_p6 }
0x12e8   : > { %p4985_p7 = pnand %p4983_p1, %p4980_p13 }
0x12ea   : > { %4988 = shalt.err (!%p4985_p7)
}
0x12eb   : > { %s5064_s1 = smov 128   ;;  %s5065_s21 = smov 8  }
0x12ec   : > { %4322 = dma.vmem_to_hbm [thread:$0]  (%p4356_p0), %s3596_s5, 512, %s6289_s10, [#allocation8], %s5064_s1, %s5064_s1, %s5065_s21  }
0x12ed   : > { %5020 = dma.done.wait (%p4356_p0), [#allocation8], 512  }
0x12ee   : > { %5022 = vsyncadd (%p4356_p0), [#allocation8], 4294966784 }
0x12ef PF: > { %s6290_s6 = sld [smem:[#allocation24_spill]]  ;;  %s6291_s27 = sld [smem:[#allocation23_spill]] }
0x12f0   : > { %s6292_s21 = sld [smem:[#allocation25_spill]]  ;;  %s6293_s1 = smov %s5029_s20 }
0x12f5   : > { %p31_p11 = scmp.ge.s32.totalorder %s6290_s6, 4   ;;  %s6294_s20 = smov %s6291_s27 }
0x12f7   :  { %33 = sbr.rel (!%p31_p11) target bundleno = 27 (0x1b), region = 241 }
0x12fe   :  { %3611 = vsyncpa [#allocation7], 1 }
0x12ff   :  { %3613 = vsyncpa [#allocation7 + $0x1], 1 }
0x1300   :  { %3614 = vsyncpa [#allocation10], 1 }
0x1301   :  { %3615 = vsyncpa [#allocation8], 1 }
0x1302   :  { %3617 = vsyncpa [#allocation8 + $0x1], 1 }

</bundles_post_ra>
